<compile_context>
chip_gen: v7x
topology: tpu7x:2x2x1
jax: 0.10.0
libtpu: 0.0.40
codegen_flags: <defaults>
</compile_context>

<pallas_src>
import math
import functools

import jax
import jax.numpy as jnp
from jax.experimental import pallas as pl
from jax.experimental.pallas import tpu as pltpu

F32 = jnp.float32
BF16 = jnp.bfloat16

# Per-layer parameter order (flattened into the pallas_call argument list).
LAYER_KEYS = ("w_q", "b_q", "w_k", "b_k", "w_v", "b_v", "w_o", "b_o",
              "ln1_w", "ln1_b", "w_1", "b_1", "w_2", "b_2", "ln2_w", "ln2_b")
N_LAYER_ARGS = len(LAYER_KEYS)

_PARALLEL = pltpu.CompilerParams(dimension_semantics=("parallel",))


# ----------------------------- fused model kernel ---------------------------

def _layernorm(r, gamma, beta, eps):
    mean = jnp.mean(r, axis=-1, keepdims=True)
    c = r - mean
    var = jnp.mean(c * c, axis=-1, keepdims=True)
    return c * jax.lax.rsqrt(var + eps) * gamma + beta


def _model_kernel(*refs, nhead, nlayers, scale, eps):
    # refs = (emb, pe, <16 per-layer args> * nlayers, w_dec, b_dec, out)
    emb_ref, pe_ref = refs[0], refs[1]
    w_dec_ref = refs[2 + N_LAYER_ARGS * nlayers]
    b_dec_ref = refs[3 + N_LAYER_ARGS * nlayers]
    o_ref = refs[-1]

    S, D = emb_ref.shape[1], emb_ref.shape[2]
    hd = D // nhead
    qk_scale = 1.0 / math.sqrt(hd)

    # Embedding scale + positional encoding (residual stream stays f32).
    x32 = emb_ref[0].astype(F32) * scale + pe_ref[...]            # (S, D) f32

    # Causal additive mask built in-kernel (no (S,S) HBM traffic).
    row = jax.lax.broadcasted_iota(jnp.int32, (S, S), 0)
    col = jax.lax.broadcasted_iota(jnp.int32, (S, S), 1)
    causal = col > row                                            # masked above diag

    for l in range(nlayers):                                      # static unroll
        base = 2 + l * N_LAYER_ARGS
        (w_q, b_q, w_k, b_k, w_v, b_v, w_o, b_o, ln1_w, ln1_b,
         w_1, b_1, w_2, b_2, ln2_w, ln2_b) = refs[base:base + N_LAYER_ARGS]

        # ---- multi-head causal self-attention + out-proj ----
        x_bf = x32.astype(BF16)
        y = jnp.broadcast_to(b_o[...], (S, D)).astype(F32)        # out-proj bias
        for h in range(nhead):                                    # static unroll
            q = (jnp.dot(x_bf, w_q[h], preferred_element_type=F32)
                 + b_q[h]) * qk_scale                             # (S, hd) f32
            k = jnp.dot(x_bf, w_k[h], preferred_element_type=F32) + b_k[h]
            v = jnp.dot(x_bf, w_v[h], preferred_element_type=F32) + b_v[h]

            s = jnp.einsum("sd,td->st", q.astype(BF16), k.astype(BF16),
                           preferred_element_type=F32)            # (S, S) f32
            s = jnp.where(causal, -1e30, s)
            s = s - jnp.max(s, axis=-1, keepdims=True)
            p = jnp.exp(s)
            p = p * pl.reciprocal(jnp.sum(p, axis=-1, keepdims=True), approx=True)

            att = jnp.dot(p.astype(BF16), v.astype(BF16),
                          preferred_element_type=F32)             # (S, hd)
            y = y + jnp.dot(att.astype(BF16), w_o[h],
                            preferred_element_type=F32)           # (S, D)

        # residual + LayerNorm1 (post-norm), stats in f32
        x32 = _layernorm(x32 + y, ln1_w[...], ln1_b[...], eps)

        # ---- FFN: W1 + ReLU + W2, residual + LayerNorm2 ----
        x_bf = x32.astype(BF16)
        hid = jnp.dot(x_bf, w_1[...], preferred_element_type=F32) + b_1[...]
        hid = jnp.maximum(hid, 0.0)
        y = jnp.dot(hid.astype(BF16), w_2[...],
                    preferred_element_type=F32) + b_2[...]
        x32 = _layernorm(x32 + y, ln2_w[...], ln2_b[...], eps)

    # ---- decoder projection to vocabulary logits ----
    o_ref[0] = jnp.dot(x32.astype(BF16), w_dec_ref[...],
                       preferred_element_type=F32) + b_dec_ref[...]


# ----------------------------- kernel wrapper -------------------------------

def _const_spec(shape):
    # Full-array block, constant block index -> stays resident across the grid.
    return pl.BlockSpec(shape, lambda b, _n=len(shape): (0,) * _n)


def transformer_fused(emb, pe, layer_args, w_dec, b_dec, *, nhead, nlayers,
                      scale, eps=1e-5):
    B, S, D = emb.shape
    N = w_dec.shape[1]
    row_in = pl.BlockSpec((1, S, D), lambda b: (b, 0, 0))
    row_out = pl.BlockSpec((1, S, N), lambda b: (b, 0, 0))
    const_args = (pe,) + tuple(layer_args) + (w_dec, b_dec)
    return pl.pallas_call(
        functools.partial(_model_kernel, nhead=nhead, nlayers=nlayers,
                          scale=scale, eps=eps),
        out_shape=jax.ShapeDtypeStruct((B, S, N), F32),
        grid=(B,),
        in_specs=[row_in] + [_const_spec(a.shape) for a in const_args],
        out_specs=row_out,
        compiler_params=_PARALLEL,
    )(emb, *const_args)


# ------------------------------- model glue ---------------------------------

def positional_encoding(max_len, d_model):
    position = jnp.arange(max_len, dtype=F32)[:, None]
    div_term = jnp.exp(jnp.arange(0, d_model, 2, dtype=F32)
                       * (-math.log(10000.0) / d_model))
    pe = jnp.zeros((max_len, d_model), F32)
    pe = pe.at[:, 0::2].set(jnp.sin(position * div_term))
    pe = pe.at[:, 1::2].set(jnp.cos(position * div_term))
    return pe  # (max_len, d_model)


def init_params(key, ntoken, d_model, nhead, d_hid, nlayers):
    hd = d_model // nhead
    keys = jax.random.split(key, 2 + nlayers)
    params = {
        "emb": jax.random.normal(keys[0], (ntoken, d_model), F32).astype(BF16),
        # decoder weight stored pre-transposed as (D, ntoken)
        "w_dec": (jax.random.normal(keys[1], (ntoken, d_model), F32) * 0.05
                  ).T.astype(BF16),
        "b_dec": jnp.zeros((1, ntoken), F32),
        "layers": [],
    }
    for l in range(nlayers):
        k = jax.random.split(keys[2 + l], 6)

        def head_w(kk):   # per-head projection weight already in (K=D, N=hd) layout
            return (jax.random.normal(kk, (nhead, d_model, hd), F32) * 0.05
                    ).astype(BF16)

        params["layers"].append(dict(
            w_q=head_w(k[0]), w_k=head_w(k[1]), w_v=head_w(k[2]),
            b_q=jnp.zeros((nhead, 1, hd), F32),
            b_k=jnp.zeros((nhead, 1, hd), F32),
            b_v=jnp.zeros((nhead, 1, hd), F32),
            # out-proj weight stored per head as (H, hd, D)
            w_o=(jax.random.normal(k[3], (nhead, hd, d_model), F32) * 0.05
                 ).astype(BF16),
            b_o=jnp.zeros((1, d_model), F32),
            ln1_w=jnp.ones((1, d_model), F32), ln1_b=jnp.zeros((1, d_model), F32),
            # FFN weights pre-transposed to (K, N)
            w_1=(jax.random.normal(k[4], (d_hid, d_model), F32) * 0.05
                 ).T.astype(BF16),
            b_1=jnp.zeros((1, d_hid), F32),
            w_2=(jax.random.normal(k[5], (d_model, d_hid), F32) * 0.05
                 ).T.astype(BF16),
            b_2=jnp.zeros((1, d_model), F32),
            ln2_w=jnp.ones((1, d_model), F32), ln2_b=jnp.zeros((1, d_model), F32),
        ))
    return params


def transformer_forward(params, src, d_model, nhead):
    S, B = src.shape  # seq-first tokens, matching PyTorch batch_first=False
    nlayers = len(params["layers"])

    # TODO(synk): token embedding gather stays in JAX glue (no clean Pallas
    # equivalent without a manual DMA gather); everything downstream runs in a
    # single fused Pallas kernel on lane-dense (S, D) slabs per batch element.
    emb = jnp.take(params["emb"], src.T, axis=0)          # (B, S, D) bf16
    pe = positional_encoding(S, d_model)                  # (S, D) f32

    flat = tuple(layer[k] for layer in params["layers"] for k in LAYER_KEYS)
    logits = transformer_fused(emb, pe, flat, params["w_dec"], params["b_dec"],
                               nhead=nhead, nlayers=nlayers,
                               scale=math.sqrt(d_model))  # (B, S, ntoken) f32
    return jnp.transpose(logits, (1, 0, 2))               # (S, B, ntoken)


# ---------------------------------- main -------------------------------------

if __name__ == "__main__":
    ntoken, d_model, nhead, d_hid, nlayers = 64, 32, 4, 64, 2
    S, B = 8, 2

    key = jax.random.PRNGKey(0)
    pkey, skey = jax.random.split(key)
    params = init_params(pkey, ntoken, d_model, nhead, d_hid, nlayers)
    src = jax.random.randint(skey, (S, B), 0, ntoken, dtype=jnp.int32)

    fwd = jax.jit(functools.partial(transformer_forward,
                                    d_model=d_model, nhead=nhead))
    out = jax.block_until_ready(fwd(params, src))

    assert out.shape == (S, B, ntoken), out.shape
    assert bool(jnp.all(jnp.isfinite(out)))
    print("KERNEL_OK")
</pallas_src>

<mosaic_0001>
module attributes {stable_mosaic.version = 11 : i64} {
  func.func @_model_kernel(%arg0: i32, %arg1: memref<1x8x32xbf16, #tpu.memory_space<vmem>>, %arg2: memref<8x32xf32, #tpu.memory_space<vmem>>, %arg3: memref<4x32x8xbf16, #tpu.memory_space<vmem>>, %arg4: memref<4x1x8xf32, #tpu.memory_space<vmem>>, %arg5: memref<4x32x8xbf16, #tpu.memory_space<vmem>>, %arg6: memref<4x1x8xf32, #tpu.memory_space<vmem>>, %arg7: memref<4x32x8xbf16, #tpu.memory_space<vmem>>, %arg8: memref<4x1x8xf32, #tpu.memory_space<vmem>>, %arg9: memref<4x8x32xbf16, #tpu.memory_space<vmem>>, %arg10: memref<1x32xf32, #tpu.memory_space<vmem>>, %arg11: memref<1x32xf32, #tpu.memory_space<vmem>>, %arg12: memref<1x32xf32, #tpu.memory_space<vmem>>, %arg13: memref<32x64xbf16, #tpu.memory_space<vmem>>, %arg14: memref<1x64xf32, #tpu.memory_space<vmem>>, %arg15: memref<64x32xbf16, #tpu.memory_space<vmem>>, %arg16: memref<1x32xf32, #tpu.memory_space<vmem>>, %arg17: memref<1x32xf32, #tpu.memory_space<vmem>>, %arg18: memref<1x32xf32, #tpu.memory_space<vmem>>, %arg19: memref<4x32x8xbf16, #tpu.memory_space<vmem>>, %arg20: memref<4x1x8xf32, #tpu.memory_space<vmem>>, %arg21: memref<4x32x8xbf16, #tpu.memory_space<vmem>>, %arg22: memref<4x1x8xf32, #tpu.memory_space<vmem>>, %arg23: memref<4x32x8xbf16, #tpu.memory_space<vmem>>, %arg24: memref<4x1x8xf32, #tpu.memory_space<vmem>>, %arg25: memref<4x8x32xbf16, #tpu.memory_space<vmem>>, %arg26: memref<1x32xf32, #tpu.memory_space<vmem>>, %arg27: memref<1x32xf32, #tpu.memory_space<vmem>>, %arg28: memref<1x32xf32, #tpu.memory_space<vmem>>, %arg29: memref<32x64xbf16, #tpu.memory_space<vmem>>, %arg30: memref<1x64xf32, #tpu.memory_space<vmem>>, %arg31: memref<64x32xbf16, #tpu.memory_space<vmem>>, %arg32: memref<1x32xf32, #tpu.memory_space<vmem>>, %arg33: memref<1x32xf32, #tpu.memory_space<vmem>>, %arg34: memref<1x32xf32, #tpu.memory_space<vmem>>, %arg35: memref<32x64xbf16, #tpu.memory_space<vmem>>, %arg36: memref<1x64xf32, #tpu.memory_space<vmem>>, %arg37: memref<1x8x64xf32, #tpu.memory_space<vmem>>) attributes {dimension_semantics = [#tpu.dimension_semantics<parallel>], iteration_bounds = array<i64: 2>, scalar_prefetch = 0 : i64, scratch_operands = 0 : i64, tpu.core_type = #tpu.core_type<tc>, window_params = [{transform_indices = @transform_0, window_bounds = array<i64: 1, 8, 32>}, {pipeline_mode = #tpu.pipeline_mode<synchronous>, transform_indices = @transform_1, window_bounds = array<i64: 8, 32>}, {pipeline_mode = #tpu.pipeline_mode<synchronous>, transform_indices = @transform_2, window_bounds = array<i64: 4, 32, 8>}, {pipeline_mode = #tpu.pipeline_mode<synchronous>, transform_indices = @transform_3, window_bounds = array<i64: 4, 1, 8>}, {pipeline_mode = #tpu.pipeline_mode<synchronous>, transform_indices = @transform_4, window_bounds = array<i64: 4, 32, 8>}, {pipeline_mode = #tpu.pipeline_mode<synchronous>, transform_indices = @transform_5, window_bounds = array<i64: 4, 1, 8>}, {pipeline_mode = #tpu.pipeline_mode<synchronous>, transform_indices = @transform_6, window_bounds = array<i64: 4, 32, 8>}, {pipeline_mode = #tpu.pipeline_mode<synchronous>, transform_indices = @transform_7, window_bounds = array<i64: 4, 1, 8>}, {pipeline_mode = #tpu.pipeline_mode<synchronous>, transform_indices = @transform_8, window_bounds = array<i64: 4, 8, 32>}, {pipeline_mode = #tpu.pipeline_mode<synchronous>, transform_indices = @transform_9, window_bounds = array<i64: 1, 32>}, {pipeline_mode = #tpu.pipeline_mode<synchronous>, transform_indices = @transform_10, window_bounds = array<i64: 1, 32>}, {pipeline_mode = #tpu.pipeline_mode<synchronous>, transform_indices = @transform_11, window_bounds = array<i64: 1, 32>}, {pipeline_mode = #tpu.pipeline_mode<synchronous>, transform_indices = @transform_12, window_bounds = array<i64: 32, 64>}, {pipeline_mode = #tpu.pipeline_mode<synchronous>, transform_indices = @transform_13, window_bounds = array<i64: 1, 64>}, {pipeline_mode = #tpu.pipeline_mode<synchronous>, transform_indices = @transform_14, window_bounds = array<i64: 64, 32>}, {pipeline_mode = #tpu.pipeline_mode<synchronous>, transform_indices = @transform_15, window_bounds = array<i64: 1, 32>}, {pipeline_mode = #tpu.pipeline_mode<synchronous>, transform_indices = @transform_16, window_bounds = array<i64: 1, 32>}, {pipeline_mode = #tpu.pipeline_mode<synchronous>, transform_indices = @transform_17, window_bounds = array<i64: 1, 32>}, {pipeline_mode = #tpu.pipeline_mode<synchronous>, transform_indices = @transform_18, window_bounds = array<i64: 4, 32, 8>}, {pipeline_mode = #tpu.pipeline_mode<synchronous>, transform_indices = @transform_19, window_bounds = array<i64: 4, 1, 8>}, {pipeline_mode = #tpu.pipeline_mode<synchronous>, transform_indices = @transform_20, window_bounds = array<i64: 4, 32, 8>}, {pipeline_mode = #tpu.pipeline_mode<synchronous>, transform_indices = @transform_21, window_bounds = array<i64: 4, 1, 8>}, {pipeline_mode = #tpu.pipeline_mode<synchronous>, transform_indices = @transform_22, window_bounds = array<i64: 4, 32, 8>}, {pipeline_mode = #tpu.pipeline_mode<synchronous>, transform_indices = @transform_23, window_bounds = array<i64: 4, 1, 8>}, {pipeline_mode = #tpu.pipeline_mode<synchronous>, transform_indices = @transform_24, window_bounds = array<i64: 4, 8, 32>}, {pipeline_mode = #tpu.pipeline_mode<synchronous>, transform_indices = @transform_25, window_bounds = array<i64: 1, 32>}, {pipeline_mode = #tpu.pipeline_mode<synchronous>, transform_indices = @transform_26, window_bounds = array<i64: 1, 32>}, {pipeline_mode = #tpu.pipeline_mode<synchronous>, transform_indices = @transform_27, window_bounds = array<i64: 1, 32>}, {pipeline_mode = #tpu.pipeline_mode<synchronous>, transform_indices = @transform_28, window_bounds = array<i64: 32, 64>}, {pipeline_mode = #tpu.pipeline_mode<synchronous>, transform_indices = @transform_29, window_bounds = array<i64: 1, 64>}, {pipeline_mode = #tpu.pipeline_mode<synchronous>, transform_indices = @transform_30, window_bounds = array<i64: 64, 32>}, {pipeline_mode = #tpu.pipeline_mode<synchronous>, transform_indices = @transform_31, window_bounds = array<i64: 1, 32>}, {pipeline_mode = #tpu.pipeline_mode<synchronous>, transform_indices = @transform_32, window_bounds = array<i64: 1, 32>}, {pipeline_mode = #tpu.pipeline_mode<synchronous>, transform_indices = @transform_33, window_bounds = array<i64: 1, 32>}, {pipeline_mode = #tpu.pipeline_mode<synchronous>, transform_indices = @transform_34, window_bounds = array<i64: 32, 64>}, {pipeline_mode = #tpu.pipeline_mode<synchronous>, transform_indices = @transform_35, window_bounds = array<i64: 1, 64>}, {transform_indices = @transform_36, window_bounds = array<i64: 1, 8, 64>}]} {
    %c0 = arith.constant 0 : index
    %c0_0 = arith.constant 0 : index
    %c0_1 = arith.constant 0 : index
    %0 = vector.load %arg1[%c0, %c0_0, %c0_1] : memref<1x8x32xbf16, #tpu.memory_space<vmem>>, vector<1x8x32xbf16>
    %1 = vector.shape_cast %0 : vector<1x8x32xbf16> to vector<8x32xbf16>
    %2 = arith.extf %1 : vector<8x32xbf16> to vector<8x32xf32>
    %cst = arith.constant 5.65685415 : f32
    %3 = vector.broadcast %cst : f32 to vector<8x32xf32>
    %4 = arith.mulf %2, %3 : vector<8x32xf32>
    %c0_2 = arith.constant 0 : index
    %c0_3 = arith.constant 0 : index
    %5 = vector.load %arg2[%c0_2, %c0_3] : memref<8x32xf32, #tpu.memory_space<vmem>>, vector<8x32xf32>
    %6 = arith.addf %4, %5 : vector<8x32xf32>
    %7 = tpu.iota {dimensions = array<i32: 0>} : vector<8x8xi32>
    %8 = tpu.iota {dimensions = array<i32: 1>} : vector<8x8xi32>
    %9 = arith.cmpi sgt, %8, %7 : vector<8x8xi32>
    %10 = arith.truncf %6 : vector<8x32xf32> to vector<8x32xbf16>
    %c0_4 = arith.constant 0 : index
    %c0_5 = arith.constant 0 : index
    %11 = vector.load %arg10[%c0_4, %c0_5] : memref<1x32xf32, #tpu.memory_space<vmem>>, vector<1x32xf32>
    %12 = vector.shape_cast %11 : vector<1x32xf32> to vector<1x32xf32>
    %13 = vector.broadcast %12 : vector<1x32xf32> to vector<8x32xf32>
    %c0_6 = arith.constant 0 : index
    %c0_7 = arith.constant 0 : index
    %c0_8 = arith.constant 0 : index
    %14 = vector.load %arg3[%c0_6, %c0_7, %c0_8] : memref<4x32x8xbf16, #tpu.memory_space<vmem>>, vector<1x32x8xbf16>
    %15 = vector.shape_cast %14 : vector<1x32x8xbf16> to vector<32x8xbf16>
    %cst_9 = arith.constant dense<0.000000e+00> : vector<8x8xf32>
    %16 = tpu.matmul %10, %15, %cst_9 {dimension_numbers = #tpu.dot_dimension_numbers<[1], [0], [0], [1], [0, 0, 1, 1], [], []>} : vector<8x32xbf16>, vector<32x8xbf16>, vector<8x8xf32> -> vector<8x8xf32>
    %c0_10 = arith.constant 0 : index
    %c0_11 = arith.constant 0 : index
    %c0_12 = arith.constant 0 : index
    %17 = vector.load %arg4[%c0_10, %c0_11, %c0_12] : memref<4x1x8xf32, #tpu.memory_space<vmem>>, vector<1x1x8xf32>
    %18 = vector.shape_cast %17 : vector<1x1x8xf32> to vector<1x8xf32>
    %19 = vector.broadcast %18 : vector<1x8xf32> to vector<8x8xf32>
    %20 = arith.addf %16, %19 : vector<8x8xf32>
    %cst_13 = arith.constant 0.353553385 : f32
    %21 = vector.broadcast %cst_13 : f32 to vector<8x8xf32>
    %22 = arith.mulf %20, %21 : vector<8x8xf32>
    %c0_14 = arith.constant 0 : index
    %c0_15 = arith.constant 0 : index
    %c0_16 = arith.constant 0 : index
    %23 = vector.load %arg5[%c0_14, %c0_15, %c0_16] : memref<4x32x8xbf16, #tpu.memory_space<vmem>>, vector<1x32x8xbf16>
    %24 = vector.shape_cast %23 : vector<1x32x8xbf16> to vector<32x8xbf16>
    %cst_17 = arith.constant dense<0.000000e+00> : vector<8x8xf32>
    %25 = tpu.matmul %10, %24, %cst_17 {dimension_numbers = #tpu.dot_dimension_numbers<[1], [0], [0], [1], [0, 0, 1, 1], [], []>} : vector<8x32xbf16>, vector<32x8xbf16>, vector<8x8xf32> -> vector<8x8xf32>
    %c0_18 = arith.constant 0 : index
    %c0_19 = arith.constant 0 : index
    %c0_20 = arith.constant 0 : index
    %26 = vector.load %arg6[%c0_18, %c0_19, %c0_20] : memref<4x1x8xf32, #tpu.memory_space<vmem>>, vector<1x1x8xf32>
    %27 = vector.shape_cast %26 : vector<1x1x8xf32> to vector<1x8xf32>
    %28 = vector.broadcast %27 : vector<1x8xf32> to vector<8x8xf32>
    %29 = arith.addf %25, %28 : vector<8x8xf32>
    %c0_21 = arith.constant 0 : index
    %c0_22 = arith.constant 0 : index
    %c0_23 = arith.constant 0 : index
    %30 = vector.load %arg7[%c0_21, %c0_22, %c0_23] : memref<4x32x8xbf16, #tpu.memory_space<vmem>>, vector<1x32x8xbf16>
    %31 = vector.shape_cast %30 : vector<1x32x8xbf16> to vector<32x8xbf16>
    %cst_24 = arith.constant dense<0.000000e+00> : vector<8x8xf32>
    %32 = tpu.matmul %10, %31, %cst_24 {dimension_numbers = #tpu.dot_dimension_numbers<[1], [0], [0], [1], [0, 0, 1, 1], [], []>} : vector<8x32xbf16>, vector<32x8xbf16>, vector<8x8xf32> -> vector<8x8xf32>
    %c0_25 = arith.constant 0 : index
    %c0_26 = arith.constant 0 : index
    %c0_27 = arith.constant 0 : index
    %33 = vector.load %arg8[%c0_25, %c0_26, %c0_27] : memref<4x1x8xf32, #tpu.memory_space<vmem>>, vector<1x1x8xf32>
    %34 = vector.shape_cast %33 : vector<1x1x8xf32> to vector<1x8xf32>
    %35 = vector.broadcast %34 : vector<1x8xf32> to vector<8x8xf32>
    %36 = arith.addf %32, %35 : vector<8x8xf32>
    %37 = arith.truncf %22 : vector<8x8xf32> to vector<8x8xbf16>
    %38 = arith.truncf %29 : vector<8x8xf32> to vector<8x8xbf16>
    "tpu.trace_start"() <{level = 10 : i32, message = "sd,td->st"}> : () -> ()
    %cst_28 = arith.constant dense<0.000000e+00> : vector<8x8xf32>
    %39 = tpu.matmul %37, %38, %cst_28 {dimension_numbers = #tpu.dot_dimension_numbers<[1], [1], [0], [0], [0, 0, 1, 0], [], []>} : vector<8x8xbf16>, vector<8x8xbf16>, vector<8x8xf32> -> vector<8x8xf32>
    %cst_29 = arith.constant -1.000000e+30 : f32
    "tpu.trace_stop"() : () -> ()
    %40 = vector.broadcast %cst_29 : f32 to vector<8x8xf32>
    %41 = arith.select %9, %40, %39 : vector<8x8xi1>, vector<8x8xf32>
    %cst_30 = arith.constant dense<0xFF800000> : vector<8xf32>
    %42 = vector.multi_reduction <maximumf>, %41, %cst_30 [1] : vector<8x8xf32> to vector<8xf32>
    %43 = vector.shape_cast %42 : vector<8xf32> to vector<8x1xf32>
    %44 = vector.broadcast %43 : vector<8x1xf32> to vector<8x8xf32>
    %45 = arith.subf %41, %44 : vector<8x8xf32>
    %46 = math.exp %45 : vector<8x8xf32>
    %cst_31 = arith.constant dense<0.000000e+00> : vector<8xf32>
    %47 = vector.multi_reduction <add>, %46, %cst_31 [1] : vector<8x8xf32> to vector<8xf32>
    %48 = vector.shape_cast %47 : vector<8xf32> to vector<8x1xf32>
    %49 = tpu.reciprocal %48 {approx = true} : vector<8x1xf32> -> vector<8x1xf32>
    %50 = vector.broadcast %49 : vector<8x1xf32> to vector<8x8xf32>
    %51 = arith.mulf %46, %50 : vector<8x8xf32>
    %52 = arith.truncf %51 : vector<8x8xf32> to vector<8x8xbf16>
    %53 = arith.truncf %36 : vector<8x8xf32> to vector<8x8xbf16>
    %cst_32 = arith.constant dense<0.000000e+00> : vector<8x8xf32>
    %54 = tpu.matmul %52, %53, %cst_32 {dimension_numbers = #tpu.dot_dimension_numbers<[1], [0], [0], [1], [0, 0, 1, 1], [], []>} : vector<8x8xbf16>, vector<8x8xbf16>, vector<8x8xf32> -> vector<8x8xf32>
    %55 = arith.truncf %54 : vector<8x8xf32> to vector<8x8xbf16>
    %c0_33 = arith.constant 0 : index
    %c0_34 = arith.constant 0 : index
    %c0_35 = arith.constant 0 : index
    %56 = vector.load %arg9[%c0_33, %c0_34, %c0_35] : memref<4x8x32xbf16, #tpu.memory_space<vmem>>, vector<1x8x32xbf16>
    %57 = vector.shape_cast %56 : vector<1x8x32xbf16> to vector<8x32xbf16>
    %cst_36 = arith.constant dense<0.000000e+00> : vector<8x32xf32>
    %58 = tpu.matmul %55, %57, %cst_36 {dimension_numbers = #tpu.dot_dimension_numbers<[1], [0], [0], [1], [0, 0, 1, 1], [], []>} : vector<8x8xbf16>, vector<8x32xbf16>, vector<8x32xf32> -> vector<8x32xf32>
    %59 = arith.addf %13, %58 : vector<8x32xf32>
    %c1 = arith.constant 1 : index
    %c0_37 = arith.constant 0 : index
    %c0_38 = arith.constant 0 : index
    %60 = vector.load %arg3[%c1, %c0_37, %c0_38] : memref<4x32x8xbf16, #tpu.memory_space<vmem>>, vector<1x32x8xbf16>
    %61 = vector.shape_cast %60 : vector<1x32x8xbf16> to vector<32x8xbf16>
    %cst_39 = arith.constant dense<0.000000e+00> : vector<8x8xf32>
    %62 = tpu.matmul %10, %61, %cst_39 {dimension_numbers = #tpu.dot_dimension_numbers<[1], [0], [0], [1], [0, 0, 1, 1], [], []>} : vector<8x32xbf16>, vector<32x8xbf16>, vector<8x8xf32> -> vector<8x8xf32>
    %c1_40 = arith.constant 1 : index
    %c0_41 = arith.constant 0 : index
    %c0_42 = arith.constant 0 : index
    %63 = vector.load %arg4[%c1_40, %c0_41, %c0_42] : memref<4x1x8xf32, #tpu.memory_space<vmem>>, vector<1x1x8xf32>
    %64 = vector.shape_cast %63 : vector<1x1x8xf32> to vector<1x8xf32>
    %65 = vector.broadcast %64 : vector<1x8xf32> to vector<8x8xf32>
    %66 = arith.addf %62, %65 : vector<8x8xf32>
    %cst_43 = arith.constant 0.353553385 : f32
    %67 = vector.broadcast %cst_43 : f32 to vector<8x8xf32>
    %68 = arith.mulf %66, %67 : vector<8x8xf32>
    %c1_44 = arith.constant 1 : index
    %c0_45 = arith.constant 0 : index
    %c0_46 = arith.constant 0 : index
    %69 = vector.load %arg5[%c1_44, %c0_45, %c0_46] : memref<4x32x8xbf16, #tpu.memory_space<vmem>>, vector<1x32x8xbf16>
    %70 = vector.shape_cast %69 : vector<1x32x8xbf16> to vector<32x8xbf16>
    %cst_47 = arith.constant dense<0.000000e+00> : vector<8x8xf32>
    %71 = tpu.matmul %10, %70, %cst_47 {dimension_numbers = #tpu.dot_dimension_numbers<[1], [0], [0], [1], [0, 0, 1, 1], [], []>} : vector<8x32xbf16>, vector<32x8xbf16>, vector<8x8xf32> -> vector<8x8xf32>
    %c1_48 = arith.constant 1 : index
    %c0_49 = arith.constant 0 : index
    %c0_50 = arith.constant 0 : index
    %72 = vector.load %arg6[%c1_48, %c0_49, %c0_50] : memref<4x1x8xf32, #tpu.memory_space<vmem>>, vector<1x1x8xf32>
    %73 = vector.shape_cast %72 : vector<1x1x8xf32> to vector<1x8xf32>
    %74 = vector.broadcast %73 : vector<1x8xf32> to vector<8x8xf32>
    %75 = arith.addf %71, %74 : vector<8x8xf32>
    %c1_51 = arith.constant 1 : index
    %c0_52 = arith.constant 0 : index
    %c0_53 = arith.constant 0 : index
    %76 = vector.load %arg7[%c1_51, %c0_52, %c0_53] : memref<4x32x8xbf16, #tpu.memory_space<vmem>>, vector<1x32x8xbf16>
    %77 = vector.shape_cast %76 : vector<1x32x8xbf16> to vector<32x8xbf16>
    %cst_54 = arith.constant dense<0.000000e+00> : vector<8x8xf32>
    %78 = tpu.matmul %10, %77, %cst_54 {dimension_numbers = #tpu.dot_dimension_numbers<[1], [0], [0], [1], [0, 0, 1, 1], [], []>} : vector<8x32xbf16>, vector<32x8xbf16>, vector<8x8xf32> -> vector<8x8xf32>
    %c1_55 = arith.constant 1 : index
    %c0_56 = arith.constant 0 : index
    %c0_57 = arith.constant 0 : index
    %79 = vector.load %arg8[%c1_55, %c0_56, %c0_57] : memref<4x1x8xf32, #tpu.memory_space<vmem>>, vector<1x1x8xf32>
    %80 = vector.shape_cast %79 : vector<1x1x8xf32> to vector<1x8xf32>
    %81 = vector.broadcast %80 : vector<1x8xf32> to vector<8x8xf32>
    %82 = arith.addf %78, %81 : vector<8x8xf32>
    %83 = arith.truncf %68 : vector<8x8xf32> to vector<8x8xbf16>
    %84 = arith.truncf %75 : vector<8x8xf32> to vector<8x8xbf16>
    "tpu.trace_start"() <{level = 10 : i32, message = "sd,td->st"}> : () -> ()
    %cst_58 = arith.constant dense<0.000000e+00> : vector<8x8xf32>
    %85 = tpu.matmul %83, %84, %cst_58 {dimension_numbers = #tpu.dot_dimension_numbers<[1], [1], [0], [0], [0, 0, 1, 0], [], []>} : vector<8x8xbf16>, vector<8x8xbf16>, vector<8x8xf32> -> vector<8x8xf32>
    %cst_59 = arith.constant -1.000000e+30 : f32
    "tpu.trace_stop"() : () -> ()
    %86 = vector.broadcast %cst_59 : f32 to vector<8x8xf32>
    %87 = arith.select %9, %86, %85 : vector<8x8xi1>, vector<8x8xf32>
    %cst_60 = arith.constant dense<0xFF800000> : vector<8xf32>
    %88 = vector.multi_reduction <maximumf>, %87, %cst_60 [1] : vector<8x8xf32> to vector<8xf32>
    %89 = vector.shape_cast %88 : vector<8xf32> to vector<8x1xf32>
    %90 = vector.broadcast %89 : vector<8x1xf32> to vector<8x8xf32>
    %91 = arith.subf %87, %90 : vector<8x8xf32>
    %92 = math.exp %91 : vector<8x8xf32>
    %cst_61 = arith.constant dense<0.000000e+00> : vector<8xf32>
    %93 = vector.multi_reduction <add>, %92, %cst_61 [1] : vector<8x8xf32> to vector<8xf32>
    %94 = vector.shape_cast %93 : vector<8xf32> to vector<8x1xf32>
    %95 = tpu.reciprocal %94 {approx = true} : vector<8x1xf32> -> vector<8x1xf32>
    %96 = vector.broadcast %95 : vector<8x1xf32> to vector<8x8xf32>
    %97 = arith.mulf %92, %96 : vector<8x8xf32>
    %98 = arith.truncf %97 : vector<8x8xf32> to vector<8x8xbf16>
    %99 = arith.truncf %82 : vector<8x8xf32> to vector<8x8xbf16>
    %cst_62 = arith.constant dense<0.000000e+00> : vector<8x8xf32>
    %100 = tpu.matmul %98, %99, %cst_62 {dimension_numbers = #tpu.dot_dimension_numbers<[1], [0], [0], [1], [0, 0, 1, 1], [], []>} : vector<8x8xbf16>, vector<8x8xbf16>, vector<8x8xf32> -> vector<8x8xf32>
    %101 = arith.truncf %100 : vector<8x8xf32> to vector<8x8xbf16>
    %c1_63 = arith.constant 1 : index
    %c0_64 = arith.constant 0 : index
    %c0_65 = arith.constant 0 : index
    %102 = vector.load %arg9[%c1_63, %c0_64, %c0_65] : memref<4x8x32xbf16, #tpu.memory_space<vmem>>, vector<1x8x32xbf16>
    %103 = vector.shape_cast %102 : vector<1x8x32xbf16> to vector<8x32xbf16>
    %cst_66 = arith.constant dense<0.000000e+00> : vector<8x32xf32>
    %104 = tpu.matmul %101, %103, %cst_66 {dimension_numbers = #tpu.dot_dimension_numbers<[1], [0], [0], [1], [0, 0, 1, 1], [], []>} : vector<8x8xbf16>, vector<8x32xbf16>, vector<8x32xf32> -> vector<8x32xf32>
    %105 = arith.addf %59, %104 : vector<8x32xf32>
    %c2 = arith.constant 2 : index
    %c0_67 = arith.constant 0 : index
    %c0_68 = arith.constant 0 : index
    %106 = vector.load %arg3[%c2, %c0_67, %c0_68] : memref<4x32x8xbf16, #tpu.memory_space<vmem>>, vector<1x32x8xbf16>
    %107 = vector.shape_cast %106 : vector<1x32x8xbf16> to vector<32x8xbf16>
    %cst_69 = arith.constant dense<0.000000e+00> : vector<8x8xf32>
    %108 = tpu.matmul %10, %107, %cst_69 {dimension_numbers = #tpu.dot_dimension_numbers<[1], [0], [0], [1], [0, 0, 1, 1], [], []>} : vector<8x32xbf16>, vector<32x8xbf16>, vector<8x8xf32> -> vector<8x8xf32>
    %c2_70 = arith.constant 2 : index
    %c0_71 = arith.constant 0 : index
    %c0_72 = arith.constant 0 : index
    %109 = vector.load %arg4[%c2_70, %c0_71, %c0_72] : memref<4x1x8xf32, #tpu.memory_space<vmem>>, vector<1x1x8xf32>
    %110 = vector.shape_cast %109 : vector<1x1x8xf32> to vector<1x8xf32>
    %111 = vector.broadcast %110 : vector<1x8xf32> to vector<8x8xf32>
    %112 = arith.addf %108, %111 : vector<8x8xf32>
    %cst_73 = arith.constant 0.353553385 : f32
    %113 = vector.broadcast %cst_73 : f32 to vector<8x8xf32>
    %114 = arith.mulf %112, %113 : vector<8x8xf32>
    %c2_74 = arith.constant 2 : index
    %c0_75 = arith.constant 0 : index
    %c0_76 = arith.constant 0 : index
    %115 = vector.load %arg5[%c2_74, %c0_75, %c0_76] : memref<4x32x8xbf16, #tpu.memory_space<vmem>>, vector<1x32x8xbf16>
    %116 = vector.shape_cast %115 : vector<1x32x8xbf16> to vector<32x8xbf16>
    %cst_77 = arith.constant dense<0.000000e+00> : vector<8x8xf32>
    %117 = tpu.matmul %10, %116, %cst_77 {dimension_numbers = #tpu.dot_dimension_numbers<[1], [0], [0], [1], [0, 0, 1, 1], [], []>} : vector<8x32xbf16>, vector<32x8xbf16>, vector<8x8xf32> -> vector<8x8xf32>
    %c2_78 = arith.constant 2 : index
    %c0_79 = arith.constant 0 : index
    %c0_80 = arith.constant 0 : index
    %118 = vector.load %arg6[%c2_78, %c0_79, %c0_80] : memref<4x1x8xf32, #tpu.memory_space<vmem>>, vector<1x1x8xf32>
    %119 = vector.shape_cast %118 : vector<1x1x8xf32> to vector<1x8xf32>
    %120 = vector.broadcast %119 : vector<1x8xf32> to vector<8x8xf32>
    %121 = arith.addf %117, %120 : vector<8x8xf32>
    %c2_81 = arith.constant 2 : index
    %c0_82 = arith.constant 0 : index
    %c0_83 = arith.constant 0 : index
    %122 = vector.load %arg7[%c2_81, %c0_82, %c0_83] : memref<4x32x8xbf16, #tpu.memory_space<vmem>>, vector<1x32x8xbf16>
    %123 = vector.shape_cast %122 : vector<1x32x8xbf16> to vector<32x8xbf16>
    %cst_84 = arith.constant dense<0.000000e+00> : vector<8x8xf32>
    %124 = tpu.matmul %10, %123, %cst_84 {dimension_numbers = #tpu.dot_dimension_numbers<[1], [0], [0], [1], [0, 0, 1, 1], [], []>} : vector<8x32xbf16>, vector<32x8xbf16>, vector<8x8xf32> -> vector<8x8xf32>
    %c2_85 = arith.constant 2 : index
    %c0_86 = arith.constant 0 : index
    %c0_87 = arith.constant 0 : index
    %125 = vector.load %arg8[%c2_85, %c0_86, %c0_87] : memref<4x1x8xf32, #tpu.memory_space<vmem>>, vector<1x1x8xf32>
    %126 = vector.shape_cast %125 : vector<1x1x8xf32> to vector<1x8xf32>
    %127 = vector.broadcast %126 : vector<1x8xf32> to vector<8x8xf32>
    %128 = arith.addf %124, %127 : vector<8x8xf32>
    %129 = arith.truncf %114 : vector<8x8xf32> to vector<8x8xbf16>
    %130 = arith.truncf %121 : vector<8x8xf32> to vector<8x8xbf16>
    "tpu.trace_start"() <{level = 10 : i32, message = "sd,td->st"}> : () -> ()
    %cst_88 = arith.constant dense<0.000000e+00> : vector<8x8xf32>
    %131 = tpu.matmul %129, %130, %cst_88 {dimension_numbers = #tpu.dot_dimension_numbers<[1], [1], [0], [0], [0, 0, 1, 0], [], []>} : vector<8x8xbf16>, vector<8x8xbf16>, vector<8x8xf32> -> vector<8x8xf32>
    %cst_89 = arith.constant -1.000000e+30 : f32
    "tpu.trace_stop"() : () -> ()
    %132 = vector.broadcast %cst_89 : f32 to vector<8x8xf32>
    %133 = arith.select %9, %132, %131 : vector<8x8xi1>, vector<8x8xf32>
    %cst_90 = arith.constant dense<0xFF800000> : vector<8xf32>
    %134 = vector.multi_reduction <maximumf>, %133, %cst_90 [1] : vector<8x8xf32> to vector<8xf32>
    %135 = vector.shape_cast %134 : vector<8xf32> to vector<8x1xf32>
    %136 = vector.broadcast %135 : vector<8x1xf32> to vector<8x8xf32>
    %137 = arith.subf %133, %136 : vector<8x8xf32>
    %138 = math.exp %137 : vector<8x8xf32>
    %cst_91 = arith.constant dense<0.000000e+00> : vector<8xf32>
    %139 = vector.multi_reduction <add>, %138, %cst_91 [1] : vector<8x8xf32> to vector<8xf32>
    %140 = vector.shape_cast %139 : vector<8xf32> to vector<8x1xf32>
    %141 = tpu.reciprocal %140 {approx = true} : vector<8x1xf32> -> vector<8x1xf32>
    %142 = vector.broadcast %141 : vector<8x1xf32> to vector<8x8xf32>
    %143 = arith.mulf %138, %142 : vector<8x8xf32>
    %144 = arith.truncf %143 : vector<8x8xf32> to vector<8x8xbf16>
    %145 = arith.truncf %128 : vector<8x8xf32> to vector<8x8xbf16>
    %cst_92 = arith.constant dense<0.000000e+00> : vector<8x8xf32>
    %146 = tpu.matmul %144, %145, %cst_92 {dimension_numbers = #tpu.dot_dimension_numbers<[1], [0], [0], [1], [0, 0, 1, 1], [], []>} : vector<8x8xbf16>, vector<8x8xbf16>, vector<8x8xf32> -> vector<8x8xf32>
    %147 = arith.truncf %146 : vector<8x8xf32> to vector<8x8xbf16>
    %c2_93 = arith.constant 2 : index
    %c0_94 = arith.constant 0 : index
    %c0_95 = arith.constant 0 : index
    %148 = vector.load %arg9[%c2_93, %c0_94, %c0_95] : memref<4x8x32xbf16, #tpu.memory_space<vmem>>, vector<1x8x32xbf16>
    %149 = vector.shape_cast %148 : vector<1x8x32xbf16> to vector<8x32xbf16>
    %cst_96 = arith.constant dense<0.000000e+00> : vector<8x32xf32>
    %150 = tpu.matmul %147, %149, %cst_96 {dimension_numbers = #tpu.dot_dimension_numbers<[1], [0], [0], [1], [0, 0, 1, 1], [], []>} : vector<8x8xbf16>, vector<8x32xbf16>, vector<8x32xf32> -> vector<8x32xf32>
    %151 = arith.addf %105, %150 : vector<8x32xf32>
    %c3 = arith.constant 3 : index
    %c0_97 = arith.constant 0 : index
    %c0_98 = arith.constant 0 : index
    %152 = vector.load %arg3[%c3, %c0_97, %c0_98] : memref<4x32x8xbf16, #tpu.memory_space<vmem>>, vector<1x32x8xbf16>
    %153 = vector.shape_cast %152 : vector<1x32x8xbf16> to vector<32x8xbf16>
    %cst_99 = arith.constant dense<0.000000e+00> : vector<8x8xf32>
    %154 = tpu.matmul %10, %153, %cst_99 {dimension_numbers = #tpu.dot_dimension_numbers<[1], [0], [0], [1], [0, 0, 1, 1], [], []>} : vector<8x32xbf16>, vector<32x8xbf16>, vector<8x8xf32> -> vector<8x8xf32>
    %c3_100 = arith.constant 3 : index
    %c0_101 = arith.constant 0 : index
    %c0_102 = arith.constant 0 : index
    %155 = vector.load %arg4[%c3_100, %c0_101, %c0_102] : memref<4x1x8xf32, #tpu.memory_space<vmem>>, vector<1x1x8xf32>
    %156 = vector.shape_cast %155 : vector<1x1x8xf32> to vector<1x8xf32>
    %157 = vector.broadcast %156 : vector<1x8xf32> to vector<8x8xf32>
    %158 = arith.addf %154, %157 : vector<8x8xf32>
    %cst_103 = arith.constant 0.353553385 : f32
    %159 = vector.broadcast %cst_103 : f32 to vector<8x8xf32>
    %160 = arith.mulf %158, %159 : vector<8x8xf32>
    %c3_104 = arith.constant 3 : index
    %c0_105 = arith.constant 0 : index
    %c0_106 = arith.constant 0 : index
    %161 = vector.load %arg5[%c3_104, %c0_105, %c0_106] : memref<4x32x8xbf16, #tpu.memory_space<vmem>>, vector<1x32x8xbf16>
    %162 = vector.shape_cast %161 : vector<1x32x8xbf16> to vector<32x8xbf16>
    %cst_107 = arith.constant dense<0.000000e+00> : vector<8x8xf32>
    %163 = tpu.matmul %10, %162, %cst_107 {dimension_numbers = #tpu.dot_dimension_numbers<[1], [0], [0], [1], [0, 0, 1, 1], [], []>} : vector<8x32xbf16>, vector<32x8xbf16>, vector<8x8xf32> -> vector<8x8xf32>
    %c3_108 = arith.constant 3 : index
    %c0_109 = arith.constant 0 : index
    %c0_110 = arith.constant 0 : index
    %164 = vector.load %arg6[%c3_108, %c0_109, %c0_110] : memref<4x1x8xf32, #tpu.memory_space<vmem>>, vector<1x1x8xf32>
    %165 = vector.shape_cast %164 : vector<1x1x8xf32> to vector<1x8xf32>
    %166 = vector.broadcast %165 : vector<1x8xf32> to vector<8x8xf32>
    %167 = arith.addf %163, %166 : vector<8x8xf32>
    %c3_111 = arith.constant 3 : index
    %c0_112 = arith.constant 0 : index
    %c0_113 = arith.constant 0 : index
    %168 = vector.load %arg7[%c3_111, %c0_112, %c0_113] : memref<4x32x8xbf16, #tpu.memory_space<vmem>>, vector<1x32x8xbf16>
    %169 = vector.shape_cast %168 : vector<1x32x8xbf16> to vector<32x8xbf16>
    %cst_114 = arith.constant dense<0.000000e+00> : vector<8x8xf32>
    %170 = tpu.matmul %10, %169, %cst_114 {dimension_numbers = #tpu.dot_dimension_numbers<[1], [0], [0], [1], [0, 0, 1, 1], [], []>} : vector<8x32xbf16>, vector<32x8xbf16>, vector<8x8xf32> -> vector<8x8xf32>
    %c3_115 = arith.constant 3 : index
    %c0_116 = arith.constant 0 : index
    %c0_117 = arith.constant 0 : index
    %171 = vector.load %arg8[%c3_115, %c0_116, %c0_117] : memref<4x1x8xf32, #tpu.memory_space<vmem>>, vector<1x1x8xf32>
    %172 = vector.shape_cast %171 : vector<1x1x8xf32> to vector<1x8xf32>
    %173 = vector.broadcast %172 : vector<1x8xf32> to vector<8x8xf32>
    %174 = arith.addf %170, %173 : vector<8x8xf32>
    %175 = arith.truncf %160 : vector<8x8xf32> to vector<8x8xbf16>
    %176 = arith.truncf %167 : vector<8x8xf32> to vector<8x8xbf16>
    "tpu.trace_start"() <{level = 10 : i32, message = "sd,td->st"}> : () -> ()
    %cst_118 = arith.constant dense<0.000000e+00> : vector<8x8xf32>
    %177 = tpu.matmul %175, %176, %cst_118 {dimension_numbers = #tpu.dot_dimension_numbers<[1], [1], [0], [0], [0, 0, 1, 0], [], []>} : vector<8x8xbf16>, vector<8x8xbf16>, vector<8x8xf32> -> vector<8x8xf32>
    %cst_119 = arith.constant -1.000000e+30 : f32
    "tpu.trace_stop"() : () -> ()
    %178 = vector.broadcast %cst_119 : f32 to vector<8x8xf32>
    %179 = arith.select %9, %178, %177 : vector<8x8xi1>, vector<8x8xf32>
    %cst_120 = arith.constant dense<0xFF800000> : vector<8xf32>
    %180 = vector.multi_reduction <maximumf>, %179, %cst_120 [1] : vector<8x8xf32> to vector<8xf32>
    %181 = vector.shape_cast %180 : vector<8xf32> to vector<8x1xf32>
    %182 = vector.broadcast %181 : vector<8x1xf32> to vector<8x8xf32>
    %183 = arith.subf %179, %182 : vector<8x8xf32>
    %184 = math.exp %183 : vector<8x8xf32>
    %cst_121 = arith.constant dense<0.000000e+00> : vector<8xf32>
    %185 = vector.multi_reduction <add>, %184, %cst_121 [1] : vector<8x8xf32> to vector<8xf32>
    %186 = vector.shape_cast %185 : vector<8xf32> to vector<8x1xf32>
    %187 = tpu.reciprocal %186 {approx = true} : vector<8x1xf32> -> vector<8x1xf32>
    %188 = vector.broadcast %187 : vector<8x1xf32> to vector<8x8xf32>
    %189 = arith.mulf %184, %188 : vector<8x8xf32>
    %190 = arith.truncf %189 : vector<8x8xf32> to vector<8x8xbf16>
    %191 = arith.truncf %174 : vector<8x8xf32> to vector<8x8xbf16>
    %cst_122 = arith.constant dense<0.000000e+00> : vector<8x8xf32>
    %192 = tpu.matmul %190, %191, %cst_122 {dimension_numbers = #tpu.dot_dimension_numbers<[1], [0], [0], [1], [0, 0, 1, 1], [], []>} : vector<8x8xbf16>, vector<8x8xbf16>, vector<8x8xf32> -> vector<8x8xf32>
    %193 = arith.truncf %192 : vector<8x8xf32> to vector<8x8xbf16>
    %c3_123 = arith.constant 3 : index
    %c0_124 = arith.constant 0 : index
    %c0_125 = arith.constant 0 : index
    %194 = vector.load %arg9[%c3_123, %c0_124, %c0_125] : memref<4x8x32xbf16, #tpu.memory_space<vmem>>, vector<1x8x32xbf16>
    %195 = vector.shape_cast %194 : vector<1x8x32xbf16> to vector<8x32xbf16>
    %cst_126 = arith.constant dense<0.000000e+00> : vector<8x32xf32>
    %196 = tpu.matmul %193, %195, %cst_126 {dimension_numbers = #tpu.dot_dimension_numbers<[1], [0], [0], [1], [0, 0, 1, 1], [], []>} : vector<8x8xbf16>, vector<8x32xbf16>, vector<8x32xf32> -> vector<8x32xf32>
    %197 = arith.addf %151, %196 : vector<8x32xf32>
    %198 = arith.addf %6, %197 : vector<8x32xf32>
    %c0_127 = arith.constant 0 : index
    %c0_128 = arith.constant 0 : index
    %199 = vector.load %arg11[%c0_127, %c0_128] : memref<1x32xf32, #tpu.memory_space<vmem>>, vector<1x32xf32>
    %c0_129 = arith.constant 0 : index
    %c0_130 = arith.constant 0 : index
    %200 = vector.load %arg12[%c0_129, %c0_130] : memref<1x32xf32, #tpu.memory_space<vmem>>, vector<1x32xf32>
    %cst_131 = arith.constant dense<0.000000e+00> : vector<8xf32>
    %201 = vector.multi_reduction <add>, %198, %cst_131 [1] : vector<8x32xf32> to vector<8xf32>
    %202 = vector.shape_cast %201 : vector<8xf32> to vector<8x1xf32>
    %cst_132 = arith.constant 3.200000e+01 : f32
    %203 = vector.broadcast %cst_132 : f32 to vector<8x1xf32>
    %204 = arith.divf %202, %203 : vector<8x1xf32>
    %205 = vector.broadcast %204 : vector<8x1xf32> to vector<8x32xf32>
    %206 = arith.subf %198, %205 : vector<8x32xf32>
    %207 = arith.mulf %206, %206 : vector<8x32xf32>
    %cst_133 = arith.constant dense<0.000000e+00> : vector<8xf32>
    %208 = vector.multi_reduction <add>, %207, %cst_133 [1] : vector<8x32xf32> to vector<8xf32>
    %209 = vector.shape_cast %208 : vector<8xf32> to vector<8x1xf32>
    %cst_134 = arith.constant 3.200000e+01 : f32
    %210 = vector.broadcast %cst_134 : f32 to vector<8x1xf32>
    %211 = arith.divf %209, %210 : vector<8x1xf32>
    %cst_135 = arith.constant 9.99999974E-6 : f32
    %212 = vector.broadcast %cst_135 : f32 to vector<8x1xf32>
    %213 = arith.addf %211, %212 : vector<8x1xf32>
    %214 = math.rsqrt %213 : vector<8x1xf32>
    %215 = vector.broadcast %214 : vector<8x1xf32> to vector<8x32xf32>
    %216 = arith.mulf %206, %215 : vector<8x32xf32>
    %217 = vector.broadcast %199 : vector<1x32xf32> to vector<8x32xf32>
    %218 = arith.mulf %216, %217 : vector<8x32xf32>
    %219 = vector.broadcast %200 : vector<1x32xf32> to vector<8x32xf32>
    %220 = arith.addf %218, %219 : vector<8x32xf32>
    %221 = arith.truncf %220 : vector<8x32xf32> to vector<8x32xbf16>
    %c0_136 = arith.constant 0 : index
    %c0_137 = arith.constant 0 : index
    %222 = vector.load %arg13[%c0_136, %c0_137] : memref<32x64xbf16, #tpu.memory_space<vmem>>, vector<32x64xbf16>
    %cst_138 = arith.constant dense<0.000000e+00> : vector<8x64xf32>
    %223 = tpu.matmul %221, %222, %cst_138 {dimension_numbers = #tpu.dot_dimension_numbers<[1], [0], [0], [1], [0, 0, 1, 1], [], []>} : vector<8x32xbf16>, vector<32x64xbf16>, vector<8x64xf32> -> vector<8x64xf32>
    %c0_139 = arith.constant 0 : index
    %c0_140 = arith.constant 0 : index
    %224 = vector.load %arg14[%c0_139, %c0_140] : memref<1x64xf32, #tpu.memory_space<vmem>>, vector<1x64xf32>
    %225 = vector.broadcast %224 : vector<1x64xf32> to vector<8x64xf32>
    %226 = arith.addf %223, %225 : vector<8x64xf32>
    %cst_141 = arith.constant 0.000000e+00 : f32
    %227 = vector.broadcast %cst_141 : f32 to vector<8x64xf32>
    %228 = arith.maximumf %226, %227 : vector<8x64xf32>
    %229 = arith.truncf %228 : vector<8x64xf32> to vector<8x64xbf16>
    %c0_142 = arith.constant 0 : index
    %c0_143 = arith.constant 0 : index
    %230 = vector.load %arg15[%c0_142, %c0_143] : memref<64x32xbf16, #tpu.memory_space<vmem>>, vector<64x32xbf16>
    %cst_144 = arith.constant dense<0.000000e+00> : vector<8x32xf32>
    %231 = tpu.matmul %229, %230, %cst_144 {dimension_numbers = #tpu.dot_dimension_numbers<[1], [0], [0], [1], [0, 0, 1, 1], [], []>} : vector<8x64xbf16>, vector<64x32xbf16>, vector<8x32xf32> -> vector<8x32xf32>
    %c0_145 = arith.constant 0 : index
    %c0_146 = arith.constant 0 : index
    %232 = vector.load %arg16[%c0_145, %c0_146] : memref<1x32xf32, #tpu.memory_space<vmem>>, vector<1x32xf32>
    %233 = vector.broadcast %232 : vector<1x32xf32> to vector<8x32xf32>
    %234 = arith.addf %231, %233 : vector<8x32xf32>
    %235 = arith.addf %220, %234 : vector<8x32xf32>
    %c0_147 = arith.constant 0 : index
    %c0_148 = arith.constant 0 : index
    %236 = vector.load %arg17[%c0_147, %c0_148] : memref<1x32xf32, #tpu.memory_space<vmem>>, vector<1x32xf32>
    %c0_149 = arith.constant 0 : index
    %c0_150 = arith.constant 0 : index
    %237 = vector.load %arg18[%c0_149, %c0_150] : memref<1x32xf32, #tpu.memory_space<vmem>>, vector<1x32xf32>
    %cst_151 = arith.constant dense<0.000000e+00> : vector<8xf32>
    %238 = vector.multi_reduction <add>, %235, %cst_151 [1] : vector<8x32xf32> to vector<8xf32>
    %239 = vector.shape_cast %238 : vector<8xf32> to vector<8x1xf32>
    %cst_152 = arith.constant 3.200000e+01 : f32
    %240 = vector.broadcast %cst_152 : f32 to vector<8x1xf32>
    %241 = arith.divf %239, %240 : vector<8x1xf32>
    %242 = vector.broadcast %241 : vector<8x1xf32> to vector<8x32xf32>
    %243 = arith.subf %235, %242 : vector<8x32xf32>
    %244 = arith.mulf %243, %243 : vector<8x32xf32>
    %cst_153 = arith.constant dense<0.000000e+00> : vector<8xf32>
    %245 = vector.multi_reduction <add>, %244, %cst_153 [1] : vector<8x32xf32> to vector<8xf32>
    %246 = vector.shape_cast %245 : vector<8xf32> to vector<8x1xf32>
    %cst_154 = arith.constant 3.200000e+01 : f32
    %247 = vector.broadcast %cst_154 : f32 to vector<8x1xf32>
    %248 = arith.divf %246, %247 : vector<8x1xf32>
    %cst_155 = arith.constant 9.99999974E-6 : f32
    %249 = vector.broadcast %cst_155 : f32 to vector<8x1xf32>
    %250 = arith.addf %248, %249 : vector<8x1xf32>
    %251 = math.rsqrt %250 : vector<8x1xf32>
    %252 = vector.broadcast %251 : vector<8x1xf32> to vector<8x32xf32>
    %253 = arith.mulf %243, %252 : vector<8x32xf32>
    %254 = vector.broadcast %236 : vector<1x32xf32> to vector<8x32xf32>
    %255 = arith.mulf %253, %254 : vector<8x32xf32>
    %256 = vector.broadcast %237 : vector<1x32xf32> to vector<8x32xf32>
    %257 = arith.addf %255, %256 : vector<8x32xf32>
    %258 = arith.truncf %257 : vector<8x32xf32> to vector<8x32xbf16>
    %c0_156 = arith.constant 0 : index
    %c0_157 = arith.constant 0 : index
    %259 = vector.load %arg26[%c0_156, %c0_157] : memref<1x32xf32, #tpu.memory_space<vmem>>, vector<1x32xf32>
    %260 = vector.shape_cast %259 : vector<1x32xf32> to vector<1x32xf32>
    %261 = vector.broadcast %260 : vector<1x32xf32> to vector<8x32xf32>
    %c0_158 = arith.constant 0 : index
    %c0_159 = arith.constant 0 : index
    %c0_160 = arith.constant 0 : index
    %262 = vector.load %arg19[%c0_158, %c0_159, %c0_160] : memref<4x32x8xbf16, #tpu.memory_space<vmem>>, vector<1x32x8xbf16>
    %263 = vector.shape_cast %262 : vector<1x32x8xbf16> to vector<32x8xbf16>
    %cst_161 = arith.constant dense<0.000000e+00> : vector<8x8xf32>
    %264 = tpu.matmul %258, %263, %cst_161 {dimension_numbers = #tpu.dot_dimension_numbers<[1], [0], [0], [1], [0, 0, 1, 1], [], []>} : vector<8x32xbf16>, vector<32x8xbf16>, vector<8x8xf32> -> vector<8x8xf32>
    %c0_162 = arith.constant 0 : index
    %c0_163 = arith.constant 0 : index
    %c0_164 = arith.constant 0 : index
    %265 = vector.load %arg20[%c0_162, %c0_163, %c0_164] : memref<4x1x8xf32, #tpu.memory_space<vmem>>, vector<1x1x8xf32>
    %266 = vector.shape_cast %265 : vector<1x1x8xf32> to vector<1x8xf32>
    %267 = vector.broadcast %266 : vector<1x8xf32> to vector<8x8xf32>
    %268 = arith.addf %264, %267 : vector<8x8xf32>
    %cst_165 = arith.constant 0.353553385 : f32
    %269 = vector.broadcast %cst_165 : f32 to vector<8x8xf32>
    %270 = arith.mulf %268, %269 : vector<8x8xf32>
    %c0_166 = arith.constant 0 : index
    %c0_167 = arith.constant 0 : index
    %c0_168 = arith.constant 0 : index
    %271 = vector.load %arg21[%c0_166, %c0_167, %c0_168] : memref<4x32x8xbf16, #tpu.memory_space<vmem>>, vector<1x32x8xbf16>
    %272 = vector.shape_cast %271 : vector<1x32x8xbf16> to vector<32x8xbf16>
    %cst_169 = arith.constant dense<0.000000e+00> : vector<8x8xf32>
    %273 = tpu.matmul %258, %272, %cst_169 {dimension_numbers = #tpu.dot_dimension_numbers<[1], [0], [0], [1], [0, 0, 1, 1], [], []>} : vector<8x32xbf16>, vector<32x8xbf16>, vector<8x8xf32> -> vector<8x8xf32>
    %c0_170 = arith.constant 0 : index
    %c0_171 = arith.constant 0 : index
    %c0_172 = arith.constant 0 : index
    %274 = vector.load %arg22[%c0_170, %c0_171, %c0_172] : memref<4x1x8xf32, #tpu.memory_space<vmem>>, vector<1x1x8xf32>
    %275 = vector.shape_cast %274 : vector<1x1x8xf32> to vector<1x8xf32>
    %276 = vector.broadcast %275 : vector<1x8xf32> to vector<8x8xf32>
    %277 = arith.addf %273, %276 : vector<8x8xf32>
    %c0_173 = arith.constant 0 : index
    %c0_174 = arith.constant 0 : index
    %c0_175 = arith.constant 0 : index
    %278 = vector.load %arg23[%c0_173, %c0_174, %c0_175] : memref<4x32x8xbf16, #tpu.memory_space<vmem>>, vector<1x32x8xbf16>
    %279 = vector.shape_cast %278 : vector<1x32x8xbf16> to vector<32x8xbf16>
    %cst_176 = arith.constant dense<0.000000e+00> : vector<8x8xf32>
    %280 = tpu.matmul %258, %279, %cst_176 {dimension_numbers = #tpu.dot_dimension_numbers<[1], [0], [0], [1], [0, 0, 1, 1], [], []>} : vector<8x32xbf16>, vector<32x8xbf16>, vector<8x8xf32> -> vector<8x8xf32>
    %c0_177 = arith.constant 0 : index
    %c0_178 = arith.constant 0 : index
    %c0_179 = arith.constant 0 : index
    %281 = vector.load %arg24[%c0_177, %c0_178, %c0_179] : memref<4x1x8xf32, #tpu.memory_space<vmem>>, vector<1x1x8xf32>
    %282 = vector.shape_cast %281 : vector<1x1x8xf32> to vector<1x8xf32>
    %283 = vector.broadcast %282 : vector<1x8xf32> to vector<8x8xf32>
    %284 = arith.addf %280, %283 : vector<8x8xf32>
    %285 = arith.truncf %270 : vector<8x8xf32> to vector<8x8xbf16>
    %286 = arith.truncf %277 : vector<8x8xf32> to vector<8x8xbf16>
    "tpu.trace_start"() <{level = 10 : i32, message = "sd,td->st"}> : () -> ()
    %cst_180 = arith.constant dense<0.000000e+00> : vector<8x8xf32>
    %287 = tpu.matmul %285, %286, %cst_180 {dimension_numbers = #tpu.dot_dimension_numbers<[1], [1], [0], [0], [0, 0, 1, 0], [], []>} : vector<8x8xbf16>, vector<8x8xbf16>, vector<8x8xf32> -> vector<8x8xf32>
    %cst_181 = arith.constant -1.000000e+30 : f32
    "tpu.trace_stop"() : () -> ()
    %288 = vector.broadcast %cst_181 : f32 to vector<8x8xf32>
    %289 = arith.select %9, %288, %287 : vector<8x8xi1>, vector<8x8xf32>
    %cst_182 = arith.constant dense<0xFF800000> : vector<8xf32>
    %290 = vector.multi_reduction <maximumf>, %289, %cst_182 [1] : vector<8x8xf32> to vector<8xf32>
    %291 = vector.shape_cast %290 : vector<8xf32> to vector<8x1xf32>
    %292 = vector.broadcast %291 : vector<8x1xf32> to vector<8x8xf32>
    %293 = arith.subf %289, %292 : vector<8x8xf32>
    %294 = math.exp %293 : vector<8x8xf32>
    %cst_183 = arith.constant dense<0.000000e+00> : vector<8xf32>
    %295 = vector.multi_reduction <add>, %294, %cst_183 [1] : vector<8x8xf32> to vector<8xf32>
    %296 = vector.shape_cast %295 : vector<8xf32> to vector<8x1xf32>
    %297 = tpu.reciprocal %296 {approx = true} : vector<8x1xf32> -> vector<8x1xf32>
    %298 = vector.broadcast %297 : vector<8x1xf32> to vector<8x8xf32>
    %299 = arith.mulf %294, %298 : vector<8x8xf32>
    %300 = arith.truncf %299 : vector<8x8xf32> to vector<8x8xbf16>
    %301 = arith.truncf %284 : vector<8x8xf32> to vector<8x8xbf16>
    %cst_184 = arith.constant dense<0.000000e+00> : vector<8x8xf32>
    %302 = tpu.matmul %300, %301, %cst_184 {dimension_numbers = #tpu.dot_dimension_numbers<[1], [0], [0], [1], [0, 0, 1, 1], [], []>} : vector<8x8xbf16>, vector<8x8xbf16>, vector<8x8xf32> -> vector<8x8xf32>
    %303 = arith.truncf %302 : vector<8x8xf32> to vector<8x8xbf16>
    %c0_185 = arith.constant 0 : index
    %c0_186 = arith.constant 0 : index
    %c0_187 = arith.constant 0 : index
    %304 = vector.load %arg25[%c0_185, %c0_186, %c0_187] : memref<4x8x32xbf16, #tpu.memory_space<vmem>>, vector<1x8x32xbf16>
    %305 = vector.shape_cast %304 : vector<1x8x32xbf16> to vector<8x32xbf16>
    %cst_188 = arith.constant dense<0.000000e+00> : vector<8x32xf32>
    %306 = tpu.matmul %303, %305, %cst_188 {dimension_numbers = #tpu.dot_dimension_numbers<[1], [0], [0], [1], [0, 0, 1, 1], [], []>} : vector<8x8xbf16>, vector<8x32xbf16>, vector<8x32xf32> -> vector<8x32xf32>
    %307 = arith.addf %261, %306 : vector<8x32xf32>
    %c1_189 = arith.constant 1 : index
    %c0_190 = arith.constant 0 : index
    %c0_191 = arith.constant 0 : index
    %308 = vector.load %arg19[%c1_189, %c0_190, %c0_191] : memref<4x32x8xbf16, #tpu.memory_space<vmem>>, vector<1x32x8xbf16>
    %309 = vector.shape_cast %308 : vector<1x32x8xbf16> to vector<32x8xbf16>
    %cst_192 = arith.constant dense<0.000000e+00> : vector<8x8xf32>
    %310 = tpu.matmul %258, %309, %cst_192 {dimension_numbers = #tpu.dot_dimension_numbers<[1], [0], [0], [1], [0, 0, 1, 1], [], []>} : vector<8x32xbf16>, vector<32x8xbf16>, vector<8x8xf32> -> vector<8x8xf32>
    %c1_193 = arith.constant 1 : index
    %c0_194 = arith.constant 0 : index
    %c0_195 = arith.constant 0 : index
    %311 = vector.load %arg20[%c1_193, %c0_194, %c0_195] : memref<4x1x8xf32, #tpu.memory_space<vmem>>, vector<1x1x8xf32>
    %312 = vector.shape_cast %311 : vector<1x1x8xf32> to vector<1x8xf32>
    %313 = vector.broadcast %312 : vector<1x8xf32> to vector<8x8xf32>
    %314 = arith.addf %310, %313 : vector<8x8xf32>
    %cst_196 = arith.constant 0.353553385 : f32
    %315 = vector.broadcast %cst_196 : f32 to vector<8x8xf32>
    %316 = arith.mulf %314, %315 : vector<8x8xf32>
    %c1_197 = arith.constant 1 : index
    %c0_198 = arith.constant 0 : index
    %c0_199 = arith.constant 0 : index
    %317 = vector.load %arg21[%c1_197, %c0_198, %c0_199] : memref<4x32x8xbf16, #tpu.memory_space<vmem>>, vector<1x32x8xbf16>
    %318 = vector.shape_cast %317 : vector<1x32x8xbf16> to vector<32x8xbf16>
    %cst_200 = arith.constant dense<0.000000e+00> : vector<8x8xf32>
    %319 = tpu.matmul %258, %318, %cst_200 {dimension_numbers = #tpu.dot_dimension_numbers<[1], [0], [0], [1], [0, 0, 1, 1], [], []>} : vector<8x32xbf16>, vector<32x8xbf16>, vector<8x8xf32> -> vector<8x8xf32>
    %c1_201 = arith.constant 1 : index
    %c0_202 = arith.constant 0 : index
    %c0_203 = arith.constant 0 : index
    %320 = vector.load %arg22[%c1_201, %c0_202, %c0_203] : memref<4x1x8xf32, #tpu.memory_space<vmem>>, vector<1x1x8xf32>
    %321 = vector.shape_cast %320 : vector<1x1x8xf32> to vector<1x8xf32>
    %322 = vector.broadcast %321 : vector<1x8xf32> to vector<8x8xf32>
    %323 = arith.addf %319, %322 : vector<8x8xf32>
    %c1_204 = arith.constant 1 : index
    %c0_205 = arith.constant 0 : index
    %c0_206 = arith.constant 0 : index
    %324 = vector.load %arg23[%c1_204, %c0_205, %c0_206] : memref<4x32x8xbf16, #tpu.memory_space<vmem>>, vector<1x32x8xbf16>
    %325 = vector.shape_cast %324 : vector<1x32x8xbf16> to vector<32x8xbf16>
    %cst_207 = arith.constant dense<0.000000e+00> : vector<8x8xf32>
    %326 = tpu.matmul %258, %325, %cst_207 {dimension_numbers = #tpu.dot_dimension_numbers<[1], [0], [0], [1], [0, 0, 1, 1], [], []>} : vector<8x32xbf16>, vector<32x8xbf16>, vector<8x8xf32> -> vector<8x8xf32>
    %c1_208 = arith.constant 1 : index
    %c0_209 = arith.constant 0 : index
    %c0_210 = arith.constant 0 : index
    %327 = vector.load %arg24[%c1_208, %c0_209, %c0_210] : memref<4x1x8xf32, #tpu.memory_space<vmem>>, vector<1x1x8xf32>
    %328 = vector.shape_cast %327 : vector<1x1x8xf32> to vector<1x8xf32>
    %329 = vector.broadcast %328 : vector<1x8xf32> to vector<8x8xf32>
    %330 = arith.addf %326, %329 : vector<8x8xf32>
    %331 = arith.truncf %316 : vector<8x8xf32> to vector<8x8xbf16>
    %332 = arith.truncf %323 : vector<8x8xf32> to vector<8x8xbf16>
    "tpu.trace_start"() <{level = 10 : i32, message = "sd,td->st"}> : () -> ()
    %cst_211 = arith.constant dense<0.000000e+00> : vector<8x8xf32>
    %333 = tpu.matmul %331, %332, %cst_211 {dimension_numbers = #tpu.dot_dimension_numbers<[1], [1], [0], [0], [0, 0, 1, 0], [], []>} : vector<8x8xbf16>, vector<8x8xbf16>, vector<8x8xf32> -> vector<8x8xf32>
    %cst_212 = arith.constant -1.000000e+30 : f32
    "tpu.trace_stop"() : () -> ()
    %334 = vector.broadcast %cst_212 : f32 to vector<8x8xf32>
    %335 = arith.select %9, %334, %333 : vector<8x8xi1>, vector<8x8xf32>
    %cst_213 = arith.constant dense<0xFF800000> : vector<8xf32>
    %336 = vector.multi_reduction <maximumf>, %335, %cst_213 [1] : vector<8x8xf32> to vector<8xf32>
    %337 = vector.shape_cast %336 : vector<8xf32> to vector<8x1xf32>
    %338 = vector.broadcast %337 : vector<8x1xf32> to vector<8x8xf32>
    %339 = arith.subf %335, %338 : vector<8x8xf32>
    %340 = math.exp %339 : vector<8x8xf32>
    %cst_214 = arith.constant dense<0.000000e+00> : vector<8xf32>
    %341 = vector.multi_reduction <add>, %340, %cst_214 [1] : vector<8x8xf32> to vector<8xf32>
    %342 = vector.shape_cast %341 : vector<8xf32> to vector<8x1xf32>
    %343 = tpu.reciprocal %342 {approx = true} : vector<8x1xf32> -> vector<8x1xf32>
    %344 = vector.broadcast %343 : vector<8x1xf32> to vector<8x8xf32>
    %345 = arith.mulf %340, %344 : vector<8x8xf32>
    %346 = arith.truncf %345 : vector<8x8xf32> to vector<8x8xbf16>
    %347 = arith.truncf %330 : vector<8x8xf32> to vector<8x8xbf16>
    %cst_215 = arith.constant dense<0.000000e+00> : vector<8x8xf32>
    %348 = tpu.matmul %346, %347, %cst_215 {dimension_numbers = #tpu.dot_dimension_numbers<[1], [0], [0], [1], [0, 0, 1, 1], [], []>} : vector<8x8xbf16>, vector<8x8xbf16>, vector<8x8xf32> -> vector<8x8xf32>
    %349 = arith.truncf %348 : vector<8x8xf32> to vector<8x8xbf16>
    %c1_216 = arith.constant 1 : index
    %c0_217 = arith.constant 0 : index
    %c0_218 = arith.constant 0 : index
    %350 = vector.load %arg25[%c1_216, %c0_217, %c0_218] : memref<4x8x32xbf16, #tpu.memory_space<vmem>>, vector<1x8x32xbf16>
    %351 = vector.shape_cast %350 : vector<1x8x32xbf16> to vector<8x32xbf16>
    %cst_219 = arith.constant dense<0.000000e+00> : vector<8x32xf32>
    %352 = tpu.matmul %349, %351, %cst_219 {dimension_numbers = #tpu.dot_dimension_numbers<[1], [0], [0], [1], [0, 0, 1, 1], [], []>} : vector<8x8xbf16>, vector<8x32xbf16>, vector<8x32xf32> -> vector<8x32xf32>
    %353 = arith.addf %307, %352 : vector<8x32xf32>
    %c2_220 = arith.constant 2 : index
    %c0_221 = arith.constant 0 : index
    %c0_222 = arith.constant 0 : index
    %354 = vector.load %arg19[%c2_220, %c0_221, %c0_222] : memref<4x32x8xbf16, #tpu.memory_space<vmem>>, vector<1x32x8xbf16>
    %355 = vector.shape_cast %354 : vector<1x32x8xbf16> to vector<32x8xbf16>
    %cst_223 = arith.constant dense<0.000000e+00> : vector<8x8xf32>
    %356 = tpu.matmul %258, %355, %cst_223 {dimension_numbers = #tpu.dot_dimension_numbers<[1], [0], [0], [1], [0, 0, 1, 1], [], []>} : vector<8x32xbf16>, vector<32x8xbf16>, vector<8x8xf32> -> vector<8x8xf32>
    %c2_224 = arith.constant 2 : index
    %c0_225 = arith.constant 0 : index
    %c0_226 = arith.constant 0 : index
    %357 = vector.load %arg20[%c2_224, %c0_225, %c0_226] : memref<4x1x8xf32, #tpu.memory_space<vmem>>, vector<1x1x8xf32>
    %358 = vector.shape_cast %357 : vector<1x1x8xf32> to vector<1x8xf32>
    %359 = vector.broadcast %358 : vector<1x8xf32> to vector<8x8xf32>
    %360 = arith.addf %356, %359 : vector<8x8xf32>
    %cst_227 = arith.constant 0.353553385 : f32
    %361 = vector.broadcast %cst_227 : f32 to vector<8x8xf32>
    %362 = arith.mulf %360, %361 : vector<8x8xf32>
    %c2_228 = arith.constant 2 : index
    %c0_229 = arith.constant 0 : index
    %c0_230 = arith.constant 0 : index
    %363 = vector.load %arg21[%c2_228, %c0_229, %c0_230] : memref<4x32x8xbf16, #tpu.memory_space<vmem>>, vector<1x32x8xbf16>
    %364 = vector.shape_cast %363 : vector<1x32x8xbf16> to vector<32x8xbf16>
    %cst_231 = arith.constant dense<0.000000e+00> : vector<8x8xf32>
    %365 = tpu.matmul %258, %364, %cst_231 {dimension_numbers = #tpu.dot_dimension_numbers<[1], [0], [0], [1], [0, 0, 1, 1], [], []>} : vector<8x32xbf16>, vector<32x8xbf16>, vector<8x8xf32> -> vector<8x8xf32>
    %c2_232 = arith.constant 2 : index
    %c0_233 = arith.constant 0 : index
    %c0_234 = arith.constant 0 : index
    %366 = vector.load %arg22[%c2_232, %c0_233, %c0_234] : memref<4x1x8xf32, #tpu.memory_space<vmem>>, vector<1x1x8xf32>
    %367 = vector.shape_cast %366 : vector<1x1x8xf32> to vector<1x8xf32>
    %368 = vector.broadcast %367 : vector<1x8xf32> to vector<8x8xf32>
    %369 = arith.addf %365, %368 : vector<8x8xf32>
    %c2_235 = arith.constant 2 : index
    %c0_236 = arith.constant 0 : index
    %c0_237 = arith.constant 0 : index
    %370 = vector.load %arg23[%c2_235, %c0_236, %c0_237] : memref<4x32x8xbf16, #tpu.memory_space<vmem>>, vector<1x32x8xbf16>
    %371 = vector.shape_cast %370 : vector<1x32x8xbf16> to vector<32x8xbf16>
    %cst_238 = arith.constant dense<0.000000e+00> : vector<8x8xf32>
    %372 = tpu.matmul %258, %371, %cst_238 {dimension_numbers = #tpu.dot_dimension_numbers<[1], [0], [0], [1], [0, 0, 1, 1], [], []>} : vector<8x32xbf16>, vector<32x8xbf16>, vector<8x8xf32> -> vector<8x8xf32>
    %c2_239 = arith.constant 2 : index
    %c0_240 = arith.constant 0 : index
    %c0_241 = arith.constant 0 : index
    %373 = vector.load %arg24[%c2_239, %c0_240, %c0_241] : memref<4x1x8xf32, #tpu.memory_space<vmem>>, vector<1x1x8xf32>
    %374 = vector.shape_cast %373 : vector<1x1x8xf32> to vector<1x8xf32>
    %375 = vector.broadcast %374 : vector<1x8xf32> to vector<8x8xf32>
    %376 = arith.addf %372, %375 : vector<8x8xf32>
    %377 = arith.truncf %362 : vector<8x8xf32> to vector<8x8xbf16>
    %378 = arith.truncf %369 : vector<8x8xf32> to vector<8x8xbf16>
    "tpu.trace_start"() <{level = 10 : i32, message = "sd,td->st"}> : () -> ()
    %cst_242 = arith.constant dense<0.000000e+00> : vector<8x8xf32>
    %379 = tpu.matmul %377, %378, %cst_242 {dimension_numbers = #tpu.dot_dimension_numbers<[1], [1], [0], [0], [0, 0, 1, 0], [], []>} : vector<8x8xbf16>, vector<8x8xbf16>, vector<8x8xf32> -> vector<8x8xf32>
    %cst_243 = arith.constant -1.000000e+30 : f32
    "tpu.trace_stop"() : () -> ()
    %380 = vector.broadcast %cst_243 : f32 to vector<8x8xf32>
    %381 = arith.select %9, %380, %379 : vector<8x8xi1>, vector<8x8xf32>
    %cst_244 = arith.constant dense<0xFF800000> : vector<8xf32>
    %382 = vector.multi_reduction <maximumf>, %381, %cst_244 [1] : vector<8x8xf32> to vector<8xf32>
    %383 = vector.shape_cast %382 : vector<8xf32> to vector<8x1xf32>
    %384 = vector.broadcast %383 : vector<8x1xf32> to vector<8x8xf32>
    %385 = arith.subf %381, %384 : vector<8x8xf32>
    %386 = math.exp %385 : vector<8x8xf32>
    %cst_245 = arith.constant dense<0.000000e+00> : vector<8xf32>
    %387 = vector.multi_reduction <add>, %386, %cst_245 [1] : vector<8x8xf32> to vector<8xf32>
    %388 = vector.shape_cast %387 : vector<8xf32> to vector<8x1xf32>
    %389 = tpu.reciprocal %388 {approx = true} : vector<8x1xf32> -> vector<8x1xf32>
    %390 = vector.broadcast %389 : vector<8x1xf32> to vector<8x8xf32>
    %391 = arith.mulf %386, %390 : vector<8x8xf32>
    %392 = arith.truncf %391 : vector<8x8xf32> to vector<8x8xbf16>
    %393 = arith.truncf %376 : vector<8x8xf32> to vector<8x8xbf16>
    %cst_246 = arith.constant dense<0.000000e+00> : vector<8x8xf32>
    %394 = tpu.matmul %392, %393, %cst_246 {dimension_numbers = #tpu.dot_dimension_numbers<[1], [0], [0], [1], [0, 0, 1, 1], [], []>} : vector<8x8xbf16>, vector<8x8xbf16>, vector<8x8xf32> -> vector<8x8xf32>
    %395 = arith.truncf %394 : vector<8x8xf32> to vector<8x8xbf16>
    %c2_247 = arith.constant 2 : index
    %c0_248 = arith.constant 0 : index
    %c0_249 = arith.constant 0 : index
    %396 = vector.load %arg25[%c2_247, %c0_248, %c0_249] : memref<4x8x32xbf16, #tpu.memory_space<vmem>>, vector<1x8x32xbf16>
    %397 = vector.shape_cast %396 : vector<1x8x32xbf16> to vector<8x32xbf16>
    %cst_250 = arith.constant dense<0.000000e+00> : vector<8x32xf32>
    %398 = tpu.matmul %395, %397, %cst_250 {dimension_numbers = #tpu.dot_dimension_numbers<[1], [0], [0], [1], [0, 0, 1, 1], [], []>} : vector<8x8xbf16>, vector<8x32xbf16>, vector<8x32xf32> -> vector<8x32xf32>
    %399 = arith.addf %353, %398 : vector<8x32xf32>
    %c3_251 = arith.constant 3 : index
    %c0_252 = arith.constant 0 : index
    %c0_253 = arith.constant 0 : index
    %400 = vector.load %arg19[%c3_251, %c0_252, %c0_253] : memref<4x32x8xbf16, #tpu.memory_space<vmem>>, vector<1x32x8xbf16>
    %401 = vector.shape_cast %400 : vector<1x32x8xbf16> to vector<32x8xbf16>
    %cst_254 = arith.constant dense<0.000000e+00> : vector<8x8xf32>
    %402 = tpu.matmul %258, %401, %cst_254 {dimension_numbers = #tpu.dot_dimension_numbers<[1], [0], [0], [1], [0, 0, 1, 1], [], []>} : vector<8x32xbf16>, vector<32x8xbf16>, vector<8x8xf32> -> vector<8x8xf32>
    %c3_255 = arith.constant 3 : index
    %c0_256 = arith.constant 0 : index
    %c0_257 = arith.constant 0 : index
    %403 = vector.load %arg20[%c3_255, %c0_256, %c0_257] : memref<4x1x8xf32, #tpu.memory_space<vmem>>, vector<1x1x8xf32>
    %404 = vector.shape_cast %403 : vector<1x1x8xf32> to vector<1x8xf32>
    %405 = vector.broadcast %404 : vector<1x8xf32> to vector<8x8xf32>
    %406 = arith.addf %402, %405 : vector<8x8xf32>
    %cst_258 = arith.constant 0.353553385 : f32
    %407 = vector.broadcast %cst_258 : f32 to vector<8x8xf32>
    %408 = arith.mulf %406, %407 : vector<8x8xf32>
    %c3_259 = arith.constant 3 : index
    %c0_260 = arith.constant 0 : index
    %c0_261 = arith.constant 0 : index
    %409 = vector.load %arg21[%c3_259, %c0_260, %c0_261] : memref<4x32x8xbf16, #tpu.memory_space<vmem>>, vector<1x32x8xbf16>
    %410 = vector.shape_cast %409 : vector<1x32x8xbf16> to vector<32x8xbf16>
    %cst_262 = arith.constant dense<0.000000e+00> : vector<8x8xf32>
    %411 = tpu.matmul %258, %410, %cst_262 {dimension_numbers = #tpu.dot_dimension_numbers<[1], [0], [0], [1], [0, 0, 1, 1], [], []>} : vector<8x32xbf16>, vector<32x8xbf16>, vector<8x8xf32> -> vector<8x8xf32>
    %c3_263 = arith.constant 3 : index
    %c0_264 = arith.constant 0 : index
    %c0_265 = arith.constant 0 : index
    %412 = vector.load %arg22[%c3_263, %c0_264, %c0_265] : memref<4x1x8xf32, #tpu.memory_space<vmem>>, vector<1x1x8xf32>
    %413 = vector.shape_cast %412 : vector<1x1x8xf32> to vector<1x8xf32>
    %414 = vector.broadcast %413 : vector<1x8xf32> to vector<8x8xf32>
    %415 = arith.addf %411, %414 : vector<8x8xf32>
    %c3_266 = arith.constant 3 : index
    %c0_267 = arith.constant 0 : index
    %c0_268 = arith.constant 0 : index
    %416 = vector.load %arg23[%c3_266, %c0_267, %c0_268] : memref<4x32x8xbf16, #tpu.memory_space<vmem>>, vector<1x32x8xbf16>
    %417 = vector.shape_cast %416 : vector<1x32x8xbf16> to vector<32x8xbf16>
    %cst_269 = arith.constant dense<0.000000e+00> : vector<8x8xf32>
    %418 = tpu.matmul %258, %417, %cst_269 {dimension_numbers = #tpu.dot_dimension_numbers<[1], [0], [0], [1], [0, 0, 1, 1], [], []>} : vector<8x32xbf16>, vector<32x8xbf16>, vector<8x8xf32> -> vector<8x8xf32>
    %c3_270 = arith.constant 3 : index
    %c0_271 = arith.constant 0 : index
    %c0_272 = arith.constant 0 : index
    %419 = vector.load %arg24[%c3_270, %c0_271, %c0_272] : memref<4x1x8xf32, #tpu.memory_space<vmem>>, vector<1x1x8xf32>
    %420 = vector.shape_cast %419 : vector<1x1x8xf32> to vector<1x8xf32>
    %421 = vector.broadcast %420 : vector<1x8xf32> to vector<8x8xf32>
    %422 = arith.addf %418, %421 : vector<8x8xf32>
    %423 = arith.truncf %408 : vector<8x8xf32> to vector<8x8xbf16>
    %424 = arith.truncf %415 : vector<8x8xf32> to vector<8x8xbf16>
    "tpu.trace_start"() <{level = 10 : i32, message = "sd,td->st"}> : () -> ()
    %cst_273 = arith.constant dense<0.000000e+00> : vector<8x8xf32>
    %425 = tpu.matmul %423, %424, %cst_273 {dimension_numbers = #tpu.dot_dimension_numbers<[1], [1], [0], [0], [0, 0, 1, 0], [], []>} : vector<8x8xbf16>, vector<8x8xbf16>, vector<8x8xf32> -> vector<8x8xf32>
    %cst_274 = arith.constant -1.000000e+30 : f32
    "tpu.trace_stop"() : () -> ()
    %426 = vector.broadcast %cst_274 : f32 to vector<8x8xf32>
    %427 = arith.select %9, %426, %425 : vector<8x8xi1>, vector<8x8xf32>
    %cst_275 = arith.constant dense<0xFF800000> : vector<8xf32>
    %428 = vector.multi_reduction <maximumf>, %427, %cst_275 [1] : vector<8x8xf32> to vector<8xf32>
    %429 = vector.shape_cast %428 : vector<8xf32> to vector<8x1xf32>
    %430 = vector.broadcast %429 : vector<8x1xf32> to vector<8x8xf32>
    %431 = arith.subf %427, %430 : vector<8x8xf32>
    %432 = math.exp %431 : vector<8x8xf32>
    %cst_276 = arith.constant dense<0.000000e+00> : vector<8xf32>
    %433 = vector.multi_reduction <add>, %432, %cst_276 [1] : vector<8x8xf32> to vector<8xf32>
    %434 = vector.shape_cast %433 : vector<8xf32> to vector<8x1xf32>
    %435 = tpu.reciprocal %434 {approx = true} : vector<8x1xf32> -> vector<8x1xf32>
    %436 = vector.broadcast %435 : vector<8x1xf32> to vector<8x8xf32>
    %437 = arith.mulf %432, %436 : vector<8x8xf32>
    %438 = arith.truncf %437 : vector<8x8xf32> to vector<8x8xbf16>
    %439 = arith.truncf %422 : vector<8x8xf32> to vector<8x8xbf16>
    %cst_277 = arith.constant dense<0.000000e+00> : vector<8x8xf32>
    %440 = tpu.matmul %438, %439, %cst_277 {dimension_numbers = #tpu.dot_dimension_numbers<[1], [0], [0], [1], [0, 0, 1, 1], [], []>} : vector<8x8xbf16>, vector<8x8xbf16>, vector<8x8xf32> -> vector<8x8xf32>
    %441 = arith.truncf %440 : vector<8x8xf32> to vector<8x8xbf16>
    %c3_278 = arith.constant 3 : index
    %c0_279 = arith.constant 0 : index
    %c0_280 = arith.constant 0 : index
    %442 = vector.load %arg25[%c3_278, %c0_279, %c0_280] : memref<4x8x32xbf16, #tpu.memory_space<vmem>>, vector<1x8x32xbf16>
    %443 = vector.shape_cast %442 : vector<1x8x32xbf16> to vector<8x32xbf16>
    %cst_281 = arith.constant dense<0.000000e+00> : vector<8x32xf32>
    %444 = tpu.matmul %441, %443, %cst_281 {dimension_numbers = #tpu.dot_dimension_numbers<[1], [0], [0], [1], [0, 0, 1, 1], [], []>} : vector<8x8xbf16>, vector<8x32xbf16>, vector<8x32xf32> -> vector<8x32xf32>
    %445 = arith.addf %399, %444 : vector<8x32xf32>
    %446 = arith.addf %257, %445 : vector<8x32xf32>
    %c0_282 = arith.constant 0 : index
    %c0_283 = arith.constant 0 : index
    %447 = vector.load %arg27[%c0_282, %c0_283] : memref<1x32xf32, #tpu.memory_space<vmem>>, vector<1x32xf32>
    %c0_284 = arith.constant 0 : index
    %c0_285 = arith.constant 0 : index
    %448 = vector.load %arg28[%c0_284, %c0_285] : memref<1x32xf32, #tpu.memory_space<vmem>>, vector<1x32xf32>
    %cst_286 = arith.constant dense<0.000000e+00> : vector<8xf32>
    %449 = vector.multi_reduction <add>, %446, %cst_286 [1] : vector<8x32xf32> to vector<8xf32>
    %450 = vector.shape_cast %449 : vector<8xf32> to vector<8x1xf32>
    %cst_287 = arith.constant 3.200000e+01 : f32
    %451 = vector.broadcast %cst_287 : f32 to vector<8x1xf32>
    %452 = arith.divf %450, %451 : vector<8x1xf32>
    %453 = vector.broadcast %452 : vector<8x1xf32> to vector<8x32xf32>
    %454 = arith.subf %446, %453 : vector<8x32xf32>
    %455 = arith.mulf %454, %454 : vector<8x32xf32>
    %cst_288 = arith.constant dense<0.000000e+00> : vector<8xf32>
    %456 = vector.multi_reduction <add>, %455, %cst_288 [1] : vector<8x32xf32> to vector<8xf32>
    %457 = vector.shape_cast %456 : vector<8xf32> to vector<8x1xf32>
    %cst_289 = arith.constant 3.200000e+01 : f32
    %458 = vector.broadcast %cst_289 : f32 to vector<8x1xf32>
    %459 = arith.divf %457, %458 : vector<8x1xf32>
    %cst_290 = arith.constant 9.99999974E-6 : f32
    %460 = vector.broadcast %cst_290 : f32 to vector<8x1xf32>
    %461 = arith.addf %459, %460 : vector<8x1xf32>
    %462 = math.rsqrt %461 : vector<8x1xf32>
    %463 = vector.broadcast %462 : vector<8x1xf32> to vector<8x32xf32>
    %464 = arith.mulf %454, %463 : vector<8x32xf32>
    %465 = vector.broadcast %447 : vector<1x32xf32> to vector<8x32xf32>
    %466 = arith.mulf %464, %465 : vector<8x32xf32>
    %467 = vector.broadcast %448 : vector<1x32xf32> to vector<8x32xf32>
    %468 = arith.addf %466, %467 : vector<8x32xf32>
    %469 = arith.truncf %468 : vector<8x32xf32> to vector<8x32xbf16>
    %c0_291 = arith.constant 0 : index
    %c0_292 = arith.constant 0 : index
    %470 = vector.load %arg29[%c0_291, %c0_292] : memref<32x64xbf16, #tpu.memory_space<vmem>>, vector<32x64xbf16>
    %cst_293 = arith.constant dense<0.000000e+00> : vector<8x64xf32>
    %471 = tpu.matmul %469, %470, %cst_293 {dimension_numbers = #tpu.dot_dimension_numbers<[1], [0], [0], [1], [0, 0, 1, 1], [], []>} : vector<8x32xbf16>, vector<32x64xbf16>, vector<8x64xf32> -> vector<8x64xf32>
    %c0_294 = arith.constant 0 : index
    %c0_295 = arith.constant 0 : index
    %472 = vector.load %arg30[%c0_294, %c0_295] : memref<1x64xf32, #tpu.memory_space<vmem>>, vector<1x64xf32>
    %473 = vector.broadcast %472 : vector<1x64xf32> to vector<8x64xf32>
    %474 = arith.addf %471, %473 : vector<8x64xf32>
    %cst_296 = arith.constant 0.000000e+00 : f32
    %475 = vector.broadcast %cst_296 : f32 to vector<8x64xf32>
    %476 = arith.maximumf %474, %475 : vector<8x64xf32>
    %477 = arith.truncf %476 : vector<8x64xf32> to vector<8x64xbf16>
    %c0_297 = arith.constant 0 : index
    %c0_298 = arith.constant 0 : index
    %478 = vector.load %arg31[%c0_297, %c0_298] : memref<64x32xbf16, #tpu.memory_space<vmem>>, vector<64x32xbf16>
    %cst_299 = arith.constant dense<0.000000e+00> : vector<8x32xf32>
    %479 = tpu.matmul %477, %478, %cst_299 {dimension_numbers = #tpu.dot_dimension_numbers<[1], [0], [0], [1], [0, 0, 1, 1], [], []>} : vector<8x64xbf16>, vector<64x32xbf16>, vector<8x32xf32> -> vector<8x32xf32>
    %c0_300 = arith.constant 0 : index
    %c0_301 = arith.constant 0 : index
    %480 = vector.load %arg32[%c0_300, %c0_301] : memref<1x32xf32, #tpu.memory_space<vmem>>, vector<1x32xf32>
    %481 = vector.broadcast %480 : vector<1x32xf32> to vector<8x32xf32>
    %482 = arith.addf %479, %481 : vector<8x32xf32>
    %483 = arith.addf %468, %482 : vector<8x32xf32>
    %c0_302 = arith.constant 0 : index
    %c0_303 = arith.constant 0 : index
    %484 = vector.load %arg33[%c0_302, %c0_303] : memref<1x32xf32, #tpu.memory_space<vmem>>, vector<1x32xf32>
    %c0_304 = arith.constant 0 : index
    %c0_305 = arith.constant 0 : index
    %485 = vector.load %arg34[%c0_304, %c0_305] : memref<1x32xf32, #tpu.memory_space<vmem>>, vector<1x32xf32>
    %cst_306 = arith.constant dense<0.000000e+00> : vector<8xf32>
    %486 = vector.multi_reduction <add>, %483, %cst_306 [1] : vector<8x32xf32> to vector<8xf32>
    %487 = vector.shape_cast %486 : vector<8xf32> to vector<8x1xf32>
    %cst_307 = arith.constant 3.200000e+01 : f32
    %488 = vector.broadcast %cst_307 : f32 to vector<8x1xf32>
    %489 = arith.divf %487, %488 : vector<8x1xf32>
    %490 = vector.broadcast %489 : vector<8x1xf32> to vector<8x32xf32>
    %491 = arith.subf %483, %490 : vector<8x32xf32>
    %492 = arith.mulf %491, %491 : vector<8x32xf32>
    %cst_308 = arith.constant dense<0.000000e+00> : vector<8xf32>
    %493 = vector.multi_reduction <add>, %492, %cst_308 [1] : vector<8x32xf32> to vector<8xf32>
    %494 = vector.shape_cast %493 : vector<8xf32> to vector<8x1xf32>
    %cst_309 = arith.constant 3.200000e+01 : f32
    %495 = vector.broadcast %cst_309 : f32 to vector<8x1xf32>
    %496 = arith.divf %494, %495 : vector<8x1xf32>
    %cst_310 = arith.constant 9.99999974E-6 : f32
    %497 = vector.broadcast %cst_310 : f32 to vector<8x1xf32>
    %498 = arith.addf %496, %497 : vector<8x1xf32>
    %499 = math.rsqrt %498 : vector<8x1xf32>
    %500 = vector.broadcast %499 : vector<8x1xf32> to vector<8x32xf32>
    %501 = arith.mulf %491, %500 : vector<8x32xf32>
    %502 = vector.broadcast %484 : vector<1x32xf32> to vector<8x32xf32>
    %503 = arith.mulf %501, %502 : vector<8x32xf32>
    %504 = vector.broadcast %485 : vector<1x32xf32> to vector<8x32xf32>
    %505 = arith.addf %503, %504 : vector<8x32xf32>
    %506 = arith.truncf %505 : vector<8x32xf32> to vector<8x32xbf16>
    %c0_311 = arith.constant 0 : index
    %c0_312 = arith.constant 0 : index
    %507 = vector.load %arg35[%c0_311, %c0_312] : memref<32x64xbf16, #tpu.memory_space<vmem>>, vector<32x64xbf16>
    %cst_313 = arith.constant dense<0.000000e+00> : vector<8x64xf32>
    %508 = tpu.matmul %506, %507, %cst_313 {dimension_numbers = #tpu.dot_dimension_numbers<[1], [0], [0], [1], [0, 0, 1, 1], [], []>} : vector<8x32xbf16>, vector<32x64xbf16>, vector<8x64xf32> -> vector<8x64xf32>
    %c0_314 = arith.constant 0 : index
    %c0_315 = arith.constant 0 : index
    %509 = vector.load %arg36[%c0_314, %c0_315] : memref<1x64xf32, #tpu.memory_space<vmem>>, vector<1x64xf32>
    %510 = vector.broadcast %509 : vector<1x64xf32> to vector<8x64xf32>
    %511 = arith.addf %508, %510 : vector<8x64xf32>
    %c0_316 = arith.constant 0 : index
    %c0_317 = arith.constant 0 : index
    %c0_318 = arith.constant 0 : index
    %512 = vector.load %arg37[%c0_316, %c0_317, %c0_318] : memref<1x8x64xf32, #tpu.memory_space<vmem>>, vector<1x8x64xf32>
    %513 = vector.shape_cast %512 : vector<1x8x64xf32> to vector<8x64xf32>
    %514 = vector.shape_cast %511 : vector<8x64xf32> to vector<1x8x64xf32>
    tpu.vector_store %arg37[%c0_316, %c0_317, %c0_318], %514 {strides = array<i32>} : memref<1x8x64xf32, #tpu.memory_space<vmem>>, vector<1x8x64xf32>,
    return
  }
  func.func @transform_0(%arg0: i32) -> (i32, i32, i32) {
    %c0_i32 = arith.constant 0 : i32
    %c0_i32_0 = arith.constant 0 : i32
    %c0_i32_1 = arith.constant 0 : i32
    return %arg0, %c0_i32, %c0_i32_0 : i32, i32, i32
  }
  func.func @transform_1(%arg0: i32) -> (i32, i32) {
    %c0_i32 = arith.constant 0 : i32
    %c0_i32_0 = arith.constant 0 : i32
    %c0_i32_1 = arith.constant 0 : i32
    return %c0_i32, %c0_i32_0 : i32, i32
  }
  func.func @transform_2(%arg0: i32) -> (i32, i32, i32) {
    %c0_i32 = arith.constant 0 : i32
    %c0_i32_0 = arith.constant 0 : i32
    %c0_i32_1 = arith.constant 0 : i32
    %c0_i32_2 = arith.constant 0 : i32
    return %c0_i32, %c0_i32_0, %c0_i32_1 : i32, i32, i32
  }
  func.func @transform_3(%arg0: i32) -> (i32, i32, i32) {
    %c0_i32 = arith.constant 0 : i32
    %c0_i32_0 = arith.constant 0 : i32
    %c0_i32_1 = arith.constant 0 : i32
    %c0_i32_2 = arith.constant 0 : i32
    return %c0_i32, %c0_i32_0, %c0_i32_1 : i32, i32, i32
  }
  func.func @transform_4(%arg0: i32) -> (i32, i32, i32) {
    %c0_i32 = arith.constant 0 : i32
    %c0_i32_0 = arith.constant 0 : i32
    %c0_i32_1 = arith.constant 0 : i32
    %c0_i32_2 = arith.constant 0 : i32
    return %c0_i32, %c0_i32_0, %c0_i32_1 : i32, i32, i32
  }
  func.func @transform_5(%arg0: i32) -> (i32, i32, i32) {
    %c0_i32 = arith.constant 0 : i32
    %c0_i32_0 = arith.constant 0 : i32
    %c0_i32_1 = arith.constant 0 : i32
    %c0_i32_2 = arith.constant 0 : i32
    return %c0_i32, %c0_i32_0, %c0_i32_1 : i32, i32, i32
  }
  func.func @transform_6(%arg0: i32) -> (i32, i32, i32) {
    %c0_i32 = arith.constant 0 : i32
    %c0_i32_0 = arith.constant 0 : i32
    %c0_i32_1 = arith.constant 0 : i32
    %c0_i32_2 = arith.constant 0 : i32
    return %c0_i32, %c0_i32_0, %c0_i32_1 : i32, i32, i32
  }
  func.func @transform_7(%arg0: i32) -> (i32, i32, i32) {
    %c0_i32 = arith.constant 0 : i32
    %c0_i32_0 = arith.constant 0 : i32
    %c0_i32_1 = arith.constant 0 : i32
    %c0_i32_2 = arith.constant 0 : i32
    return %c0_i32, %c0_i32_0, %c0_i32_1 : i32, i32, i32
  }
  func.func @transform_8(%arg0: i32) -> (i32, i32, i32) {
    %c0_i32 = arith.constant 0 : i32
    %c0_i32_0 = arith.constant 0 : i32
    %c0_i32_1 = arith.constant 0 : i32
    %c0_i32_2 = arith.constant 0 : i32
    return %c0_i32, %c0_i32_0, %c0_i32_1 : i32, i32, i32
  }
  func.func @transform_9(%arg0: i32) -> (i32, i32) {
    %c0_i32 = arith.constant 0 : i32
    %c0_i32_0 = arith.constant 0 : i32
    %c0_i32_1 = arith.constant 0 : i32
    return %c0_i32, %c0_i32_0 : i32, i32
  }
  func.func @transform_10(%arg0: i32) -> (i32, i32) {
    %c0_i32 = arith.constant 0 : i32
    %c0_i32_0 = arith.constant 0 : i32
    %c0_i32_1 = arith.constant 0 : i32
    return %c0_i32, %c0_i32_0 : i32, i32
  }
  func.func @transform_11(%arg0: i32) -> (i32, i32) {
    %c0_i32 = arith.constant 0 : i32
    %c0_i32_0 = arith.constant 0 : i32
    %c0_i32_1 = arith.constant 0 : i32
    return %c0_i32, %c0_i32_0 : i32, i32
  }
  func.func @transform_12(%arg0: i32) -> (i32, i32) {
    %c0_i32 = arith.constant 0 : i32
    %c0_i32_0 = arith.constant 0 : i32
    %c0_i32_1 = arith.constant 0 : i32
    return %c0_i32, %c0_i32_0 : i32, i32
  }
  func.func @transform_13(%arg0: i32) -> (i32, i32) {
    %c0_i32 = arith.constant 0 : i32
    %c0_i32_0 = arith.constant 0 : i32
    %c0_i32_1 = arith.constant 0 : i32
    return %c0_i32, %c0_i32_0 : i32, i32
  }
  func.func @transform_14(%arg0: i32) -> (i32, i32) {
    %c0_i32 = arith.constant 0 : i32
    %c0_i32_0 = arith.constant 0 : i32
    %c0_i32_1 = arith.constant 0 : i32
    return %c0_i32, %c0_i32_0 : i32, i32
  }
  func.func @transform_15(%arg0: i32) -> (i32, i32) {
    %c0_i32 = arith.constant 0 : i32
    %c0_i32_0 = arith.constant 0 : i32
    %c0_i32_1 = arith.constant 0 : i32
    return %c0_i32, %c0_i32_0 : i32, i32
  }
  func.func @transform_16(%arg0: i32) -> (i32, i32) {
    %c0_i32 = arith.constant 0 : i32
    %c0_i32_0 = arith.constant 0 : i32
    %c0_i32_1 = arith.constant 0 : i32
    return %c0_i32, %c0_i32_0 : i32, i32
  }
  func.func @transform_17(%arg0: i32) -> (i32, i32) {
    %c0_i32 = arith.constant 0 : i32
    %c0_i32_0 = arith.constant 0 : i32
    %c0_i32_1 = arith.constant 0 : i32
    return %c0_i32, %c0_i32_0 : i32, i32
  }
  func.func @transform_18(%arg0: i32) -> (i32, i32, i32) {
    %c0_i32 = arith.constant 0 : i32
    %c0_i32_0 = arith.constant 0 : i32
    %c0_i32_1 = arith.constant 0 : i32
    %c0_i32_2 = arith.constant 0 : i32
    return %c0_i32, %c0_i32_0, %c0_i32_1 : i32, i32, i32
  }
  func.func @transform_19(%arg0: i32) -> (i32, i32, i32) {
    %c0_i32 = arith.constant 0 : i32
    %c0_i32_0 = arith.constant 0 : i32
    %c0_i32_1 = arith.constant 0 : i32
    %c0_i32_2 = arith.constant 0 : i32
    return %c0_i32, %c0_i32_0, %c0_i32_1 : i32, i32, i32
  }
  func.func @transform_20(%arg0: i32) -> (i32, i32, i32) {
    %c0_i32 = arith.constant 0 : i32
    %c0_i32_0 = arith.constant 0 : i32
    %c0_i32_1 = arith.constant 0 : i32
    %c0_i32_2 = arith.constant 0 : i32
    return %c0_i32, %c0_i32_0, %c0_i32_1 : i32, i32, i32
  }
  func.func @transform_21(%arg0: i32) -> (i32, i32, i32) {
    %c0_i32 = arith.constant 0 : i32
    %c0_i32_0 = arith.constant 0 : i32
    %c0_i32_1 = arith.constant 0 : i32
    %c0_i32_2 = arith.constant 0 : i32
    return %c0_i32, %c0_i32_0, %c0_i32_1 : i32, i32, i32
  }
  func.func @transform_22(%arg0: i32) -> (i32, i32, i32) {
    %c0_i32 = arith.constant 0 : i32
    %c0_i32_0 = arith.constant 0 : i32
    %c0_i32_1 = arith.constant 0 : i32
    %c0_i32_2 = arith.constant 0 : i32
    return %c0_i32, %c0_i32_0, %c0_i32_1 : i32, i32, i32
  }
  func.func @transform_23(%arg0: i32) -> (i32, i32, i32) {
    %c0_i32 = arith.constant 0 : i32
    %c0_i32_0 = arith.constant 0 : i32
    %c0_i32_1 = arith.constant 0 : i32
    %c0_i32_2 = arith.constant 0 : i32
    return %c0_i32, %c0_i32_0, %c0_i32_1 : i32, i32, i32
  }
  func.func @transform_24(%arg0: i32) -> (i32, i32, i32) {
    %c0_i32 = arith.constant 0 : i32
    %c0_i32_0 = arith.constant 0 : i32
    %c0_i32_1 = arith.constant 0 : i32
    %c0_i32_2 = arith.constant 0 : i32
    return %c0_i32, %c0_i32_0, %c0_i32_1 : i32, i32, i32
  }
  func.func @transform_25(%arg0: i32) -> (i32, i32) {
    %c0_i32 = arith.constant 0 : i32
    %c0_i32_0 = arith.constant 0 : i32
    %c0_i32_1 = arith.constant 0 : i32
    return %c0_i32, %c0_i32_0 : i32, i32
  }
  func.func @transform_26(%arg0: i32) -> (i32, i32) {
    %c0_i32 = arith.constant 0 : i32
    %c0_i32_0 = arith.constant 0 : i32
    %c0_i32_1 = arith.constant 0 : i32
    return %c0_i32, %c0_i32_0 : i32, i32
  }
  func.func @transform_27(%arg0: i32) -> (i32, i32) {
    %c0_i32 = arith.constant 0 : i32
    %c0_i32_0 = arith.constant 0 : i32
    %c0_i32_1 = arith.constant 0 : i32
    return %c0_i32, %c0_i32_0 : i32, i32
  }
  func.func @transform_28(%arg0: i32) -> (i32, i32) {
    %c0_i32 = arith.constant 0 : i32
    %c0_i32_0 = arith.constant 0 : i32
    %c0_i32_1 = arith.constant 0 : i32
    return %c0_i32, %c0_i32_0 : i32, i32
  }
  func.func @transform_29(%arg0: i32) -> (i32, i32) {
    %c0_i32 = arith.constant 0 : i32
    %c0_i32_0 = arith.constant 0 : i32
    %c0_i32_1 = arith.constant 0 : i32
    return %c0_i32, %c0_i32_0 : i32, i32
  }
  func.func @transform_30(%arg0: i32) -> (i32, i32) {
    %c0_i32 = arith.constant 0 : i32
    %c0_i32_0 = arith.constant 0 : i32
    %c0_i32_1 = arith.constant 0 : i32
    return %c0_i32, %c0_i32_0 : i32, i32
  }
  func.func @transform_31(%arg0: i32) -> (i32, i32) {
    %c0_i32 = arith.constant 0 : i32
    %c0_i32_0 = arith.constant 0 : i32
    %c0_i32_1 = arith.constant 0 : i32
    return %c0_i32, %c0_i32_0 : i32, i32
  }
  func.func @transform_32(%arg0: i32) -> (i32, i32) {
    %c0_i32 = arith.constant 0 : i32
    %c0_i32_0 = arith.constant 0 : i32
    %c0_i32_1 = arith.constant 0 : i32
    return %c0_i32, %c0_i32_0 : i32, i32
  }
  func.func @transform_33(%arg0: i32) -> (i32, i32) {
    %c0_i32 = arith.constant 0 : i32
    %c0_i32_0 = arith.constant 0 : i32
    %c0_i32_1 = arith.constant 0 : i32
    return %c0_i32, %c0_i32_0 : i32, i32
  }
  func.func @transform_34(%arg0: i32) -> (i32, i32) {
    %c0_i32 = arith.constant 0 : i32
    %c0_i32_0 = arith.constant 0 : i32
    %c0_i32_1 = arith.constant 0 : i32
    return %c0_i32, %c0_i32_0 : i32, i32
  }
  func.func @transform_35(%arg0: i32) -> (i32, i32) {
    %c0_i32 = arith.constant 0 : i32
    %c0_i32_0 = arith.constant 0 : i32
    %c0_i32_1 = arith.constant 0 : i32
    return %c0_i32, %c0_i32_0 : i32, i32
  }
  func.func @transform_36(%arg0: i32) -> (i32, i32, i32) {
    %c0_i32 = arith.constant 0 : i32
    %c0_i32_0 = arith.constant 0 : i32
    %c0_i32_1 = arith.constant 0 : i32
    return %arg0, %c0_i32, %c0_i32_0 : i32, i32, i32
  }
}

</mosaic_0001>

<bundles_post_ra>
// kernel: transformer_forward.1
= control target key start
LH: loop header
LB: loop body
LE: loop exit
PB: predicated region body
PF: predicated region fallthrough
CT: control target
= control target key end

     0   :  { %s5467_s6 = smov 1   ;;  %s5468_s10 = smov 2   ;;  %s6189_s0 = inlined_call_operand.smem [shape: u32[37], index: -1, kind: input, shape index: {}] }
   0x1   :  { %s5513_s5 = sld [smem:[%s6189_s0]]   ;;  %s5469_s14 = smov 3  }
   0x2   :  { %s5518_s9 = sld [smem:[%s6189_s0 + %s5467_s6]]   ;;  %s5470_s18 = smov 4  }
   0x3   :  { %s5523_s13 = sld [smem:[%s6189_s0 + %s5468_s10]]   ;;  %s5471_s22 = smov 5  }
   0x4   :  { %s5528_s17 = sld [smem:[%s6189_s0 + %s5469_s14]]   ;;  %s5472_s26 = smov 6  }
   0x5   :  { %s5533_s21 = sld [smem:[%s6189_s0 + %s5470_s18]]   ;;  %s5473_s30 = smov 7  }
   0x6   :  { %s5538_s25 = sld [smem:[%s6189_s0 + %s5471_s22]]   ;;  %s5474_s4 = smov 8  }
   0x7   :  { %s5543_s29 = sld [smem:[%s6189_s0 + %s5472_s26]]   ;;  %s5475_s10 = smov 9  }
   0x8   :  { %s5548_s3 = sld [smem:[%s6189_s0 + %s5473_s30]]   ;;  %s5476_s15 = smov 10  }
   0x9   :  { %s5553_s8 = sld [smem:[%s6189_s0 + %s5474_s4]]   ;;  %s5477_s20 = smov 11  }
   0xa   :  { %s5558_s14 = sld [smem:[%s6189_s0 + %s5475_s10]]   ;;  %s5478_s26 = smov 12  }
   0xb   :  { %s5563_s19 = sld [smem:[%s6189_s0 + %s5476_s15]]   ;;  %s5479_s1 = smov 13  }
   0xc   :  { %s5568_s24 = sld [smem:[%s6189_s0 + %s5477_s20]]   ;;  %s5480_s7 = smov 14  }
   0xd   :  { %s5573_s30 = sld [smem:[%s6189_s0 + %s5478_s26]]   ;;  %s5481_s15 = smov 15  }
   0xe   :  { %s5578_s6 = sld [smem:[%s6189_s0 + %s5479_s1]]   ;;  %s5482_s22 = smov 16  }
   0xf   :  { %s5583_s12 = sld [smem:[%s6189_s0 + %s5480_s7]]   ;;  %s5483_s28 = smov 17  }
  0x10   :  { %s5588_s20 = sld [smem:[%s6189_s0 + %s5481_s15]]   ;;  %s5484_s7 = smov 18  }
  0x11   :  { %s5593_s27 = sld [smem:[%s6189_s0 + %s5482_s22]]   ;;  %s5485_s15 = smov 19  }
  0x12   :  { %s5598_s4 = sld [smem:[%s6189_s0 + %s5483_s28]]   ;;  %s5486_s22 = smov 20  }
  0x13   :  { %s5487_s28 = smov 21  }
  0x14   :  { %6201 = sst [smem:[#allocation2_spill]] %s5578_s6 }
  0x15   :  { %s5603_s6 = sld [smem:[%s6189_s0 + %s5484_s7]]   ;;  %s5488_s7 = smov 22  }
  0x16   :  { %6202 = sst [smem:[#allocation3_spill]] %s5588_s20 }
  0x17   :  { %6203 = sst [smem:[#allocation4_spill]] %s5593_s27 }
  0x18   :  { %6204 = sst [smem:[#allocation5_spill]] %s5598_s4 }
  0x19   :  { %s5608_s20 = sld [smem:[%s6189_s0 + %s5485_s15]]   ;;  %s5489_s15 = smov 23  }
  0x1a   :  { %s5613_s27 = sld [smem:[%s6189_s0 + %s5486_s22]]   ;;  %s5490_s22 = smov 24  }
  0x1b   :  { %6205 = sst [smem:[#allocation6_spill]] %s5603_s6 }
  0x1c   :  { %s5618_s4 = sld [smem:[%s6189_s0 + %s5487_s28]]   ;;  %s5491_s28 = smov 25  }
  0x1d   :  { %s5623_s6 = sld [smem:[%s6189_s0 + %s5488_s7]]   ;;  %s5492_s7 = smov 26  }
  0x1f   :  { %6206 = sst [smem:[#allocation7_spill]] %s5608_s20 }
  0x20   :  { %6207 = sst [smem:[#allocation8_spill]] %s5613_s27 }
  0x21   :  { %s5628_s20 = sld [smem:[%s6189_s0 + %s5489_s15]]   ;;  %s5493_s15 = smov 27  }
  0x22   :  { %6208 = sst [smem:[#allocation9_spill]] %s5618_s4 }
  0x23   :  { %6209 = sst [smem:[#allocation10_spill]] %s5623_s6 }
  0x24   :  { %s5633_s27 = sld [smem:[%s6189_s0 + %s5490_s22]]   ;;  %s5494_s22 = smov 28  }
  0x25   :  { %s5638_s4 = sld [smem:[%s6189_s0 + %s5491_s28]]   ;;  %s5495_s28 = smov 29  }
  0x26   :  { %s5643_s6 = sld [smem:[%s6189_s0 + %s5492_s7]]   ;;  %s5496_s7 = smov 30  }
  0x27   :  { %6210 = sst [smem:[#allocation11_spill]] %s5628_s20 }
  0x28   :  { %s5648_s20 = sld [smem:[%s6189_s0 + %s5493_s15]]   ;;  %s5497_s15 = smov 31  }
  0x2a   :  { %6211 = sst [smem:[#allocation12_spill]] %s5633_s27 }
  0x2b   :  { %6212 = sst [smem:[#allocation13_spill]] %s5638_s4 }
  0x2c   :  { %6213 = sst [smem:[#allocation14_spill]] %s5643_s6 }
  0x2d   :  { %s5653_s27 = sld [smem:[%s6189_s0 + %s5494_s22]]   ;;  %s5498_s22 = smov 32  }
  0x2e   :  { %6214 = sst [smem:[#allocation15_spill]] %s5648_s20 }
  0x2f   :  { %s5658_s4 = sld [smem:[%s6189_s0 + %s5495_s28]]   ;;  %s5499_s28 = smov 33  }
  0x30   :  { %s5663_s6 = sld [smem:[%s6189_s0 + %s5496_s7]]   ;;  %s5500_s7 = smov 34  }
  0x31   :  { %s5668_s20 = sld [smem:[%s6189_s0 + %s5497_s15]]   ;;  %s5501_s15 = smov 35  }
  0x33   :  { %6215 = sst [smem:[#allocation16_spill]] %s5653_s27 }
  0x34   :  { %s5673_s27 = sld [smem:[%s6189_s0 + %s5498_s22]]   ;;  %s5502_s22 = smov 36  }
  0x35   :  { %6216 = sst [smem:[#allocation17_spill]] %s5658_s4 }
  0x36   :  { %6217 = sst [smem:[#allocation18_spill]] %s5663_s6 }
  0x37   :  { %6218 = sst [smem:[#allocation19_spill]] %s5668_s20 }
  0x38   :  { %s5678_s4 = sld [smem:[%s6189_s0 + %s5499_s28]]   ;;  %s5695_s28 = smov 0  }
  0x39   :  { %s5683_s6 = sld [smem:[%s6189_s0 + %s5500_s7]]  }
  0x3a   :  { %6219 = sst [smem:[#allocation20_spill]] %s5673_s27 }
  0x3b   :  { %s5688_s20 = sld [smem:[%s6189_s0 + %s5501_s15]]  }
  0x3c   :  { %s5693_s27 = sld [smem:[%s6189_s0 + %s5502_s22]]  }
  0x3d LB: > { %s4529_s1 = sadd.s32 4294967295, %s5465_s28   ;;  %p4533_p0 = scmp.ge.s32.totalorder %s5465_s28, 1  ;;  %s5465_s28 = sphi %s5695_s28, %s83_s28  }
  0x3e   : > { %p998_p1 = scmp.lt.s32.totalorder %s5465_s28, 3 }
  0x40   : > { %p999_p2 = pnand %p4533_p0, %p998_p1 }
  0x41   : > { %v5357_v0 = vld [vmem:[%s5533_s21] sm:$0xff] (!%p999_p2)   ;;  %v5503_v1 = vmov (!%p999_p2), 0.0   ;;  %v5359_v3 = vld [vmem:[%s5533_s21 + $0x8] sm:$0xff] (!%p999_p2)   ;;  %vm5504_vm0 = vmmov (!%p999_p2), 0   ;;  %p1086_p3 = scmp.lt.s32.totalorder (!%p999_p2), %s4529_s1, 1  ;;  %vm1136_vm1 = vcmask (!%p999_p2), 261120   ;;  %v1100_v29 = vlaneseq (!%p999_p2) }
  0x42   : > { %1002 = sbr.rel (%p999_p2) target bundleno = 10652 (0x299c), region = 164  ;;  %4935 = vmatprep.subr.bf16.mxu1 (!%p999_p2), %v5503_v1  ;;  %4927 = vmatprep.subr.bf16.mxu0 (!%p999_p2), %v5503_v1  ;;  %v5358_v2 = vld [vmem:[%s5523_s13] sm:$0xff] (!%p999_p2)   ;;  %v5360_v4 = vld [vmem:[%s5523_s13 + $0x8] sm:$0xff] (!%p999_p2)   ;;  %vm1309_vm2 = vcmask (!%p999_p2), 64512   ;;  %vm1373_vm4 = vcmask (!%p999_p2), 1043456   ;;  %v5364_v58 = vld [vmem:[%s5523_s13 + $0x10] sm:$0xff] (!%p999_p2)  }
  0x43   : > { %4936 = vmatpush3.bf16.msra.mxu1 (!%p999_p2), %v5357_v0  ;;  %4939 = vmatprep.mubr.msk.bf16.mxu1 (!%p999_p2), %vm5504_vm0, %v5503_v1  ;;  %v1098_v6 = vld [vmem:[%s5518_s9] sm:$0xff] (!%p999_p2)  ;;  %v5362_v28 = vld [vmem:[%s5543_s29 + $0x8] sm:$0xff] (!%p999_p2)   ;;  %v1101_v30 = vshrl.u32 (!%p999_p2), %v1100_v29, 7  ;;  %v1103_v31 = vand.u32 (!%p999_p2), 127, %v1100_v29  ;;  %v5366_v59 = vld [vmem:[%s5523_s13 + $0x18] sm:$0xff] (!%p999_p2)   ;;  %s6222_s7 = sld [smem:[#allocation2_spill]] (!%p999_p2) }
  0x44   : > { %4928 = vmatpush3.bf16.msra.mxu0 (!%p999_p2), %v5358_v2  ;;  %4937 = vmatprep.subr.bf16.mxu1 (!%p999_p2), %v5503_v1  ;;  %v4541_v11 = vld [vmem:[%s5538_s25] ss:$0 sm:$0xff] (!%p999_p2)  ;;  %v5363_v61 = vld [vmem:[%s5533_s21 + $0x10] sm:$0xff] (!%p999_p2)   ;;  %s6223_s10 = sld [smem:[#allocation3_spill]] (!%p999_p2)  ;;  %vm2667_vm5 = vcmask (!%p999_p2), 523264   ;;  %s6224_s11 = sld [smem:[#allocation6_spill]] (!%p999_p2) }
  0x45   : > { %4929 = vmatprep.subr.bf16.mxu0 (!%p999_p2), %v5503_v1  ;;  %4931 = vmatprep.mubr.msk.bf16.mxu0 (!%p999_p2), %vm5504_vm0, %v5503_v1  ;;  %v4537_v12 = vld [vmem:[%s5528_s17] ss:$0 sm:$0xff] (!%p999_p2)  ;;  %vm5751_vm3 = vcmp.gt.s32.totalorder (!%p999_p2), %v1103_v31, %v1101_v30  ;;  %s6225_s15 = sld [smem:[#allocation10_spill]] (!%p999_p2)  ;;  %s6226_s16 = sld [smem:[#allocation4_spill]] (!%p999_p2) }
  0x46   : > { %v5361_v27 = vld [vmem:[%s5543_s29] sm:$0xff] (!%p999_p2)   ;;  %s6227_s18 = sld [smem:[#allocation5_spill]] (!%p999_p2)  ;;  %s6228_s22 = sld [smem:[#allocation8_spill]] (!%p999_p2) }
  0x47   : > { %4938 = vmatpush3.bf16.msra.mxu1 (!%p999_p2), %v5359_v3  ;;  %v4545_v47 = vld [vmem:[%s5548_s3] ss:$0 sm:$0xff] (!%p999_p2)  ;;  %v5365_v3 = vld [vmem:[%s5533_s21 + $0x18] sm:$0xff] (!%p999_p2)   ;;  %s6229_s23 = sld [smem:[#allocation11_spill]] (!%p999_p2)  ;;  %s6230_s26 = sld [smem:[#allocation9_spill]] (!%p999_p2) }
  0x48   : > { %4930 = vmatpush3.bf16.msra.mxu0 (!%p999_p2), %v5360_v4  ;;  %4951 = vmatprep.subr.bf16.mxu1 (!%p999_p2), %v5503_v1  ;;  %v1418_v52 = vld [vmem:[%s5553_s8] sm:$0xf] (!%p999_p2) }
  0x49   : > { %s6242_s1 = smov (!%p1086_p3, %s4529_s1), 1  ;;  %4943 = vmatprep.subr.bf16.mxu0 %v5503_v1  ;;  %v1423_v53 = vsel %vm1373_vm4, %v1418_v52, 0 }
  0x4a   : > { %s4534_s0 = sshll.u32 %s6242_s1, 2 }
  0x4b   : > { %s1089_s2 = scalar_lea.vmem %s5513_s5, %s4534_s0  ;;  %s6231_s0 = sld [smem:[#allocation7_spill]] }
  0x4c   : > { %v1095_v5 = vld [vmem:[%s1089_s2] sm:$0xf]  ;;  %s6232_s2 = sld [smem:[#allocation12_spill]] }
  0x4d   : > { %v1096_v7 = vunpack.c.l.bf16 %v1095_v5 }
  0x4f   : > { %v1097_v8 = vmul.f32 5.656854, %v1096_v7 }
  0x51   : > { %v5722_v9 = vadd.f32 %v1098_v6, %v1097_v8 }
  0x53   : > { %v5726_v10 = vpack.c.bf16 %v5722_v9, %v5722_v9 }
  0x55   : > { %4940 = vmatmul.mubr.msk.bf16.vlgmr.msra.gmra.mrb[0].mxu1 %vm1136_vm1, %v5726_v10  ;;  %4932 = vmatmul.mubr.msk.bf16.vlgmr.msra.gmra.mrb[0].mxu0 %vm1136_vm1, %v5726_v10 }
  0x56   : > { %4953 = vmatprep.mubr.msk.bf16.mxu1 %vm5504_vm0, %v5503_v1  ;;  %4947 = vmatprep.mubr.msk.bf16.mxu0 %vm5504_vm0, %v5503_v1 }
  0x57   : > { %4944 = vmatpush3.bf16.msra.mxu0 %v5361_v27  ;;  %v5368_v27 = vld [vmem:[%s5543_s29 + $0x18] sm:$0xff]  }
  0x58   : > { %4945 = vmatprep.subr.bf16.mxu0 %v5503_v1 }
  0x5b   : > { %4946 = vmatpush3.bf16.msra.mxu0 %v5362_v28 }
  0x5c   : > { %4957 = vmatprep.subr.bf16.mxu0 %v5503_v1 }
  0x5e   : > { %4948 = vmatmul.mubr.msk.bf16.vlgmr.msra.gmra.mrb[4].mxu0 %vm1136_vm1, %v5726_v10 }
  0x5f   : > { %4959 = vmatprep.mubr.msk.bf16.mxu0 %vm5504_vm0, %v5503_v1 }
 0x128   : > { %v1238_v13 = vpop.f32.mrb[0].mxu1  ;;  %v1174_v14 = vpop.f32.mrb[0].mxu0 }
 0x129   : > { %v1239_v15 = vadd.f32 %v4541_v11, %v1238_v13  ;;  %v4941_v16 = vpop.f32.mrb[1].mxu1  ;;  %v1175_v17 = vadd.f32 %v4537_v12, %v1174_v14  ;;  %v4933_v18 = vpop.f32.mrb[1].mxu0  ;;  %v4566_v14 = vld [vmem:[%s5538_s25 + $0x1] ss:$0 sm:$0xff] }
 0x12a   : > { %v1241_v19 = vpop.f32.mrb[2].mxu1  ;;  %v1177_v20 = vpop.f32.mrb[2].mxu0 }
 0x12b   : > { %v1308_v21 = vpack.c.bf16 %v1239_v15, %v1239_v15  ;;  %v4942_v22 = vpop.f32.mrb[3].mxu1  ;;  %v4934_v23 = vpop.f32.mrb[3].mxu0  ;;  %v1180_v25 = vmul.f32 0.35355338, %v1175_v17  ;;  %v4557_v15 = vld [vmem:[%s5528_s17 + $0x1] ss:$0 sm:$0xff] }
 0x12d   : > { %v1314_v24 = vsel %vm1309_vm2, %v1308_v21, 0  ;;  %v1307_v26 = vpack.c.bf16 %v1180_v25, %v1180_v25 }
 0x12e   : > { %4952 = vmatpush3.bf16.xpose.msra.mxu1 %v1314_v24 }
 0x12f   : > { %4963 = vmatprep.subr.bf16.mxu1 %v5503_v1 }
 0x131   : > { %v1301_v44 = vpop.f32.mrb[4].mxu0 }
 0x132   : > { %v4949_v45 = vpop.f32.mrb[5].mxu0  ;;  %v1302_v49 = vadd.f32 %v4545_v47, %v1301_v44 }
 0x133   : > { %v1304_v46 = vpop.f32.mrb[6].mxu0 }
 0x134   : > { %v4950_v48 = vpop.f32.mrb[7].mxu0  ;;  %v1369_v50 = vpack.c.bf16 %v1302_v49, %v1302_v49 }
 0x135   : > { %4954 = vmatmul.mubr.msk.bf16.vlgmr.msra.gmra.mrb[4].mxu1 %vm1309_vm2, %v1307_v26  ;;  %v5367_v26 = vld [vmem:[%s5543_s29 + $0x10] sm:$0xff]   ;;  %v4581_v48 = vld [vmem:[%s5553_s8 + $0x4] sm:$0xf] }
 0x136   : > { %4965 = vmatprep.mubr.msk.bf16.mxu1 %vm5504_vm0, %v5503_v1  ;;  %v1375_v51 = vsel %vm1373_vm4, %v1369_v50, 0  ;;  %4964 = vmatpush3.bf16.msra.mxu1 %v1423_v53  ;;  %v1777_v49 = vsel %vm1373_vm4, %v4581_v48, 0 }
 0x137   : > { %4958 = vmatpush3.bf16.msra.mxu0 %v1375_v51  ;;  %4977 = vmatprep.subr.bf16.mxu1 %v5503_v1 }
 0x138   : > { %4969 = vmatprep.subr.bf16.mxu0 %v5503_v1 }
 0x208   : > { %v1350_v33 = vpop.f32.mrb[4].mxu1 }
 0x209   : > { %v1356_v34 = vsel %vm5751_vm3, -1e+30, %v1350_v33  ;;  %v4955_v35 = vpop.f32.mrb[5].mxu1 }
 0x20a   : > { %v1353_v36 = vpop.f32.mrb[6].mxu1  ;;  %v1357_v37 = vsel %vm1309_vm2, %v1356_v34, -inf }
 0x20b   : > { %1358 = vmax.xlane.f32.xlu0 %v1357_v37  ;;  %v4956_v38 = vpop.f32.mrb[7].mxu1 }
 0x298   : > { %v1359_v39 = vpop.xlane.xlu0 %1358 }
 0x299   : > { %v1360_v40 = vsub.f32 %v1356_v34, %v1359_v39 }
 0x29b   : > { %v1361_v41 = vmul.f32 1.442695, %v1360_v40 }
 0x29d   : > { %5419 = vpow2.f32 %v1361_v41 }
 0x2a7   : > { %v5420_v42 = vpop.eup %5419 }
 0x2a8   : > { %v1363_v43 = vsel %vm1309_vm2, %v5420_v42, 0.0 }
 0x2a9   : > { %1364 = vadd.xlane.f32.xlu0 %v1363_v43  ;;  %v4575_v43 = vld [vmem:[%s5548_s3 + $0x1] ss:$0 sm:$0xff] }
 0x336   : > { %v1365_v54 = vpop.xlane.xlu0 %1364 }
 0x337   : > { %5421 = vrcp.f32 %v1365_v54  ;;  %v5370_v54 = vld [vmem:[%s5523_s13 + $0x20] sm:$0xff]  }
 0x341   : > { %v5422_v55 = vpop.eup %5421 }
 0x342   : > { %v1367_v56 = vmul.f32 %v5422_v55, %v5420_v42  ;;  %v5372_v55 = vld [vmem:[%s5523_s13 + $0x28] sm:$0xff]  }
 0x344   : > { %v1368_v57 = vpack.c.bf16 %v1367_v56, %v1367_v56 }
 0x346   : > { %4960 = vmatmul.mubr.msk.bf16.vlgmr.msra.gmra.mrb[8].mxu0 %vm1309_vm2, %v1368_v57  ;;  %v5369_v57 = vld [vmem:[%s5533_s21 + $0x20] sm:$0xff]  }
 0x347   : > { %4973 = vmatprep.mubr.msk.bf16.mxu0 %vm5504_vm0, %v5503_v1  ;;  %4970 = vmatpush3.bf16.msra.mxu0 %v5364_v58 }
 0x348   : > { %4971 = vmatprep.subr.bf16.mxu0 %v5503_v1 }
 0x34b   : > { %4972 = vmatpush3.bf16.msra.mxu0 %v5366_v59 }
 0x34c   : > { %4985 = vmatprep.subr.bf16.mxu0 %v5503_v1 }
 0x34e   : > { %4974 = vmatmul.mubr.msk.bf16.vlgmr.msra.gmra.mrb[12].mxu0 %vm1136_vm1, %v5726_v10 }
 0x34f   : > { %4989 = vmatprep.mubr.msk.bf16.mxu0 %vm5504_vm0, %v5503_v1  ;;  %4986 = vmatpush3.bf16.msra.mxu0 %v5367_v26  ;;  %v5374_v26 = vld [vmem:[%s5543_s29 + $0x28] sm:$0xff]  }
 0x350   : > { %4987 = vmatprep.subr.bf16.mxu0 %v5503_v1 }
 0x353   : > { %4988 = vmatpush3.bf16.msra.mxu0 %v5368_v27 }
 0x354   : > { %4999 = vmatprep.subr.bf16.mxu0 %v5503_v1 }
 0x356   : > { %4990 = vmatmul.mubr.msk.bf16.vlgmr.msra.gmra.mrb[16].mxu0 %vm1136_vm1, %v5726_v10 }
 0x357   : > { %5001 = vmatprep.mubr.msk.bf16.mxu0 %vm5504_vm0, %v5503_v1 }
 0x419   : > { %v1411_v60 = vpop.f32.mrb[8].mxu0 }
 0x41a   : > { %v1417_v62 = vpack.c.bf16 %v1411_v60, %v1411_v60  ;;  %v4961_v63 = vpop.f32.mrb[9].mxu0 }
 0x41b   : > { %v1414_v0 = vpop.f32.mrb[10].mxu0 }
 0x41c   : > { %v4962_v2 = vpop.f32.mrb[11].mxu0  ;;  %4966 = vmatmul.mubr.msk.bf16.vlgmr.msra.gmra.mrb[8].mxu1 %vm1309_vm2, %v1417_v62  ;;  %v5371_v62 = vld [vmem:[%s5533_s21 + $0x28] sm:$0xff]  }
 0x41d   : > { %4978 = vmatpush3.bf16.msra.mxu1 %v5363_v61  ;;  %4981 = vmatprep.mubr.msk.bf16.mxu1 %vm5504_vm0, %v5503_v1 }
 0x41e   : > { %4979 = vmatprep.subr.bf16.mxu1 %v5503_v1 }
 0x421   : > { %4980 = vmatpush3.bf16.msra.mxu1 %v5365_v3  ;;  %v1525_v4 = vpop.f32.mrb[12].mxu0 }
 0x422   : > { %4993 = vmatprep.subr.bf16.mxu1 %v5503_v1  ;;  %v4975_v5 = vpop.f32.mrb[13].mxu0  ;;  %v1526_v19 = vadd.f32 %v4557_v15, %v1525_v4  ;;  %v4536_v4 = vld [vmem:[%s5558_s14] ss:$0 sm:$0xff]  ;;  %v4588_v15 = vld [vmem:[%s5528_s17 + $0x2] ss:$0 sm:$0xff] }
 0x423   : > { %v1528_v6 = vpop.f32.mrb[14].mxu0 }
 0x424   : > { %4982 = vmatmul.mubr.msk.bf16.vlgmr.msra.gmra.mrb[12].mxu1 %vm1136_vm1, %v5726_v10  ;;  %v4976_v7 = vpop.f32.mrb[15].mxu0  ;;  %v1531_v24 = vmul.f32 0.35355338, %v1526_v19 }
 0x425   : > { %4995 = vmatprep.mubr.msk.bf16.mxu1 %vm5504_vm0, %v5503_v1 }
 0x426   : > { %v1662_v25 = vpack.c.bf16 %v1531_v24, %v1531_v24 }
 0x429   : > { %v1656_v40 = vpop.f32.mrb[16].mxu0 }
 0x42a   : > { %v4991_v41 = vpop.f32.mrb[17].mxu0  ;;  %v1657_v45 = vadd.f32 %v4575_v43, %v1656_v40 }
 0x42b   : > { %v1659_v42 = vpop.f32.mrb[18].mxu0 }
 0x42c   : > { %v4992_v44 = vpop.f32.mrb[19].mxu0  ;;  %v1723_v46 = vpack.c.bf16 %v1657_v45, %v1657_v45  ;;  %v4606_v42 = vld [vmem:[%s5548_s3 + $0x2] ss:$0 sm:$0xff] }
 0x42e   : > { %v1728_v47 = vsel %vm1373_vm4, %v1723_v46, 0 }
 0x42f   : > { %5000 = vmatpush3.bf16.msra.mxu0 %v1728_v47  ;;  %v4612_v47 = vld [vmem:[%s5553_s8 + $0x8] sm:$0xf] }
 0x430   : > { %5011 = vmatprep.subr.bf16.mxu0 %v5503_v1  ;;  %v2131_v48 = vsel %vm1373_vm4, %v4612_v47, 0 }
 0x4ef   : > { %v5787_v8 = vpop.f32.mrb[8].mxu1 }
 0x4f0   : > { %v4967_v11 = vpop.f32.mrb[9].mxu1  ;;  %v1465_v5 = vadd.f32 %v4536_v4, %v5787_v8 }
 0x4f1   : > { %v1462_v12 = vpop.f32.mrb[10].mxu1 }
 0x4f2   : > { %v4968_v13 = vpop.f32.mrb[11].mxu1 }
 0x4f7   : > { %v1591_v16 = vpop.f32.mrb[12].mxu1 }
 0x4f8   : > { %v1592_v17 = vadd.f32 %v4566_v14, %v1591_v16  ;;  %v4983_v18 = vpop.f32.mrb[13].mxu1  ;;  %v4597_v14 = vld [vmem:[%s5538_s25 + $0x2] ss:$0 sm:$0xff] }
 0x4f9   : > { %v1594_v20 = vpop.f32.mrb[14].mxu1 }
 0x4fa   : > { %v1663_v21 = vpack.c.bf16 %v1592_v17, %v1592_v17  ;;  %v4984_v22 = vpop.f32.mrb[15].mxu1 }
 0x4fc   : > { %v1668_v23 = vsel %vm1309_vm2, %v1663_v21, 0 }
 0x4fd   : > { %4994 = vmatpush3.bf16.xpose.msra.mxu1 %v1668_v23 }
 0x4fe   : > { %5005 = vmatprep.subr.bf16.mxu1 %v5503_v1 }
 0x504   : > { %4996 = vmatmul.mubr.msk.bf16.vlgmr.msra.gmra.mrb[16].mxu1 %vm1309_vm2, %v1662_v25  ;;  %v5373_v25 = vld [vmem:[%s5543_s29 + $0x20] sm:$0xff]  }
 0x505   : > { %5007 = vmatprep.mubr.msk.bf16.mxu1 %vm5504_vm0, %v5503_v1  ;;  %5006 = vmatpush3.bf16.msra.mxu1 %v1777_v49 }
 0x506   : > { %5019 = vmatprep.subr.bf16.mxu1 %v5503_v1 }
 0x5d7   : > { %v1704_v28 = vpop.f32.mrb[16].mxu1 }
 0x5d8   : > { %v1710_v29 = vsel %vm5751_vm3, -1e+30, %v1704_v28  ;;  %v4997_v30 = vpop.f32.mrb[17].mxu1 }
 0x5d9   : > { %v1707_v31 = vpop.f32.mrb[18].mxu1  ;;  %v1711_v33 = vsel %vm1309_vm2, %v1710_v29, -inf }
 0x5da   : > { %1712 = vmax.xlane.f32.xlu1 %v1711_v33  ;;  %v4998_v34 = vpop.f32.mrb[19].mxu1 }
 0x667   : > { %v1713_v35 = vpop.xlane.xlu1 %1712 }
 0x668   : > { %v1714_v36 = vsub.f32 %v1710_v29, %v1713_v35 }
 0x66a   : > { %v1715_v37 = vmul.f32 1.442695, %v1714_v36 }
 0x66c   : > { %5423 = vpow2.f32 %v1715_v37 }
 0x676   : > { %v5424_v38 = vpop.eup %5423 }
 0x677   : > { %v1717_v39 = vsel %vm1309_vm2, %v5424_v38, 0.0 }
 0x678   : > { %1718 = vadd.xlane.f32.xlu1 %v1717_v39 }
 0x705   : > { %v1719_v50 = vpop.xlane.xlu1 %1718 }
 0x706   : > { %5425 = vrcp.f32 %v1719_v50 }
 0x710   : > { %v5426_v51 = vpop.eup %5425 }
 0x711   : > { %v1721_v52 = vmul.f32 %v5426_v51, %v5424_v38 }
 0x713   : > { %v1722_v53 = vpack.c.bf16 %v1721_v52, %v1721_v52 }
 0x715   : > { %5002 = vmatmul.mubr.msk.bf16.vlgmr.msra.gmra.mrb[20].mxu0 %vm1309_vm2, %v1722_v53  ;;  %v5376_v53 = vld [vmem:[%s5523_s13 + $0x30] sm:$0xff]  }
 0x716   : > { %5015 = vmatprep.mubr.msk.bf16.mxu0 %vm5504_vm0, %v5503_v1  ;;  %5012 = vmatpush3.bf16.msra.mxu0 %v5370_v54  ;;  %v5378_v54 = vld [vmem:[%s5523_s13 + $0x38] sm:$0xff]  }
 0x717   : > { %5013 = vmatprep.subr.bf16.mxu0 %v5503_v1 }
 0x71a   : > { %5014 = vmatpush3.bf16.msra.mxu0 %v5372_v55 }
 0x71b   : > { %5027 = vmatprep.subr.bf16.mxu0 %v5503_v1 }
 0x71d   : > { %5016 = vmatmul.mubr.msk.bf16.vlgmr.msra.gmra.mrb[24].mxu0 %vm1136_vm1, %v5726_v10 }
 0x71e   : > { %5031 = vmatprep.mubr.msk.bf16.mxu0 %vm5504_vm0, %v5503_v1  ;;  %5028 = vmatpush3.bf16.msra.mxu0 %v5373_v25 }
 0x71f   : > { %5029 = vmatprep.subr.bf16.mxu0 %v5503_v1 }
 0x722   : > { %5030 = vmatpush3.bf16.msra.mxu0 %v5374_v26 }
 0x723   : > { %5041 = vmatprep.subr.bf16.mxu0 %v5503_v1 }
 0x725   : > { %5032 = vmatmul.mubr.msk.bf16.vlgmr.msra.gmra.mrb[28].mxu0 %vm1136_vm1, %v5726_v10 }
 0x726   : > { %5043 = vmatprep.mubr.msk.bf16.mxu0 %vm5504_vm0, %v5503_v1 }
 0x7e8   : > { %v1764_v56 = vpop.f32.mrb[20].mxu0 }
 0x7e9   : > { %v1770_v58 = vpack.c.bf16 %v1764_v56, %v1764_v56  ;;  %v5003_v59 = vpop.f32.mrb[21].mxu0  ;;  %v5375_v56 = vld [vmem:[%s5533_s21 + $0x30] sm:$0xff]  }
 0x7ea   : > { %v1767_v60 = vpop.f32.mrb[22].mxu0 }
 0x7eb   : > { %v5004_v61 = vpop.f32.mrb[23].mxu0  ;;  %5008 = vmatmul.mubr.msk.bf16.vlgmr.msra.gmra.mrb[20].mxu1 %vm1309_vm2, %v1770_v58 }
 0x7ec   : > { %5020 = vmatpush3.bf16.msra.mxu1 %v5369_v57  ;;  %5023 = vmatprep.mubr.msk.bf16.mxu1 %vm5504_vm0, %v5503_v1  ;;  %v5377_v61 = vld [vmem:[%s5533_s21 + $0x38] sm:$0xff]  }
 0x7ed   : > { %5021 = vmatprep.subr.bf16.mxu1 %v5503_v1 }
 0x7f0   : > { %5022 = vmatpush3.bf16.msra.mxu1 %v5371_v62  ;;  %v1879_v63 = vpop.f32.mrb[24].mxu0 }
 0x7f1   : > { %5035 = vmatprep.subr.bf16.mxu1 %v5503_v1  ;;  %v5017_v0 = vpop.f32.mrb[25].mxu0  ;;  %v1880_v19 = vadd.f32 %v4588_v15, %v1879_v63 }
 0x7f2   : > { %v1882_v2 = vpop.f32.mrb[26].mxu0 }
 0x7f3   : > { %5024 = vmatmul.mubr.msk.bf16.vlgmr.msra.gmra.mrb[24].mxu1 %vm1136_vm1, %v5726_v10  ;;  %v5018_v3 = vpop.f32.mrb[27].mxu0  ;;  %v1885_v8 = vmul.f32 0.35355338, %v1880_v19 }
 0x7f4   : > { %5037 = vmatprep.mubr.msk.bf16.mxu1 %vm5504_vm0, %v5503_v1 }
 0x7f5   : > { %v2016_v24 = vpack.c.bf16 %v1885_v8, %v1885_v8  ;;  %v5380_v8 = vld [vmem:[%s5543_s29 + $0x38] sm:$0xff]  }
 0x7f8   : > { %v2010_v39 = vpop.f32.mrb[28].mxu0 }
 0x7f9   : > { %v5033_v40 = vpop.f32.mrb[29].mxu0  ;;  %v2011_v44 = vadd.f32 %v4606_v42, %v2010_v39 }
 0x7fa   : > { %v2013_v41 = vpop.f32.mrb[30].mxu0 }
 0x7fb   : > { %v5034_v43 = vpop.f32.mrb[31].mxu0  ;;  %v2077_v45 = vpack.c.bf16 %v2011_v44, %v2011_v44 }
 0x7fc   : > { %v4643_v43 = vld [vmem:[%s5553_s8 + $0xc] sm:$0xf] }
 0x7fd   : > { %v2082_v46 = vsel %vm1373_vm4, %v2077_v45, 0  ;;  %v2485_v44 = vsel %vm1373_vm4, %v4643_v43, 0  ;;  %v5389_v43 = vld [vmem:[%s6224_s11 + $0x8] sm:$0xff]  }
 0x7fe   : > { %5042 = vmatpush3.bf16.msra.mxu0 %v2082_v46 }
 0x7ff   : > { %5053 = vmatprep.subr.bf16.mxu0 %v5503_v1 }
 0x8be   : > { %v1813_v6 = vpop.f32.mrb[20].mxu1 }
 0x8bf   : > { %v5838_v7 = vadd.f32 %v1813_v6, %v1465_v5  ;;  %v5009_v11 = vpop.f32.mrb[21].mxu1 }
 0x8c0   : > { %v1816_v12 = vpop.f32.mrb[22].mxu1 }
 0x8c1   : > { %v5010_v13 = vpop.f32.mrb[23].mxu1  ;;  %v4628_v12 = vld [vmem:[%s5538_s25 + $0x3] ss:$0 sm:$0xff] }
 0x8c2   : > { %v4619_v13 = vld [vmem:[%s5528_s17 + $0x3] ss:$0 sm:$0xff] }
 0x8c6   : > { %v1945_v16 = vpop.f32.mrb[24].mxu1 }
 0x8c7   : > { %v1946_v17 = vadd.f32 %v4597_v14, %v1945_v16  ;;  %v5025_v18 = vpop.f32.mrb[25].mxu1 }
 0x8c8   : > { %v1948_v20 = vpop.f32.mrb[26].mxu1 }
 0x8c9   : > { %v2017_v21 = vpack.c.bf16 %v1946_v17, %v1946_v17  ;;  %v5026_v22 = vpop.f32.mrb[27].mxu1 }
 0x8cb   : > { %v2022_v23 = vsel %vm1309_vm2, %v2017_v21, 0 }
 0x8cc   : > { %5036 = vmatpush3.bf16.xpose.msra.mxu1 %v2022_v23  ;;  %v5379_v23 = vld [vmem:[%s5543_s29 + $0x30] sm:$0xff]  }
 0x8cd   : > { %5047 = vmatprep.subr.bf16.mxu1 %v5503_v1 }
 0x8d3   : > { %5038 = vmatmul.mubr.msk.bf16.vlgmr.msra.gmra.mrb[28].mxu1 %vm1309_vm2, %v2016_v24 }
 0x8d4   : > { %5049 = vmatprep.mubr.msk.bf16.mxu1 %vm5504_vm0, %v5503_v1  ;;  %5048 = vmatpush3.bf16.msra.mxu1 %v2131_v48 }
 0x8d5   : > { %5061 = vmatprep.subr.bf16.mxu1 %v5503_v1 }
 0x9a6   : > { %v2058_v27 = vpop.f32.mrb[28].mxu1 }
 0x9a7   : > { %v2064_v28 = vsel %vm5751_vm3, -1e+30, %v2058_v27  ;;  %v5039_v29 = vpop.f32.mrb[29].mxu1 }
 0x9a8   : > { %v2061_v30 = vpop.f32.mrb[30].mxu1  ;;  %v2065_v31 = vsel %vm1309_vm2, %v2064_v28, -inf }
 0x9a9   : > { %2066 = vmax.xlane.f32.xlu0 %v2065_v31  ;;  %v5040_v33 = vpop.f32.mrb[31].mxu1 }
 0xa36   : > { %v2067_v34 = vpop.xlane.xlu0 %2066 }
 0xa37   : > { %v2068_v35 = vsub.f32 %v2064_v28, %v2067_v34 }
 0xa39   : > { %v2069_v36 = vmul.f32 1.442695, %v2068_v35 }
 0xa3b   : > { %5427 = vpow2.f32 %v2069_v36 }
 0xa45   : > { %v5428_v37 = vpop.eup %5427 }
 0xa46   : > { %v2071_v38 = vsel %vm1309_vm2, %v5428_v37, 0.0 }
 0xa47   : > { %2072 = vadd.xlane.f32.xlu1 %v2071_v38  ;;  %v4637_v38 = vld [vmem:[%s5548_s3 + $0x3] ss:$0 sm:$0xff] }
 0xad4   : > { %v2073_v49 = vpop.xlane.xlu1 %2072 }
 0xad5   : > { %5429 = vrcp.f32 %v2073_v49 }
 0xadf   : > { %v5430_v50 = vpop.eup %5429 }
 0xae0   : > { %v2075_v51 = vmul.f32 %v5430_v50, %v5428_v37 }
 0xae2   : > { %v2076_v52 = vpack.c.bf16 %v2075_v51, %v2075_v51 }
 0xae4   : > { %5044 = vmatmul.mubr.msk.bf16.vlgmr.msra.gmra.mrb[32].mxu0 %vm1309_vm2, %v2076_v52 }
 0xae5   : > { %5057 = vmatprep.mubr.msk.bf16.mxu0 %vm5504_vm0, %v5503_v1  ;;  %5054 = vmatpush3.bf16.msra.mxu0 %v5376_v53 }
 0xae6   : > { %5055 = vmatprep.subr.bf16.mxu0 %v5503_v1 }
 0xae9   : > { %5056 = vmatpush3.bf16.msra.mxu0 %v5378_v54 }
 0xaea   : > { %5069 = vmatprep.subr.bf16.mxu0 %v5503_v1 }
 0xaec   : > { %5058 = vmatmul.mubr.msk.bf16.vlgmr.msra.gmra.mrb[36].mxu0 %vm1136_vm1, %v5726_v10 }
 0xaed   : > { %5073 = vmatprep.mubr.msk.bf16.mxu0 %vm5504_vm0, %v5503_v1  ;;  %5070 = vmatpush3.bf16.msra.mxu0 %v5379_v23 }
 0xaee   : > { %5071 = vmatprep.subr.bf16.mxu0 %v5503_v1 }
 0xaf1   : > { %5072 = vmatpush3.bf16.msra.mxu0 %v5380_v8 }
 0xaf2   : > { %5083 = vmatprep.subr.bf16.mxu0 %v5503_v1 }
 0xaf4   : > { %5074 = vmatmul.mubr.msk.bf16.vlgmr.msra.gmra.mrb[40].mxu0 %vm1136_vm1, %v5726_v10 }
 0xaf5   : > { %5085 = vmatprep.mubr.msk.bf16.mxu0 %vm5504_vm0, %v5503_v1 }
 0xbb7   : > { %v2118_v55 = vpop.f32.mrb[32].mxu0 }
 0xbb8   : > { %v2124_v57 = vpack.c.bf16 %v2118_v55, %v2118_v55  ;;  %v5045_v58 = vpop.f32.mrb[33].mxu0 }
 0xbb9   : > { %v2121_v59 = vpop.f32.mrb[34].mxu0 }
 0xbba   : > { %v5046_v60 = vpop.f32.mrb[35].mxu0  ;;  %5050 = vmatmul.mubr.msk.bf16.vlgmr.msra.gmra.mrb[32].mxu1 %vm1309_vm2, %v2124_v57 }
 0xbbb   : > { %5062 = vmatpush3.bf16.msra.mxu1 %v5375_v56  ;;  %5065 = vmatprep.mubr.msk.bf16.mxu1 %vm5504_vm0, %v5503_v1 }
 0xbbc   : > { %5063 = vmatprep.subr.bf16.mxu1 %v5503_v1 }
 0xbbf   : > { %5064 = vmatpush3.bf16.msra.mxu1 %v5377_v61  ;;  %v2233_v62 = vpop.f32.mrb[36].mxu0 }
 0xbc0   : > { %5077 = vmatprep.subr.bf16.mxu1 %v5503_v1  ;;  %v5059_v63 = vpop.f32.mrb[37].mxu0  ;;  %v2234_v17 = vadd.f32 %v4619_v13, %v2233_v62 }
 0xbc1   : > { %v2236_v0 = vpop.f32.mrb[38].mxu0 }
 0xbc2   : > { %5066 = vmatmul.mubr.msk.bf16.vlgmr.msra.gmra.mrb[36].mxu1 %vm1136_vm1, %v5726_v10  ;;  %v5060_v2 = vpop.f32.mrb[39].mxu0  ;;  %v2239_v22 = vmul.f32 0.35355338, %v2234_v17 }
 0xbc3   : > { %5079 = vmatprep.mubr.msk.bf16.mxu1 %vm5504_vm0, %v5503_v1 }
 0xbc7   : > { %v2364_v35 = vpop.f32.mrb[40].mxu0 }
 0xbc8   : > { %v5075_v36 = vpop.f32.mrb[41].mxu0  ;;  %v2365_v40 = vadd.f32 %v4637_v38, %v2364_v35 }
 0xbc9   : > { %v2367_v37 = vpop.f32.mrb[42].mxu0 }
 0xbca   : > { %v5076_v39 = vpop.f32.mrb[43].mxu0  ;;  %v2431_v41 = vpack.c.bf16 %v2365_v40, %v2365_v40 }
 0xbcc   : > { %v2436_v42 = vsel %vm1373_vm4, %v2431_v41, 0  ;;  %v5387_v41 = vld [vmem:[%s6224_s11] sm:$0xff]  }
 0xbcd   : > { %5084 = vmatpush3.bf16.msra.mxu0 %v2436_v42  ;;  %v5388_v42 = vld [vmem:[%s6225_s15] sm:$0xff]  }
 0xbce   : > { %5095 = vmatprep.subr.bf16.mxu0 %v5503_v1 }
 0xc8d   : > { %v2167_v3 = vpop.f32.mrb[32].mxu1 }
 0xc8e   : > { %v5888_v4 = vadd.f32 %v2167_v3, %v5838_v7  ;;  %v5051_v5 = vpop.f32.mrb[33].mxu1  ;;  %v2370_v7 = vpack.c.bf16 %v2239_v22, %v2239_v22  ;;  %v5381_v3 = vld [vmem:[%s5573_s30] sm:$0xff]  }
 0xc8f   : > { %v2170_v6 = vpop.f32.mrb[34].mxu1  ;;  %v5384_v5 = vld [vmem:[%s5583_s12 + $0x8] sm:$0xff]   ;;  %v4647_v22 = vld [vmem:[%s6222_s7] ss:$0 sm:$0xff]  ;;  %s6233_s7 = sld [smem:[#allocation13_spill]] }
 0xc90   : > { %v5052_v11 = vpop.f32.mrb[35].mxu1 }
 0xc95   : > { %v2299_v14 = vpop.f32.mrb[36].mxu1 }
 0xc96   : > { %v2300_v15 = vadd.f32 %v4628_v12, %v2299_v14  ;;  %v5067_v16 = vpop.f32.mrb[37].mxu1  ;;  %v4645_v14 = vld [vmem:[%s5563_s19] ss:$0 sm:$0xff] }
 0xc97   : > { %v2302_v18 = vpop.f32.mrb[38].mxu1  ;;  %v4646_v16 = vld [vmem:[%s5568_s24] ss:$0 sm:$0xff] }
 0xc98   : > { %v2371_v19 = vpack.c.bf16 %v2300_v15, %v2300_v15  ;;  %v5068_v20 = vpop.f32.mrb[39].mxu1 }
 0xc99   : > { %v5385_v20 = vld [vmem:[%s5583_s12 + $0x10] sm:$0xff]  }
 0xc9a   : > { %v2376_v21 = vsel %vm1309_vm2, %v2371_v19, 0 }
 0xc9b   : > { %5078 = vmatpush3.bf16.xpose.msra.mxu1 %v2376_v21  ;;  %v5386_v21 = vld [vmem:[%s5583_s12 + $0x18] sm:$0xff]  }
 0xc9c   : > { %5089 = vmatprep.subr.bf16.mxu1 %v5503_v1 }
 0xca2   : > { %5080 = vmatmul.mubr.msk.bf16.vlgmr.msra.gmra.mrb[40].mxu1 %vm1309_vm2, %v2370_v7 }
 0xca3   : > { %5091 = vmatprep.mubr.msk.bf16.mxu1 %vm5504_vm0, %v5503_v1  ;;  %5090 = vmatpush3.bf16.msra.mxu1 %v2485_v44  ;;  %v5390_v44 = vld [vmem:[%s6225_s15 + $0x8] sm:$0xff]  }
 0xca4   : > { %5103 = vmatprep.subr.bf16.mxu1 %v5503_v1 }
 0xd75   : > { %v2412_v24 = vpop.f32.mrb[40].mxu1 }
 0xd76   : > { %v2418_v25 = vsel %vm5751_vm3, -1e+30, %v2412_v24  ;;  %v5081_v26 = vpop.f32.mrb[41].mxu1 }
 0xd77   : > { %v2415_v27 = vpop.f32.mrb[42].mxu1  ;;  %v2419_v28 = vsel %vm1309_vm2, %v2418_v25, -inf }
 0xd78   : > { %2420 = vmax.xlane.f32.xlu0 %v2419_v28  ;;  %v5082_v29 = vpop.f32.mrb[43].mxu1  ;;  %v4651_v28 = vld [vmem:[%s6223_s10] ss:$0 sm:$0xff]  ;;  %s6234_s10 = sld [smem:[#allocation16_spill]] }
 0xe05   : > { %v2421_v30 = vpop.xlane.xlu0 %2420 }
 0xe06   : > { %v2422_v31 = vsub.f32 %v2418_v25, %v2421_v30 }
 0xe08   : > { %v2423_v33 = vmul.f32 1.442695, %v2422_v31 }
 0xe0a   : > { %5431 = vpow2.f32 %v2423_v33 }
 0xe14   : > { %v5432_v10 = vpop.eup %5431 }
 0xe15   : > { %v2425_v34 = vsel %vm1309_vm2, %v5432_v10, 0.0 }
 0xe16   : > { %2426 = vadd.xlane.f32.xlu1 %v2425_v34 }
 0xea3   : > { %v2427_v45 = vpop.xlane.xlu1 %2426 }
 0xea4   : > { %5433 = vrcp.f32 %v2427_v45 }
 0xeae   : > { %v5434_v46 = vpop.eup %5433 }
 0xeaf   : > { %v2429_v47 = vmul.f32 %v5434_v46, %v5432_v10 }
 0xeb1   : > { %v2430_v48 = vpack.c.bf16 %v2429_v47, %v2429_v47 }
 0xeb3   : > { %5086 = vmatmul.mubr.msk.bf16.vlgmr.msra.gmra.mrb[44].mxu0 %vm1309_vm2, %v2430_v48 }
 0xeb4   : > { %5099 = vmatprep.mubr.msk.bf16.mxu0 %vm5504_vm0, %v5503_v1  ;;  %5096 = vmatpush3.bf16.msra.mxu0 %v5381_v3 }
 0xeb5   : > { %5097 = vmatprep.subr.bf16.mxu0 %v5503_v1 }
 0xf86   : > { %v2472_v49 = vpop.f32.mrb[44].mxu0 }
 0xf87   : > { %v2478_v50 = vpack.c.bf16 %v2472_v49, %v2472_v49  ;;  %v5087_v51 = vpop.f32.mrb[45].mxu0  ;;  %v4657_v49 = vld [vmem:[%s6226_s16] ss:$0 sm:$0xff]  ;;  %s6235_s16 = sld [smem:[#allocation18_spill]] }
 0xf88   : > { %v2475_v52 = vpop.f32.mrb[46].mxu0  ;;  %v4658_v51 = vld [vmem:[%s6227_s18] ss:$0 sm:$0xff]  ;;  %s6236_s18 = sld [smem:[#allocation14_spill]] }
 0xf89   : > { %v5088_v53 = vpop.f32.mrb[47].mxu0  ;;  %5092 = vmatmul.mubr.msk.bf16.vlgmr.msra.gmra.mrb[44].mxu1 %vm1309_vm2, %v2478_v50 }
 0xf8a   : > { %5111 = vmatprep.mubr.msk.bf16.mxu1 %vm5504_vm0, %v5503_v1 }
0x105c   : > { %v2521_v54 = vpop.f32.mrb[44].mxu1 }
0x105d   : > { %v2527_v55 = vadd.f32 %v2521_v54, %v5888_v4  ;;  %v5093_v56 = vpop.f32.mrb[45].mxu1  ;;  %v5382_v4 = vld [vmem:[%s5573_s30 + $0x8] sm:$0xff]   ;;  %v5391_v54 = vld [vmem:[%s6228_s22] sm:$0xff]  }
0x105e   : > { %v2524_v57 = vpop.f32.mrb[46].mxu1  ;;  %5098 = vmatpush3.bf16.msra.mxu0 %v5382_v4  ;;  %v5392_v56 = vld [vmem:[%s6228_s22 + $0x8] sm:$0xff]  }
0x105f   : > { %v5094_v58 = vpop.f32.mrb[47].mxu1  ;;  %v2528_v59 = vadd.f32 %v2527_v55, %v5722_v9  ;;  %5115 = vmatprep.subr.bf16.mxu0 %v5503_v1  ;;  %v5383_v9 = vld [vmem:[%s5583_s12] sm:$0xff]  }
0x1060   : > { %5104 = vmatpush3.bf16.msra.mxu1 %v5383_v9  ;;  %v4668_v57 = vld [vmem:[%s6229_s23] ss:$0 sm:$0xff] }
0x1061   : > { %v2531_v60 = vsel %vm1136_vm1, %v2528_v59, 0.0  ;;  %5105 = vmatprep.subr.bf16.mxu1 %v5503_v1 }
0x1062   : > { %2532 = vadd.xlane.f32.xlu0 %v2531_v60 }
0x1064   : > { %5106 = vmatpush3.bf16.msra.mxu1 %v5384_v5  ;;  %v4664_v5 = vld [vmem:[%s6230_s26] ss:$0 sm:$0xff] }
0x1065   : > { %5107 = vmatprep.subr.bf16.mxu1 %v5503_v1 }
0x1068   : > { %5108 = vmatpush3.bf16.msra.mxu1 %v5385_v20 }
0x1069   : > { %5109 = vmatprep.subr.bf16.mxu1 %v5503_v1 }
0x106c   : > { %5110 = vmatpush3.bf16.msra.mxu1 %v5386_v21 }
0x106d   : > { %5131 = vmatprep.subr.bf16.mxu1 %v5503_v1 }
0x10ef   : > { %v2533_v61 = vpop.xlane.xlu0 %2532 }
0x10f0   : > { %v2535_v62 = vmul.f32 0.03125, %v2533_v61 }
0x10f2   : > { %v2536_v63 = vsub.f32 %v2528_v59, %v2535_v62 }
0x10f4   : > { %v2537_v0 = vmul.f32 %v2536_v63, %v2536_v63 }
0x10f6   : > { %v2538_v2 = vsel %vm1136_vm1, %v2537_v0, 0.0 }
0x10f7   : > { %2539 = vadd.xlane.f32.xlu1 %v2538_v2 }
0x1184   : > { %v2540_v6 = vpop.xlane.xlu1 %2539 }
0x1185   : > { %v2541_v11 = vmul.f32 0.03125, %v2540_v6  ;;  %v4660_v6 = vld [vmem:[%s6231_s0] ss:$0 sm:$0xff] }
0x1187   : > { %v2542_v12 = vadd.f32 1e-05, %v2541_v11 }
0x1189   : > { %5435 = vrsqrt.f32 %v2542_v12 }
0x1193   : > { %v5436_v13 = vpop.eup %5435 }
0x1194   : > { %v2544_v15 = vmul.f32 %v5436_v13, %v2536_v63 }
0x1196   : > { %v2551_v17 = vmul.f32 %v4645_v14, %v2544_v15 }
0x1198   : > { %v2558_v18 = vadd.f32 %v4646_v16, %v2551_v17 }
0x119a   : > { %v2559_v19 = vpack.c.bf16 %v2558_v18, %v2558_v18 }
0x119c   : > { %5100 = vmatmul.mubr.msk.bf16.vlgmr.msra.gmra.mrb[48].mxu0 %vm1136_vm1, %v2559_v19 }
0x119d   : > { %5119 = vmatprep.mubr.msk.bf16.mxu0 %vm5504_vm0, %v5503_v1  ;;  %5116 = vmatpush3.bf16.msra.mxu0 %v5387_v41  ;;  %v5397_v41 = vld [vmem:[%s6228_s22 + $0x10] sm:$0xff]  }
0x119e   : > { %5117 = vmatprep.subr.bf16.mxu0 %v5503_v1 }
0x11a1   : > { %5118 = vmatpush3.bf16.msra.mxu0 %v5389_v43 }
0x11a2   : > { %5123 = vmatprep.subr.bf16.mxu0 %v5503_v1 }
0x126f   : > { %v2620_v7 = vpop.f32.mrb[48].mxu0 }
0x1270   : > { %v2621_v23 = vadd.f32 %v4647_v22, %v2620_v7  ;;  %v5101_v8 = vpop.f32.mrb[49].mxu0 }
0x1271   : > { %v2623_v24 = vpop.f32.mrb[50].mxu0 }
0x1272   : > { %v2626_v25 = vmax.f32 %v2621_v23, 0.0  ;;  %v5102_v26 = vpop.f32.mrb[51].mxu0 }
0x1274   : > { %v2627_v27 = vpack.c.bf16 %v2626_v25, %v2626_v25 }
0x1276   : > { %5112 = vmatmul.mubr.msk.bf16.vlgmr.msra.gmra.mrb[48].mxu1 %vm2667_vm5, %v2627_v27 }
0x1277   : > { %5135 = vmatprep.mubr.msk.bf16.mxu1 %vm5504_vm0, %v5503_v1  ;;  %5132 = vmatpush3.bf16.msra.mxu1 %v5388_v42 }
0x1278   : > { %5133 = vmatprep.subr.bf16.mxu1 %v5503_v1 }
0x127b   : > { %5134 = vmatpush3.bf16.msra.mxu1 %v5390_v44 }
0x127c   : > { %5145 = vmatprep.subr.bf16.mxu1 %v5503_v1 }
0x1349   : > { %v2705_v29 = vpop.f32.mrb[48].mxu1 }
0x134a   : > { %v2706_v30 = vadd.f32 %v4651_v28, %v2705_v29  ;;  %v5113_v31 = vpop.f32.mrb[49].mxu1 }
0x134b   : > { %v2708_v33 = vpop.f32.mrb[50].mxu1 }
0x134c   : > { %v5114_v10 = vpop.f32.mrb[51].mxu1  ;;  %v2711_v34 = vadd.f32 %v2706_v30, %v2558_v18  ;;  %v3051_v30 = vld [vmem:[%s6232_s2] sm:$0xf] }
0x134d   : > { %v3056_v31 = vsel %vm1373_vm4, %v3051_v30, 0 }
0x134e   : > { %v2714_v35 = vsel %vm1136_vm1, %v2711_v34, 0.0 }
0x134f   : > { %2715 = vadd.xlane.f32.xlu0 %v2714_v35  ;;  %v5393_v35 = vld [vmem:[%s6224_s11 + $0x10] sm:$0xff]  }
0x13dc   : > { %v2716_v36 = vpop.xlane.xlu0 %2715 }
0x13dd   : > { %v2717_v37 = vmul.f32 0.03125, %v2716_v36 }
0x13df   : > { %v2718_v38 = vsub.f32 %v2711_v34, %v2717_v37  ;;  %v5394_v37 = vld [vmem:[%s6224_s11 + $0x18] sm:$0xff]  }
0x13e1   : > { %v2719_v39 = vmul.f32 %v2718_v38, %v2718_v38 }
0x13e3   : > { %v2720_v40 = vsel %vm1136_vm1, %v2719_v39, 0.0  ;;  %v5396_v39 = vld [vmem:[%s6225_s15 + $0x18] sm:$0xff]  }
0x13e4   : > { %2721 = vadd.xlane.f32.xlu1 %v2720_v40 }
0x1471   : > { %v2722_v45 = vpop.xlane.xlu1 %2721 }
0x1472   : > { %v2723_v46 = vmul.f32 0.03125, %v2722_v45 }
0x1474   : > { %v2724_v47 = vadd.f32 1e-05, %v2723_v46  ;;  %v5398_v46 = vld [vmem:[%s6228_s22 + $0x18] sm:$0xff]  }
0x1476   : > { %5437 = vrsqrt.f32 %v2724_v47 }
0x1480   : > { %v5438_v48 = vpop.eup %5437 }
0x1481   : > { %v2726_v50 = vmul.f32 %v5438_v48, %v2718_v38  ;;  %v5395_v38 = vld [vmem:[%s6225_s15 + $0x10] sm:$0xff]  }
0x1483   : > { %v2733_v52 = vmul.f32 %v4657_v49, %v2726_v50 }
0x1485   : > { %v5959_v53 = vadd.f32 %v4658_v51, %v2733_v52  ;;  %v4698_v51 = vld [vmem:[%s6229_s23 + $0x1] ss:$0 sm:$0xff] }
0x1487   : > { %v5964_v55 = vpack.c.bf16 %v5959_v53, %v5959_v53 }
0x1489   : > { %5120 = vmatmul.mubr.msk.bf16.vlgmr.msra.gmra.mrb[52].mxu0 %vm1136_vm1, %v5964_v55  ;;  %5136 = vmatmul.mubr.msk.bf16.vlgmr.msra.gmra.mrb[52].mxu1 %vm1136_vm1, %v5964_v55 }
0x148a   : > { %5124 = vmatpush3.bf16.msra.mxu0 %v5391_v54  ;;  %5127 = vmatprep.mubr.msk.bf16.mxu0 %vm5504_vm0, %v5503_v1 }
0x148b   : > { %5125 = vmatprep.subr.bf16.mxu0 %v5503_v1  ;;  %5147 = vmatprep.mubr.msk.bf16.mxu1 %vm5504_vm0, %v5503_v1 }
0x148e   : > { %5126 = vmatpush3.bf16.msra.mxu0 %v5392_v56 }
0x148f   : > { %5139 = vmatprep.subr.bf16.mxu0 %v5503_v1 }
0x1491   : > { %5128 = vmatmul.mubr.msk.bf16.vlgmr.msra.gmra.mrb[56].mxu0 %vm1136_vm1, %v5964_v55 }
0x1492   : > { %5141 = vmatprep.mubr.msk.bf16.mxu0 %vm5504_vm0, %v5503_v1 }
0x155c   : > { %v2809_v58 = vpop.f32.mrb[52].mxu0  ;;  %v2936_v59 = vpop.f32.mrb[52].mxu1 }
0x155d   : > { %v2937_v60 = vadd.f32 %v4668_v57, %v2936_v59  ;;  %v5121_v61 = vpop.f32.mrb[53].mxu0  ;;  %v5137_v62 = vpop.f32.mrb[53].mxu1  ;;  %v2810_v15 = vadd.f32 %v4660_v6, %v2809_v58 }
0x155e   : > { %v2812_v63 = vpop.f32.mrb[54].mxu0  ;;  %v2939_v0 = vpop.f32.mrb[54].mxu1 }
0x155f   : > { %v3003_v2 = vpack.c.bf16 %v2937_v60, %v2937_v60  ;;  %v5122_v3 = vpop.f32.mrb[55].mxu0  ;;  %v5138_v4 = vpop.f32.mrb[55].mxu1  ;;  %v2815_v19 = vmul.f32 0.35355338, %v2810_v15 }
0x1560   : > { %v4680_v3 = vld [vmem:[%s6231_s0 + $0x1] ss:$0 sm:$0xff] }
0x1561   : > { %v3008_v9 = vsel %vm1373_vm4, %v3003_v2, 0  ;;  %v2942_v20 = vpack.c.bf16 %v2815_v19, %v2815_v19  ;;  %v4689_v2 = vld [vmem:[%s6230_s26 + $0x1] ss:$0 sm:$0xff] }
0x1562   : > { %5146 = vmatpush3.bf16.msra.mxu1 %v3008_v9 }
0x1563   : > { %5157 = vmatprep.subr.bf16.mxu1 %v5503_v1 }
0x1564   : > { %v2873_v11 = vpop.f32.mrb[56].mxu0 }
0x1565   : > { %v2874_v12 = vadd.f32 %v4664_v5, %v2873_v11  ;;  %v5129_v13 = vpop.f32.mrb[57].mxu0 }
0x1566   : > { %v2876_v14 = vpop.f32.mrb[58].mxu0 }
0x1567   : > { %v2943_v16 = vpack.c.bf16 %v2874_v12, %v2874_v12  ;;  %v5130_v17 = vpop.f32.mrb[59].mxu0 }
0x1569   : > { %v2948_v18 = vsel %vm1309_vm2, %v2943_v16, 0 }
0x156a   : > { %5140 = vmatpush3.bf16.xpose.msra.mxu0 %v2948_v18 }
0x156b   : > { %5151 = vmatprep.subr.bf16.mxu0 %v5503_v1 }
0x1571   : > { %5142 = vmatmul.mubr.msk.bf16.vlgmr.msra.gmra.mrb[60].mxu0 %vm1309_vm2, %v2942_v20 }
0x1572   : > { %5153 = vmatprep.mubr.msk.bf16.mxu0 %vm5504_vm0, %v5503_v1  ;;  %5152 = vmatpush3.bf16.msra.mxu0 %v3056_v31  ;;  %v5399_v31 = vld [vmem:[%s6224_s11 + $0x20] sm:$0xff]  }
0x1573   : > { %5165 = vmatprep.subr.bf16.mxu0 %v5503_v1 }
0x1644   : > { %v2984_v21 = vpop.f32.mrb[60].mxu0 }
0x1645   : > { %v2990_v22 = vsel %vm5751_vm3, -1e+30, %v2984_v21  ;;  %v5143_v7 = vpop.f32.mrb[61].mxu0 }
0x1646   : > { %v2987_v23 = vpop.f32.mrb[62].mxu0  ;;  %v2991_v8 = vsel %vm1309_vm2, %v2990_v22, -inf }
0x1647   : > { %2992 = vmax.xlane.f32.xlu0 %v2991_v8  ;;  %v5144_v24 = vpop.f32.mrb[63].mxu0 }
0x16d4   : > { %v2993_v25 = vpop.xlane.xlu0 %2992 }
0x16d5   : > { %v2994_v26 = vsub.f32 %v2990_v22, %v2993_v25 }
0x16d7   : > { %v2995_v27 = vmul.f32 1.442695, %v2994_v26  ;;  %v4704_v26 = vld [vmem:[%s6232_s2 + $0x4] sm:$0xf] }
0x16d9   : > { %5439 = vpow2.f32 %v2995_v27  ;;  %v3410_v27 = vsel %vm1373_vm4, %v4704_v26, 0 }
0x16e3   : > { %v5440_v28 = vpop.eup %5439 }
0x16e4   : > { %v2997_v29 = vsel %vm1309_vm2, %v5440_v28, 0.0 }
0x16e5   : > { %2998 = vadd.xlane.f32.xlu1 %v2997_v29 }
0x1772   : > { %v2999_v33 = vpop.xlane.xlu1 %2998 }
0x1773   : > { %5441 = vrcp.f32 %v2999_v33 }
0x177d   : > { %v5442_v10 = vpop.eup %5441 }
0x177e   : > { %v3001_v34 = vmul.f32 %v5442_v10, %v5440_v28  ;;  %v5400_v10 = vld [vmem:[%s6224_s11 + $0x28] sm:$0xff]  }
0x1780   : > { %v3002_v36 = vpack.c.bf16 %v3001_v34, %v3001_v34  ;;  %v5401_v34 = vld [vmem:[%s6225_s15 + $0x20] sm:$0xff]  }
0x1782   : > { %5148 = vmatmul.mubr.msk.bf16.vlgmr.msra.gmra.mrb[56].mxu1 %vm1309_vm2, %v3002_v36 }
0x1783   : > { %5158 = vmatpush3.bf16.msra.mxu1 %v5393_v35  ;;  %5161 = vmatprep.mubr.msk.bf16.mxu1 %vm5504_vm0, %v5503_v1  ;;  %v5402_v35 = vld [vmem:[%s6225_s15 + $0x28] sm:$0xff]  }
0x1784   : > { %5159 = vmatprep.subr.bf16.mxu1 %v5503_v1 }
0x1787   : > { %5160 = vmatpush3.bf16.msra.mxu1 %v5394_v37  ;;  %v5403_v37 = vld [vmem:[%s6228_s22 + $0x20] sm:$0xff]  }
0x1788   : > { %5173 = vmatprep.subr.bf16.mxu1 %v5503_v1 }
0x178a   : > { %5162 = vmatmul.mubr.msk.bf16.vlgmr.msra.gmra.mrb[60].mxu1 %vm1136_vm1, %v5964_v55 }
0x178b   : > { %5174 = vmatpush3.bf16.msra.mxu1 %v5395_v38  ;;  %5177 = vmatprep.mubr.msk.bf16.mxu1 %vm5504_vm0, %v5503_v1 }
0x178c   : > { %5175 = vmatprep.subr.bf16.mxu1 %v5503_v1 }
0x178f   : > { %5176 = vmatpush3.bf16.msra.mxu1 %v5396_v39 }
0x1790   : > { %5187 = vmatprep.subr.bf16.mxu1 %v5503_v1 }
0x1792   : > { %5178 = vmatmul.mubr.msk.bf16.vlgmr.msra.gmra.mrb[64].mxu1 %vm1136_vm1, %v5964_v55 }
0x1793   : > { %5189 = vmatprep.mubr.msk.bf16.mxu1 %vm5504_vm0, %v5503_v1 }
0x1855   : > { %v3044_v40 = vpop.f32.mrb[56].mxu1 }
0x1856   : > { %v3050_v42 = vpack.c.bf16 %v3044_v40, %v3044_v40  ;;  %v5149_v43 = vpop.f32.mrb[57].mxu1 }
0x1857   : > { %v3047_v44 = vpop.f32.mrb[58].mxu1 }
0x1858   : > { %v5150_v45 = vpop.f32.mrb[59].mxu1  ;;  %5154 = vmatmul.mubr.msk.bf16.vlgmr.msra.gmra.mrb[64].mxu0 %vm1309_vm2, %v3050_v42  ;;  %v5404_v42 = vld [vmem:[%s6228_s22 + $0x28] sm:$0xff]  }
0x1859   : > { %5166 = vmatpush3.bf16.msra.mxu0 %v5397_v41  ;;  %5169 = vmatprep.mubr.msk.bf16.mxu0 %vm5504_vm0, %v5503_v1 }
0x185a   : > { %5167 = vmatprep.subr.bf16.mxu0 %v5503_v1 }
0x185d   : > { %v3158_v47 = vpop.f32.mrb[60].mxu1  ;;  %5168 = vmatpush3.bf16.msra.mxu0 %v5398_v46 }
0x185e   : > { %v5163_v48 = vpop.f32.mrb[61].mxu1  ;;  %5181 = vmatprep.subr.bf16.mxu0 %v5503_v1  ;;  %v3159_v11 = vadd.f32 %v4680_v3, %v3158_v47  ;;  %v4729_v47 = vld [vmem:[%s6229_s23 + $0x2] ss:$0 sm:$0xff] }
0x185f   : > { %v3161_v49 = vpop.f32.mrb[62].mxu1  ;;  %v4711_v3 = vld [vmem:[%s6231_s0 + $0x2] ss:$0 sm:$0xff] }
0x1860   : > { %v5164_v50 = vpop.f32.mrb[63].mxu1  ;;  %5170 = vmatmul.mubr.msk.bf16.vlgmr.msra.gmra.mrb[68].mxu0 %vm1136_vm1, %v5964_v55  ;;  %v3164_v15 = vmul.f32 0.35355338, %v3159_v11 }
0x1861   : > { %5183 = vmatprep.mubr.msk.bf16.mxu0 %vm5504_vm0, %v5503_v1 }
0x1862   : > { %v3295_v16 = vpack.c.bf16 %v3164_v15, %v3164_v15 }
0x1865   : > { %v3289_v52 = vpop.f32.mrb[64].mxu1 }
0x1866   : > { %v3290_v54 = vadd.f32 %v4698_v51, %v3289_v52  ;;  %v5179_v56 = vpop.f32.mrb[65].mxu1 }
0x1867   : > { %v3292_v57 = vpop.f32.mrb[66].mxu1 }
0x1868   : > { %v3356_v58 = vpack.c.bf16 %v3290_v54, %v3290_v54  ;;  %v5180_v59 = vpop.f32.mrb[67].mxu1  ;;  %v4659_v57 = vld [vmem:[%s6233_s7] ss:$0 sm:$0xff]  ;;  %s6237_s7 = sld [smem:[#allocation15_spill]] }
0x186a   : > { %v3361_v60 = vsel %vm1373_vm4, %v3356_v58, 0 }
0x186b   : > { %5188 = vmatpush3.bf16.msra.mxu1 %v3361_v60 }
0x186c   : > { %5199 = vmatprep.subr.bf16.mxu1 %v5503_v1 }
0x192b   : > { %v6031_v61 = vpop.f32.mrb[64].mxu0 }
0x192c   : > { %v5155_v62 = vpop.f32.mrb[65].mxu0  ;;  %v3098_v58 = vadd.f32 %v4659_v57, %v6031_v61 }
0x192d   : > { %v3095_v63 = vpop.f32.mrb[66].mxu0 }
0x192e   : > { %v5156_v0 = vpop.f32.mrb[67].mxu0 }
0x1933   : > { %v3224_v4 = vpop.f32.mrb[68].mxu0 }
0x1934   : > { %v3225_v9 = vadd.f32 %v4689_v2, %v3224_v4  ;;  %v5171_v5 = vpop.f32.mrb[69].mxu0  ;;  %v4720_v2 = vld [vmem:[%s6230_s26 + $0x2] ss:$0 sm:$0xff] }
0x1935   : > { %v3227_v6 = vpop.f32.mrb[70].mxu0 }
0x1936   : > { %v3296_v12 = vpack.c.bf16 %v3225_v9, %v3225_v9  ;;  %v5172_v13 = vpop.f32.mrb[71].mxu0 }
0x1938   : > { %v3301_v14 = vsel %vm1309_vm2, %v3296_v12, 0 }
0x1939   : > { %5182 = vmatpush3.bf16.xpose.msra.mxu0 %v3301_v14 }
0x193a   : > { %5193 = vmatprep.subr.bf16.mxu0 %v5503_v1 }
0x1940   : > { %5184 = vmatmul.mubr.msk.bf16.vlgmr.msra.gmra.mrb[72].mxu0 %vm1309_vm2, %v3295_v16 }
0x1941   : > { %5195 = vmatprep.mubr.msk.bf16.mxu0 %vm5504_vm0, %v5503_v1  ;;  %5194 = vmatpush3.bf16.msra.mxu0 %v3410_v27 }
0x1942   : > { %5207 = vmatprep.subr.bf16.mxu0 %v5503_v1 }
0x1a13   : > { %v3337_v17 = vpop.f32.mrb[72].mxu0 }
0x1a14   : > { %v3343_v18 = vsel %vm5751_vm3, -1e+30, %v3337_v17  ;;  %v5185_v19 = vpop.f32.mrb[73].mxu0 }
0x1a15   : > { %v3340_v20 = vpop.f32.mrb[74].mxu0  ;;  %v3344_v21 = vsel %vm1309_vm2, %v3343_v18, -inf }
0x1a16   : > { %3345 = vmax.xlane.f32.xlu0 %v3344_v21  ;;  %v5186_v22 = vpop.f32.mrb[75].mxu0 }
0x1aa3   : > { %v3346_v7 = vpop.xlane.xlu0 %3345 }
0x1aa4   : > { %v3347_v23 = vsub.f32 %v3343_v18, %v3346_v7 }
0x1aa6   : > { %v3348_v8 = vmul.f32 1.442695, %v3347_v23 }
0x1aa8   : > { %5443 = vpow2.f32 %v3348_v8 }
0x1ab2   : > { %v5444_v24 = vpop.eup %5443 }
0x1ab3   : > { %v3350_v25 = vsel %vm1309_vm2, %v5444_v24, 0.0 }
0x1ab4   : > { %3351 = vadd.xlane.f32.xlu1 %v3350_v25  ;;  %v4735_v25 = vld [vmem:[%s6232_s2 + $0x8] sm:$0xf] }
0x1ab5   : > { %v3764_v26 = vsel %vm1373_vm4, %v4735_v25, 0 }
0x1b41   : > { %v3352_v28 = vpop.xlane.xlu1 %3351 }
0x1b42   : > { %5445 = vrcp.f32 %v3352_v28 }
0x1b4c   : > { %v5446_v29 = vpop.eup %5445 }
0x1b4d   : > { %v3354_v30 = vmul.f32 %v5446_v29, %v5444_v24 }
0x1b4f   : > { %v3355_v33 = vpack.c.bf16 %v3354_v30, %v3354_v30  ;;  %v5405_v30 = vld [vmem:[%s6224_s11 + $0x30] sm:$0xff]  }
0x1b51   : > { %5190 = vmatmul.mubr.msk.bf16.vlgmr.msra.gmra.mrb[68].mxu1 %vm1309_vm2, %v3355_v33  ;;  %v5406_v33 = vld [vmem:[%s6224_s11 + $0x38] sm:$0xff]  }
0x1b52   : > { %5200 = vmatpush3.bf16.msra.mxu1 %v5399_v31  ;;  %5203 = vmatprep.mubr.msk.bf16.mxu1 %vm5504_vm0, %v5503_v1 }
0x1b53   : > { %5201 = vmatprep.subr.bf16.mxu1 %v5503_v1 }
0x1b56   : > { %5202 = vmatpush3.bf16.msra.mxu1 %v5400_v10  ;;  %v5407_v10 = vld [vmem:[%s6225_s15 + $0x30] sm:$0xff]  }
0x1b57   : > { %5215 = vmatprep.subr.bf16.mxu1 %v5503_v1 }
0x1b59   : > { %5204 = vmatmul.mubr.msk.bf16.vlgmr.msra.gmra.mrb[72].mxu1 %vm1136_vm1, %v5964_v55 }
0x1b5a   : > { %5216 = vmatpush3.bf16.msra.mxu1 %v5401_v34  ;;  %5219 = vmatprep.mubr.msk.bf16.mxu1 %vm5504_vm0, %v5503_v1  ;;  %v5408_v34 = vld [vmem:[%s6225_s15 + $0x38] sm:$0xff]  }
0x1b5b   : > { %5217 = vmatprep.subr.bf16.mxu1 %v5503_v1 }
0x1b5e   : > { %5218 = vmatpush3.bf16.msra.mxu1 %v5402_v35 }
0x1b5f   : > { %5229 = vmatprep.subr.bf16.mxu1 %v5503_v1 }
0x1b61   : > { %5220 = vmatmul.mubr.msk.bf16.vlgmr.msra.gmra.mrb[76].mxu1 %vm1136_vm1, %v5964_v55 }
0x1b62   : > { %5231 = vmatprep.mubr.msk.bf16.mxu1 %vm5504_vm0, %v5503_v1 }
0x1c24   : > { %v3397_v36 = vpop.f32.mrb[68].mxu1 }
0x1c25   : > { %v3403_v38 = vpack.c.bf16 %v3397_v36, %v3397_v36  ;;  %v5191_v39 = vpop.f32.mrb[69].mxu1  ;;  %v5409_v36 = vld [vmem:[%s6228_s22 + $0x30] sm:$0xff]  }
0x1c26   : > { %v3400_v40 = vpop.f32.mrb[70].mxu1 }
0x1c27   : > { %v5192_v41 = vpop.f32.mrb[71].mxu1  ;;  %5196 = vmatmul.mubr.msk.bf16.vlgmr.msra.gmra.mrb[76].mxu0 %vm1309_vm2, %v3403_v38 }
0x1c28   : > { %5208 = vmatpush3.bf16.msra.mxu0 %v5403_v37  ;;  %5211 = vmatprep.mubr.msk.bf16.mxu0 %vm5504_vm0, %v5503_v1  ;;  %v5410_v41 = vld [vmem:[%s6228_s22 + $0x38] sm:$0xff]  }
0x1c29   : > { %5209 = vmatprep.subr.bf16.mxu0 %v5503_v1 }
0x1c2c   : > { %v3512_v43 = vpop.f32.mrb[72].mxu1  ;;  %5210 = vmatpush3.bf16.msra.mxu0 %v5404_v42 }
0x1c2d   : > { %v5205_v44 = vpop.f32.mrb[73].mxu1  ;;  %5223 = vmatprep.subr.bf16.mxu0 %v5503_v1  ;;  %v3513_v11 = vadd.f32 %v4711_v3, %v3512_v43 }
0x1c2e   : > { %v3515_v45 = vpop.f32.mrb[74].mxu1 }
0x1c2f   : > { %v5206_v46 = vpop.f32.mrb[75].mxu1  ;;  %5212 = vmatmul.mubr.msk.bf16.vlgmr.msra.gmra.mrb[80].mxu0 %vm1136_vm1, %v5964_v55  ;;  %v3518_v15 = vmul.f32 0.35355338, %v3513_v11 }
0x1c30   : > { %5225 = vmatprep.mubr.msk.bf16.mxu0 %vm5504_vm0, %v5503_v1  ;;  %v4760_v46 = vld [vmem:[%s6229_s23 + $0x3] ss:$0 sm:$0xff] }
0x1c31   : > { %v3649_v61 = vpack.c.bf16 %v3518_v15, %v3518_v15 }
0x1c34   : > { %v3643_v48 = vpop.f32.mrb[76].mxu1 }
0x1c35   : > { %v3644_v49 = vadd.f32 %v4729_v47, %v3643_v48  ;;  %v5221_v50 = vpop.f32.mrb[77].mxu1 }
0x1c36   : > { %v3646_v51 = vpop.f32.mrb[78].mxu1 }
0x1c37   : > { %v3710_v52 = vpack.c.bf16 %v3644_v49, %v3644_v49  ;;  %v5222_v54 = vpop.f32.mrb[79].mxu1 }
0x1c39   : > { %v3715_v56 = vsel %vm1373_vm4, %v3710_v52, 0 }
0x1c3a   : > { %5230 = vmatpush3.bf16.msra.mxu1 %v3715_v56 }
0x1c3b   : > { %5241 = vmatprep.subr.bf16.mxu1 %v5503_v1 }
0x1cfa   : > { %v3446_v59 = vpop.f32.mrb[76].mxu0 }
0x1cfb   : > { %v6082_v60 = vadd.f32 %v3446_v59, %v3098_v58  ;;  %v5197_v62 = vpop.f32.mrb[77].mxu0 }
0x1cfc   : > { %v3449_v63 = vpop.f32.mrb[78].mxu0  ;;  %v4751_v62 = vld [vmem:[%s6230_s26 + $0x3] ss:$0 sm:$0xff] }
0x1cfd   : > { %v5198_v0 = vpop.f32.mrb[79].mxu0  ;;  %v4742_v63 = vld [vmem:[%s6231_s0 + $0x3] ss:$0 sm:$0xff]  ;;  %s6238_s0 = sld [smem:[#allocation17_spill]] }
0x1d02   : > { %v3578_v4 = vpop.f32.mrb[80].mxu0 }
0x1d03   : > { %v3579_v9 = vadd.f32 %v4720_v2, %v3578_v4  ;;  %v5213_v5 = vpop.f32.mrb[81].mxu0 }
0x1d04   : > { %v3581_v6 = vpop.f32.mrb[82].mxu0 }
0x1d05   : > { %v3650_v12 = vpack.c.bf16 %v3579_v9, %v3579_v9  ;;  %v5214_v13 = vpop.f32.mrb[83].mxu0 }
0x1d07   : > { %v3655_v14 = vsel %vm1309_vm2, %v3650_v12, 0 }
0x1d08   : > { %5224 = vmatpush3.bf16.xpose.msra.mxu0 %v3655_v14 }
0x1d09   : > { %5235 = vmatprep.subr.bf16.mxu0 %v5503_v1 }
0x1d0f   : > { %5226 = vmatmul.mubr.msk.bf16.vlgmr.msra.gmra.mrb[84].mxu0 %vm1309_vm2, %v3649_v61 }
0x1d10   : > { %5237 = vmatprep.mubr.msk.bf16.mxu0 %vm5504_vm0, %v5503_v1  ;;  %5236 = vmatpush3.bf16.msra.mxu0 %v3764_v26 }
0x1d11   : > { %5249 = vmatprep.subr.bf16.mxu0 %v5503_v1 }
0x1de2   : > { %v3691_v16 = vpop.f32.mrb[84].mxu0 }
0x1de3   : > { %v3697_v17 = vsel %vm5751_vm3, -1e+30, %v3691_v16  ;;  %v5227_v18 = vpop.f32.mrb[85].mxu0 }
0x1de4   : > { %v3694_v19 = vpop.f32.mrb[86].mxu0  ;;  %v3698_v20 = vsel %vm1309_vm2, %v3697_v17, -inf }
0x1de5   : > { %3699 = vmax.xlane.f32.xlu0 %v3698_v20  ;;  %v5228_v21 = vpop.f32.mrb[87].mxu0 }
0x1e72   : > { %v3700_v22 = vpop.xlane.xlu0 %3699 }
0x1e73   : > { %v3701_v7 = vsub.f32 %v3697_v17, %v3700_v22 }
0x1e75   : > { %v3702_v23 = vmul.f32 1.442695, %v3701_v7  ;;  %v4766_v7 = vld [vmem:[%s6232_s2 + $0xc] sm:$0xf]  ;;  %s6239_s2 = sld [smem:[#allocation19_spill]] }
0x1e77   : > { %5447 = vpow2.f32 %v3702_v23  ;;  %v4118_v23 = vsel %vm1373_vm4, %v4766_v7, 0 }
0x1e81   : > { %v5448_v8 = vpop.eup %5447 }
0x1e82   : > { %v3704_v24 = vsel %vm1309_vm2, %v5448_v8, 0.0 }
0x1e83   : > { %3705 = vadd.xlane.f32.xlu1 %v3704_v24 }
0x1f10   : > { %v3706_v27 = vpop.xlane.xlu1 %3705 }
0x1f11   : > { %5449 = vrcp.f32 %v3706_v27 }
0x1f1b   : > { %v5450_v28 = vpop.eup %5449 }
0x1f1c   : > { %v3708_v29 = vmul.f32 %v5450_v28, %v5448_v8 }
0x1f1e   : > { %v3709_v31 = vpack.c.bf16 %v3708_v29, %v3708_v29 }
0x1f20   : > { %5232 = vmatmul.mubr.msk.bf16.vlgmr.msra.gmra.mrb[80].mxu1 %vm1309_vm2, %v3709_v31 }
0x1f21   : > { %5242 = vmatpush3.bf16.msra.mxu1 %v5405_v30  ;;  %5245 = vmatprep.mubr.msk.bf16.mxu1 %vm5504_vm0, %v5503_v1 }
0x1f22   : > { %5243 = vmatprep.subr.bf16.mxu1 %v5503_v1 }
0x1f25   : > { %5244 = vmatpush3.bf16.msra.mxu1 %v5406_v33 }
0x1f26   : > { %5257 = vmatprep.subr.bf16.mxu1 %v5503_v1 }
0x1f28   : > { %5246 = vmatmul.mubr.msk.bf16.vlgmr.msra.gmra.mrb[84].mxu1 %vm1136_vm1, %v5964_v55 }
0x1f29   : > { %5258 = vmatpush3.bf16.msra.mxu1 %v5407_v10  ;;  %5261 = vmatprep.mubr.msk.bf16.mxu1 %vm5504_vm0, %v5503_v1 }
0x1f2a   : > { %5259 = vmatprep.subr.bf16.mxu1 %v5503_v1 }
0x1f2d   : > { %5260 = vmatpush3.bf16.msra.mxu1 %v5408_v34 }
0x1f2e   : > { %5271 = vmatprep.subr.bf16.mxu1 %v5503_v1 }
0x1f30   : > { %5262 = vmatmul.mubr.msk.bf16.vlgmr.msra.gmra.mrb[88].mxu1 %vm1136_vm1, %v5964_v55 }
0x1f31   : > { %5273 = vmatprep.mubr.msk.bf16.mxu1 %vm5504_vm0, %v5503_v1 }
0x1ff3   : > { %v3751_v35 = vpop.f32.mrb[80].mxu1 }
0x1ff4   : > { %v3757_v37 = vpack.c.bf16 %v3751_v35, %v3751_v35  ;;  %v5233_v38 = vpop.f32.mrb[81].mxu1 }
0x1ff5   : > { %v3754_v39 = vpop.f32.mrb[82].mxu1 }
0x1ff6   : > { %v5234_v40 = vpop.f32.mrb[83].mxu1  ;;  %5238 = vmatmul.mubr.msk.bf16.vlgmr.msra.gmra.mrb[88].mxu0 %vm1309_vm2, %v3757_v37 }
0x1ff7   : > { %5250 = vmatpush3.bf16.msra.mxu0 %v5409_v36  ;;  %5253 = vmatprep.mubr.msk.bf16.mxu0 %vm5504_vm0, %v5503_v1 }
0x1ff8   : > { %5251 = vmatprep.subr.bf16.mxu0 %v5503_v1 }
0x1ffb   : > { %v3866_v42 = vpop.f32.mrb[84].mxu1  ;;  %5252 = vmatpush3.bf16.msra.mxu0 %v5410_v41 }
0x1ffc   : > { %v5247_v43 = vpop.f32.mrb[85].mxu1  ;;  %5265 = vmatprep.subr.bf16.mxu0 %v5503_v1  ;;  %v3867_v9 = vadd.f32 %v4742_v63, %v3866_v42 }
0x1ffd   : > { %v3869_v44 = vpop.f32.mrb[86].mxu1  ;;  %v5411_v43 = vld [vmem:[%s6234_s10] sm:$0xff]  }
0x1ffe   : > { %v5248_v45 = vpop.f32.mrb[87].mxu1  ;;  %5254 = vmatmul.mubr.msk.bf16.vlgmr.msra.gmra.mrb[92].mxu0 %vm1136_vm1, %v5964_v55  ;;  %v3872_v12 = vmul.f32 0.35355338, %v3867_v9  ;;  %v5412_v44 = vld [vmem:[%s6234_s10 + $0x8] sm:$0xff]  }
0x1fff   : > { %5267 = vmatprep.mubr.msk.bf16.mxu0 %vm5504_vm0, %v5503_v1  ;;  %v5414_v45 = vld [vmem:[%s6235_s16 + $0x8] sm:$0xff]  }
0x2000   : > { %v4003_v13 = vpack.c.bf16 %v3872_v12, %v3872_v12 }
0x2003   : > { %v3997_v47 = vpop.f32.mrb[88].mxu1 }
0x2004   : > { %v3998_v48 = vadd.f32 %v4760_v46, %v3997_v47  ;;  %v5263_v49 = vpop.f32.mrb[89].mxu1 }
0x2005   : > { %v4000_v50 = vpop.f32.mrb[90].mxu1 }
0x2006   : > { %v4064_v51 = vpack.c.bf16 %v3998_v48, %v3998_v48  ;;  %v5264_v52 = vpop.f32.mrb[91].mxu1  ;;  %v4768_v50 = vld [vmem:[%s6236_s18] ss:$0 sm:$0xff] }
0x2007   : > { %v4769_v52 = vld [vmem:[%s6237_s7] ss:$0 sm:$0xff] }
0x2008   : > { %v4069_v54 = vsel %vm1373_vm4, %v4064_v51, 0 }
0x2009   : > { %5272 = vmatpush3.bf16.msra.mxu1 %v4069_v54 }
0x200a   : > { %5283 = vmatprep.subr.bf16.mxu1 %v5503_v1 }
0x20c9   : > { %v3800_v56 = vpop.f32.mrb[88].mxu0 }
0x20ca   : > { %v3806_v55 = vadd.f32 %v3800_v56, %v6082_v60  ;;  %v5239_v57 = vpop.f32.mrb[89].mxu0 }
0x20cb   : > { %v3803_v58 = vpop.f32.mrb[90].mxu0  ;;  %v5415_v57 = vld [vmem:[%s6235_s16 + $0x10] sm:$0xff]  }
0x20cc   : > { %v5240_v59 = vpop.f32.mrb[91].mxu0  ;;  %v5416_v58 = vld [vmem:[%s6235_s16 + $0x18] sm:$0xff]  }
0x20cd   : > { %v4770_v59 = vld [vmem:[%s6238_s0] ss:$0 sm:$0xff]  ;;  %s6240_s0 = sld [smem:[#allocation20_spill]] }
0x20d1   : > { %v3932_v0 = vpop.f32.mrb[92].mxu0 }
0x20d2   : > { %v3933_v2 = vadd.f32 %v4751_v62, %v3932_v0  ;;  %v5255_v3 = vpop.f32.mrb[93].mxu0 }
0x20d3   : > { %v3935_v4 = vpop.f32.mrb[94].mxu0 }
0x20d4   : > { %v4004_v5 = vpack.c.bf16 %v3933_v2, %v3933_v2  ;;  %v5256_v6 = vpop.f32.mrb[95].mxu0 }
0x20d6   : > { %v4009_v11 = vsel %vm1309_vm2, %v4004_v5, 0  ;;  %v4774_v5 = vld [vmem:[%s6239_s2] ss:$0 sm:$0xff]  ;;  %s4535_s2 = sshll.u32 %s6242_s1, 3 }
0x20d7   : > { %5266 = vmatpush3.bf16.xpose.msra.mxu0 %v4009_v11  ;;  %s1093_s18 = scalar_lea.vmem %s5693_s27, %s4535_s2 }
0x20d8   : > { %5277 = vmatprep.subr.bf16.mxu0 %v5503_v1 }
0x20de   : > { %5268 = vmatmul.mubr.msk.bf16.vlgmr.msra.gmra.mrb[96].mxu0 %vm1309_vm2, %v4003_v13 }
0x20df   : > { %5279 = vmatprep.mubr.msk.bf16.mxu0 %vm5504_vm0, %v5503_v1  ;;  %5278 = vmatpush3.bf16.msra.mxu0 %v4118_v23 }
0x20e0   : > { %5291 = vmatprep.subr.bf16.mxu0 %v5503_v1 }
0x21b1   : > { %v4045_v60 = vpop.f32.mrb[96].mxu0 }
0x21b2   : > { %v4051_v14 = vsel %vm5751_vm3, -1e+30, %v4045_v60  ;;  %v5269_v15 = vpop.f32.mrb[97].mxu0 }
0x21b3   : > { %v4048_v61 = vpop.f32.mrb[98].mxu0  ;;  %v4052_v16 = vsel %vm1309_vm2, %v4051_v14, -inf }
0x21b4   : > { %4053 = vmax.xlane.f32.xlu0 %v4052_v16  ;;  %v5270_v17 = vpop.f32.mrb[99].mxu0 }
0x2241   : > { %v4054_v18 = vpop.xlane.xlu0 %4053 }
0x2242   : > { %v4055_v19 = vsub.f32 %v4051_v14, %v4054_v18 }
0x2244   : > { %v4056_v20 = vmul.f32 1.442695, %v4055_v19 }
0x2246   : > { %5451 = vpow2.f32 %v4056_v20  ;;  %v5417_v20 = vld [vmem:[%s5683_s6] sm:$0xff]  }
0x2250   : > { %v5452_v21 = vpop.eup %5451 }
0x2251   : > { %v4058_v22 = vsel %vm1309_vm2, %v5452_v21, 0.0 }
0x2252   : > { %4059 = vadd.xlane.f32.xlu1 %v4058_v22 }
0x22df   : > { %v4060_v32 = vpop.xlane.xlu1 %4059 }
0x22e0   : > { %5453 = vrcp.f32 %v4060_v32 }
0x22ea   : > { %v5454_v8 = vpop.eup %5453 }
0x22eb   : > { %v4062_v24 = vmul.f32 %v5454_v8, %v5452_v21  ;;  %v5418_v21 = vld [vmem:[%s5683_s6 + $0x8] sm:$0xff]   ;;  %v4780_v8 = vld [vmem:[%s6240_s0] ss:$0 sm:$0xff] }
0x22ed   : > { %v4063_v25 = vpack.c.bf16 %v4062_v24, %v4062_v24 }
0x22ef   : > { %5274 = vmatmul.mubr.msk.bf16.vlgmr.msra.gmra.mrb[92].mxu1 %vm1309_vm2, %v4063_v25  ;;  %v4781_v25 = vld [vmem:[%s5678_s4] ss:$0 sm:$0xff] }
0x22f0   : > { %5287 = vmatprep.mubr.msk.bf16.mxu1 %vm5504_vm0, %v5503_v1  ;;  %5284 = vmatpush3.bf16.msra.mxu1 %v5411_v43 }
0x22f1   : > { %5285 = vmatprep.subr.bf16.mxu1 %v5503_v1 }
0x22f4   : > { %5286 = vmatpush3.bf16.msra.mxu1 %v5412_v44 }
0x22f5   : > { %5303 = vmatprep.subr.bf16.mxu1 %v5503_v1 }
0x23c2   : > { %v4105_v26 = vpop.f32.mrb[92].mxu1 }
0x23c3   : > { %v4111_v27 = vpack.c.bf16 %v4105_v26, %v4105_v26  ;;  %v5275_v28 = vpop.f32.mrb[93].mxu1 }
0x23c4   : > { %v4108_v29 = vpop.f32.mrb[94].mxu1 }
0x23c5   : > { %v5276_v30 = vpop.f32.mrb[95].mxu1  ;;  %5280 = vmatmul.mubr.msk.bf16.vlgmr.msra.gmra.mrb[100].mxu0 %vm1309_vm2, %v4111_v27  ;;  %v4782_v29 = vld [vmem:[%s5688_s20] ss:$0 sm:$0xff] }
0x23c6   : > { %5299 = vmatprep.mubr.msk.bf16.mxu0 %vm5504_vm0, %v5503_v1 }
0x2498   : > { %v4154_v31 = vpop.f32.mrb[100].mxu0 }
0x2499   : > { %v4160_v33 = vadd.f32 %v4154_v31, %v3806_v55  ;;  %v5281_v10 = vpop.f32.mrb[101].mxu0 }
0x249a   : > { %v4157_v34 = vpop.f32.mrb[102].mxu0 }
0x249b   : > { %v5282_v35 = vpop.f32.mrb[103].mxu0  ;;  %v4161_v36 = vadd.f32 %v4160_v33, %v5959_v53  ;;  %v5413_v53 = vld [vmem:[%s6235_s16] sm:$0xff]  }
0x249c   : > { %5292 = vmatpush3.bf16.msra.mxu0 %v5413_v53 }
0x249d   : > { %v4164_v37 = vsel %vm1136_vm1, %v4161_v36, 0.0  ;;  %5293 = vmatprep.subr.bf16.mxu0 %v5503_v1 }
0x249e   : > { %4165 = vadd.xlane.f32.xlu0 %v4164_v37 }
0x24a0   : > { %5294 = vmatpush3.bf16.msra.mxu0 %v5414_v45 }
0x24a1   : > { %5295 = vmatprep.subr.bf16.mxu0 %v5503_v1 }
0x24a4   : > { %5296 = vmatpush3.bf16.msra.mxu0 %v5415_v57 }
0x24a5   : > { %5297 = vmatprep.subr.bf16.mxu0 %v5503_v1 }
0x24a8   : > { %5298 = vmatpush3.bf16.msra.mxu0 %v5416_v58 }
0x252b   : > { %v4166_v38 = vpop.xlane.xlu0 %4165 }
0x252c   : > { %v4167_v39 = vmul.f32 0.03125, %v4166_v38 }
0x252e   : > { %v4168_v40 = vsub.f32 %v4161_v36, %v4167_v39 }
0x2530   : > { %v4169_v41 = vmul.f32 %v4168_v40, %v4168_v40 }
0x2532   : > { %v4170_v42 = vsel %vm1136_vm1, %v4169_v41, 0.0 }
0x2533   : > { %4171 = vadd.xlane.f32.xlu1 %v4170_v42 }
0x25c0   : > { %v4172_v46 = vpop.xlane.xlu1 %4171 }
0x25c1   : > { %v4173_v47 = vmul.f32 0.03125, %v4172_v46 }
0x25c3   : > { %v4174_v48 = vadd.f32 1e-05, %v4173_v47 }
0x25c5   : > { %5455 = vrsqrt.f32 %v4174_v48 }
0x25cf   : > { %v5456_v49 = vpop.eup %5455 }
0x25d0   : > { %v4176_v51 = vmul.f32 %v5456_v49, %v4168_v40 }
0x25d2   : > { %v4183_v54 = vmul.f32 %v4768_v50, %v4176_v51 }
0x25d4   : > { %v4190_v56 = vadd.f32 %v4769_v52, %v4183_v54 }
0x25d6   : > { %v4191_v55 = vpack.c.bf16 %v4190_v56, %v4190_v56 }
0x25d8   : > { %5288 = vmatmul.mubr.msk.bf16.vlgmr.msra.gmra.mrb[96].mxu1 %vm1136_vm1, %v4191_v55 }
0x25d9   : > { %5307 = vmatprep.mubr.msk.bf16.mxu1 %vm5504_vm0, %v5503_v1  ;;  %5304 = vmatpush3.bf16.msra.mxu1 %v5417_v20 }
0x25da   : > { %5305 = vmatprep.subr.bf16.mxu1 %v5503_v1 }
0x25dd   : > { %5306 = vmatpush3.bf16.msra.mxu1 %v5418_v21 }
0x26ab   : > { %v4252_v62 = vpop.f32.mrb[96].mxu1 }
0x26ac   : > { %v4253_v63 = vadd.f32 %v4770_v59, %v4252_v62  ;;  %v5289_v0 = vpop.f32.mrb[97].mxu1 }
0x26ad   : > { %v4255_v2 = vpop.f32.mrb[98].mxu1 }
0x26ae   : > { %v4258_v3 = vmax.f32 %v4253_v63, 0.0  ;;  %v5290_v4 = vpop.f32.mrb[99].mxu1 }
0x26b0   : > { %v4259_v9 = vpack.c.bf16 %v4258_v3, %v4258_v3 }
0x26b2   : > { %5300 = vmatmul.mubr.msk.bf16.vlgmr.msra.gmra.mrb[104].mxu0 %vm2667_vm5, %v4259_v9 }
0x2785   : > { %v4336_v6 = vpop.f32.mrb[104].mxu0 }
0x2786   : > { %v4337_v11 = vadd.f32 %v4774_v5, %v4336_v6  ;;  %v5301_v12 = vpop.f32.mrb[105].mxu0 }
0x2787   : > { %v4339_v13 = vpop.f32.mrb[106].mxu0 }
0x2788   : > { %v5302_v60 = vpop.f32.mrb[107].mxu0  ;;  %v4342_v14 = vadd.f32 %v4337_v11, %v4190_v56 }
0x278a   : > { %v4345_v15 = vsel %vm1136_vm1, %v4342_v14, 0.0 }
0x278b   : > { %4346 = vadd.xlane.f32.xlu0 %v4345_v15 }
0x2818   : > { %v4347_v61 = vpop.xlane.xlu0 %4346 }
0x2819   : > { %v4348_v16 = vmul.f32 0.03125, %v4347_v61 }
0x281b   : > { %v4349_v17 = vsub.f32 %v4342_v14, %v4348_v16 }
0x281d   : > { %v4350_v18 = vmul.f32 %v4349_v17, %v4349_v17 }
0x281f   : > { %v4351_v19 = vsel %vm1136_vm1, %v4350_v18, 0.0 }
0x2820   : > { %4352 = vadd.xlane.f32.xlu1 %v4351_v19 }
0x28ad   : > { %v4353_v22 = vpop.xlane.xlu1 %4352 }
0x28ae   : > { %v4354_v7 = vmul.f32 0.03125, %v4353_v22 }
0x28b0   : > { %v4355_v23 = vadd.f32 1e-05, %v4354_v7 }
0x28b2   : > { %5457 = vrsqrt.f32 %v4355_v23 }
0x28bc   : > { %v5458_v32 = vpop.eup %5457 }
0x28bd   : > { %v4357_v24 = vmul.f32 %v5458_v32, %v4349_v17 }
0x28bf   : > { %v4364_v26 = vmul.f32 %v4780_v8, %v4357_v24 }
0x28c1   : > { %v4371_v27 = vadd.f32 %v4781_v25, %v4364_v26 }
0x28c3   : > { %v4372_v28 = vpack.c.bf16 %v4371_v27, %v4371_v27 }
0x28c5   : > { %5308 = vmatmul.mubr.msk.bf16.vlgmr.msra.gmra.mrb[100].mxu1 %vm1136_vm1, %v4372_v28 }
0x2998   : > { %v4433_v1 = vpop.f32.mrb[100].mxu1 }
0x2999   : > { %v4434_v30 = vadd.f32 %v4782_v29, %v4433_v1  ;;  %v5309_v31 = vpop.f32.mrb[101].mxu1 }
0x299a   : > { %v4436_v33 = vpop.f32.mrb[102].mxu1 }
0x299b   : > { %4439 = vst.msk [vmem:[%s1093_s18] sm:$0xff] %vm2667_vm5, %v4434_v30  ;;  %v5310_v10 = vpop.f32.mrb[103].mxu1 }
0x299c PF: > { %s83_s28 = sadd.s32 1, %s5465_s28  }
0x299d   : > { %p80_p4 = scmp.ge.s32.totalorder %s83_s28, 4  }
0x299f   :  { %82 = sbr.rel (!%p80_p4) target bundleno = 61 (0x3d), region = 272 }

</bundles_post_ra>
